<compile_context>
chip_gen: v7x
topology: tpu7x:2x2x1
jax: 0.10.0
libtpu: 0.0.40
codegen_flags: <defaults>
</compile_context>

<pallas_src>
import functools

import jax
import jax.numpy as jnp
import numpy as np
from jax.experimental import pallas as pl
from jax.experimental.pallas import tpu as pltpu


# ----------------------------------------------------------------------------
# Pallas kernel: WB windows of full window-attention per grid step.
# ----------------------------------------------------------------------------
def _window_attn_kernel(x_ref, wq_ref, bq_ref, wk_ref, bk_ref, wv_ref, bv_ref,
                        wproj_ref, bproj_ref, bias_ref, o_ref,
                        *, num_heads, head_dim):
    WB, N, C = x_ref.shape
    H, D = num_heads, head_dim
    R = WB * N

    # (WB, N, C) -> (R, C); x arrives as bf16 from the wrapper.
    x2 = x_ref[...].reshape(R, C)

    # q/k/v projections (MXU, bf16 in / f32 accumulate). qk scale folded into wq/bq.
    q = jnp.dot(x2, wq_ref[...], preferred_element_type=jnp.float32) + bq_ref[...]
    k = jnp.dot(x2, wk_ref[...], preferred_element_type=jnp.float32) + bk_ref[...]
    v = jnp.dot(x2, wv_ref[...], preferred_element_type=jnp.float32) + bv_ref[...]
    qb = q.astype(jnp.bfloat16)
    kb = k.astype(jnp.bfloat16)
    vb = v.astype(jnp.bfloat16)

    y = jnp.zeros((R, C), jnp.float32)

    # Heads: small static unrolled loop; no (N,H,D) transposes, single-batch-dim
    # einsums only (the pattern known to lower cleanly in Mosaic).
    for h in range(H):
        lo = h * D
        qh = qb[:, lo:lo + D].reshape(WB, N, D)
        kh = kb[:, lo:lo + D].reshape(WB, N, D)
        vh = vb[:, lo:lo + D].reshape(WB, N, D)

        # scores + relative position bias
        s = jnp.einsum('wnd,wmd->wnm', qh, kh,
                       preferred_element_type=jnp.float32)          # (WB, N, N)
        s = s + bias_ref[h]                                         # (N, N) bcast

        # softmax (f32), EUP approx reciprocal for the normalization
        s = s - jnp.max(s, axis=-1, keepdims=True)
        p = jnp.exp(s)
        p = p * pl.reciprocal(jnp.sum(p, axis=-1, keepdims=True), approx=True)

        # attention-weighted values; fold head directly into the output proj:
        # y += out_h @ wproj[h*D:(h+1)*D, :]
        oh = jnp.einsum('wnm,wmd->wnd', p.astype(jnp.bfloat16), vh,
                        preferred_element_type=jnp.float32)         # (WB, N, D)
        y = y + jnp.dot(oh.reshape(R, D).astype(jnp.bfloat16),
                        wproj_ref[lo:lo + D, :],
                        preferred_element_type=jnp.float32)

    y = y + bproj_ref[...]
    o_ref[...] = y.reshape(WB, N, C).astype(o_ref.dtype)


# ----------------------------------------------------------------------------
# Wrapper
# ----------------------------------------------------------------------------
@functools.partial(jax.jit, static_argnames=("win_size", "num_heads",
                                             "qk_scale", "windows_per_block"))
def window_attention_pallas(x, params, win_size, num_heads, qk_scale=None,
                            windows_per_block=32):
    B_, N, C = x.shape
    head_dim = C // num_heads
    scale = qk_scale or head_dim ** (-0.5)
    assert N == win_size[0] * win_size[1]
    assert C % num_heads == 0

    # Dense relative position bias (H, N, N). Depends only on the table and
    # win_size; under jit this gather is hoisted out of the kernel.
    rel_index = _relative_position_index(win_size)                  # (N, N) int32
    table = params['rel_bias_table']                                # ((2h-1)(2w-1), H)
    rel_bias = table[rel_index.reshape(-1)].reshape(N, N, num_heads)
    rel_bias = jnp.transpose(rel_bias, (2, 0, 1)).astype(jnp.float32)

    # Fold qk scale into the q projection; split kv into k / v weights so the
    # kernel never slices kv columns.  Weights go to bf16 (MXU input dtype);
    # biases stay f32 (added to the f32 accumulators).
    wq = (params['wq'] * scale).astype(jnp.bfloat16)
    bq = (params['bq'] * scale).reshape(1, C).astype(jnp.float32)
    wk = params['wkv'][:, :C].astype(jnp.bfloat16)
    wv = params['wkv'][:, C:].astype(jnp.bfloat16)
    bk = params['bkv'][:C].reshape(1, C).astype(jnp.float32)
    bv = params['bkv'][C:].reshape(1, C).astype(jnp.float32)
    wproj = params['wproj'].astype(jnp.bfloat16)
    bproj = params['bproj'].reshape(1, C).astype(jnp.float32)

    # Window batching (pad B_ up to a multiple of WB; padded windows discarded).
    WB = max(1, min(windows_per_block, B_))
    B_pad = ((B_ + WB - 1) // WB) * WB
    xp = x if B_pad == B_ else jnp.pad(x, ((0, B_pad - B_), (0, 0), (0, 0)))
    xp = xp.astype(jnp.bfloat16)        # MXU input dtype; halves input DMA bytes

    kernel = functools.partial(_window_attn_kernel,
                               num_heads=num_heads, head_dim=head_dim)

    # Advisory cost estimate for the XLA scheduler.
    flops_per_window = 8 * N * C * C + 4 * num_heads * N * N * head_dim
    bytes_accessed = (B_pad * N * C * (2 + 4)            # x (bf16) + out (f32)
                      + 4 * C * C * 2 + 4 * C * 4        # weights (bf16) + biases
                      + num_heads * N * N * 4)           # rel bias
    cost = pl.CostEstimate(flops=int(B_pad * flops_per_window),
                           transcendentals=int(B_pad * num_heads * N * N),
                           bytes_accessed=int(bytes_accessed))

    out = pl.pallas_call(
        kernel,
        out_shape=jax.ShapeDtypeStruct((B_pad, N, C), x.dtype),
        grid_spec=pltpu.PrefetchScalarGridSpec(
            num_scalar_prefetch=0,
            grid=(B_pad // WB,),
            in_specs=[
                pl.BlockSpec((WB, N, C), lambda b: (b, 0, 0)),          # x
                pl.BlockSpec((C, C), lambda b: (0, 0)),                 # wq (scaled)
                pl.BlockSpec((1, C), lambda b: (0, 0)),                 # bq (scaled)
                pl.BlockSpec((C, C), lambda b: (0, 0)),                 # wk
                pl.BlockSpec((1, C), lambda b: (0, 0)),                 # bk
                pl.BlockSpec((C, C), lambda b: (0, 0)),                 # wv
                pl.BlockSpec((1, C), lambda b: (0, 0)),                 # bv
                pl.BlockSpec((C, C), lambda b: (0, 0)),                 # wproj
                pl.BlockSpec((1, C), lambda b: (0, 0)),                 # bproj
                pl.BlockSpec((num_heads, N, N), lambda b: (0, 0, 0)),   # rel bias
            ],
            out_specs=pl.BlockSpec((WB, N, C), lambda b: (b, 0, 0)),
        ),
        compiler_params=pltpu.CompilerParams(
            dimension_semantics=("parallel",)),
        cost_estimate=cost,
    )(xp, wq, bq, wk, bk, wv, bv, wproj, bproj, rel_bias)

    return out[:B_] if B_pad != B_ else out


def _relative_position_index(win_size):
    """Same construction as the PyTorch module's registered buffer."""
    wh, ww = win_size
    coords_h = np.arange(wh)
    coords_w = np.arange(ww)
    coords = np.stack(np.meshgrid(coords_h, coords_w, indexing='ij'))   # (2, wh, ww)
    coords_flatten = coords.reshape(2, -1)                              # (2, N)
    rel = coords_flatten[:, :, None] - coords_flatten[:, None, :]       # (2, N, N)
    rel = rel.transpose(1, 2, 0).copy()                                 # (N, N, 2)
    rel[:, :, 0] += wh - 1
    rel[:, :, 1] += ww - 1
    rel[:, :, 0] *= 2 * ww - 1
    return jnp.asarray(rel.sum(-1), dtype=jnp.int32)                    # (N, N)


# ----------------------------------------------------------------------------
# Pure-JAX f32 reference (mirrors the PyTorch forward, linear proj, no mask)
# ----------------------------------------------------------------------------
def window_attention_ref(x, params, win_size, num_heads, qk_scale=None):
    B_, N, C = x.shape
    head_dim = C // num_heads
    scale = qk_scale or head_dim ** (-0.5)

    q = x @ params['wq'] + params['bq']
    kv = x @ params['wkv'] + params['bkv']
    k, v = kv[..., :C], kv[..., C:]

    def split_heads(t):  # (B, N, C) -> (B, H, N, D)
        return t.reshape(B_, N, num_heads, head_dim).transpose(0, 2, 1, 3)

    q, k, v = split_heads(q) * scale, split_heads(k), split_heads(v)
    attn = jnp.einsum('bhnd,bhmd->bhnm', q, k)

    rel_index = _relative_position_index(win_size)
    bias = params['rel_bias_table'][rel_index.reshape(-1)].reshape(N, N, num_heads)
    bias = jnp.transpose(bias, (2, 0, 1))                               # (H, N, N)
    attn = attn + bias[None]

    attn = jax.nn.softmax(attn, axis=-1)
    out = jnp.einsum('bhnm,bhmd->bhnd', attn, v)
    out = out.transpose(0, 2, 1, 3).reshape(B_, N, C)
    return out @ params['wproj'] + params['bproj']


# ----------------------------------------------------------------------------
# Deterministic parameter init + driver
# ----------------------------------------------------------------------------
def init_params(key, dim, num_heads, win_size):
    ks = jax.random.split(key, 8)
    n_bias = (2 * win_size[0] - 1) * (2 * win_size[1] - 1)
    f32 = jnp.float32

    def lin(k, fan_in, shape):
        return jax.random.uniform(k, shape, f32, -1.0, 1.0) / np.sqrt(fan_in)

    return {
        # trunc_normal_(std=0.02) approximated by clipped normal (deterministic)
        'rel_bias_table': jnp.clip(
            0.02 * jax.random.normal(ks[0], (n_bias, num_heads), f32), -0.04, 0.04),
        'wq': lin(ks[1], dim, (dim, dim)),
        'bq': lin(ks[2], dim, (dim,)),
        'wkv': lin(ks[3], dim, (dim, 2 * dim)),
        'bkv': lin(ks[4], dim, (2 * dim,)),
        'wproj': lin(ks[5], dim, (dim, dim)),
        'bproj': lin(ks[6], dim, (dim,)),
    }


if __name__ == "__main__":
    dim = 32
    num_heads = 4
    win_size = (8, 8)
    B_ = 10                     # number of windows (batch * nW)
    N = win_size[0] * win_size[1]

    key = jax.random.PRNGKey(0)
    kx, kp = jax.random.split(key)
    x = jax.random.normal(kx, (B_, N, dim), jnp.float32)
    params = init_params(kp, dim, num_heads, win_size)

    # windows_per_block=4 exercises grid > 1 and the padding path (10 -> 12).
    out = window_attention_pallas(x, params, win_size, num_heads,
                                  windows_per_block=4)
    out = jax.block_until_ready(out)

    ref = window_attention_ref(x, params, win_size, num_heads)
    # bf16 MXU inputs + approx reciprocal -> relaxed (but tight) tolerance
    np.testing.assert_allclose(np.asarray(out), np.asarray(ref),
                               rtol=2e-2, atol=2e-2)
    print("KERNEL_OK")
</pallas_src>

<mosaic_0001>
module attributes {stable_mosaic.version = 11 : i64} {
  func.func @_window_attn_kernel(%arg0: i32, %arg1: memref<4x64x32xbf16, #tpu.memory_space<vmem>>, %arg2: memref<32x32xbf16, #tpu.memory_space<vmem>>, %arg3: memref<1x32xf32, #tpu.memory_space<vmem>>, %arg4: memref<32x32xbf16, #tpu.memory_space<vmem>>, %arg5: memref<1x32xf32, #tpu.memory_space<vmem>>, %arg6: memref<32x32xbf16, #tpu.memory_space<vmem>>, %arg7: memref<1x32xf32, #tpu.memory_space<vmem>>, %arg8: memref<32x32xbf16, #tpu.memory_space<vmem>>, %arg9: memref<1x32xf32, #tpu.memory_space<vmem>>, %arg10: memref<4x64x64xf32, #tpu.memory_space<vmem>>, %arg11: memref<4x64x32xf32, #tpu.memory_space<vmem>>) attributes {dimension_semantics = [#tpu.dimension_semantics<parallel>], iteration_bounds = array<i64: 3>, scalar_prefetch = 0 : i64, scratch_operands = 0 : i64, tpu.core_type = #tpu.core_type<tc>, window_params = [{transform_indices = @transform_0, window_bounds = array<i64: 4, 64, 32>}, {pipeline_mode = #tpu.pipeline_mode<synchronous>, transform_indices = @transform_1, window_bounds = array<i64: 32, 32>}, {pipeline_mode = #tpu.pipeline_mode<synchronous>, transform_indices = @transform_2, window_bounds = array<i64: 1, 32>}, {pipeline_mode = #tpu.pipeline_mode<synchronous>, transform_indices = @transform_3, window_bounds = array<i64: 32, 32>}, {pipeline_mode = #tpu.pipeline_mode<synchronous>, transform_indices = @transform_4, window_bounds = array<i64: 1, 32>}, {pipeline_mode = #tpu.pipeline_mode<synchronous>, transform_indices = @transform_5, window_bounds = array<i64: 32, 32>}, {pipeline_mode = #tpu.pipeline_mode<synchronous>, transform_indices = @transform_6, window_bounds = array<i64: 1, 32>}, {pipeline_mode = #tpu.pipeline_mode<synchronous>, transform_indices = @transform_7, window_bounds = array<i64: 32, 32>}, {pipeline_mode = #tpu.pipeline_mode<synchronous>, transform_indices = @transform_8, window_bounds = array<i64: 1, 32>}, {pipeline_mode = #tpu.pipeline_mode<synchronous>, transform_indices = @transform_9, window_bounds = array<i64: 4, 64, 64>}, {transform_indices = @transform_10, window_bounds = array<i64: 4, 64, 32>}]} {
    %c0 = arith.constant 0 : index
    %c0_0 = arith.constant 0 : index
    %c0_1 = arith.constant 0 : index
    %0 = vector.load %arg1[%c0, %c0_0, %c0_1] : memref<4x64x32xbf16, #tpu.memory_space<vmem>>, vector<4x64x32xbf16>
    %1 = vector.shape_cast %0 : vector<4x64x32xbf16> to vector<256x32xbf16>
    %c0_2 = arith.constant 0 : index
    %c0_3 = arith.constant 0 : index
    %2 = vector.load %arg2[%c0_2, %c0_3] : memref<32x32xbf16, #tpu.memory_space<vmem>>, vector<32x32xbf16>
    %cst = arith.constant dense<0.000000e+00> : vector<256x32xf32>
    %3 = tpu.matmul %1, %2, %cst {dimension_numbers = #tpu.dot_dimension_numbers<[1], [0], [0], [1], [0, 0, 1, 1], [], []>} : vector<256x32xbf16>, vector<32x32xbf16>, vector<256x32xf32> -> vector<256x32xf32>
    %c0_4 = arith.constant 0 : index
    %c0_5 = arith.constant 0 : index
    %4 = vector.load %arg3[%c0_4, %c0_5] : memref<1x32xf32, #tpu.memory_space<vmem>>, vector<1x32xf32>
    %5 = vector.broadcast %4 : vector<1x32xf32> to vector<256x32xf32>
    %6 = arith.addf %3, %5 : vector<256x32xf32>
    %c0_6 = arith.constant 0 : index
    %c0_7 = arith.constant 0 : index
    %7 = vector.load %arg4[%c0_6, %c0_7] : memref<32x32xbf16, #tpu.memory_space<vmem>>, vector<32x32xbf16>
    %cst_8 = arith.constant dense<0.000000e+00> : vector<256x32xf32>
    %8 = tpu.matmul %1, %7, %cst_8 {dimension_numbers = #tpu.dot_dimension_numbers<[1], [0], [0], [1], [0, 0, 1, 1], [], []>} : vector<256x32xbf16>, vector<32x32xbf16>, vector<256x32xf32> -> vector<256x32xf32>
    %c0_9 = arith.constant 0 : index
    %c0_10 = arith.constant 0 : index
    %9 = vector.load %arg5[%c0_9, %c0_10] : memref<1x32xf32, #tpu.memory_space<vmem>>, vector<1x32xf32>
    %10 = vector.broadcast %9 : vector<1x32xf32> to vector<256x32xf32>
    %11 = arith.addf %8, %10 : vector<256x32xf32>
    %c0_11 = arith.constant 0 : index
    %c0_12 = arith.constant 0 : index
    %12 = vector.load %arg6[%c0_11, %c0_12] : memref<32x32xbf16, #tpu.memory_space<vmem>>, vector<32x32xbf16>
    %cst_13 = arith.constant dense<0.000000e+00> : vector<256x32xf32>
    %13 = tpu.matmul %1, %12, %cst_13 {dimension_numbers = #tpu.dot_dimension_numbers<[1], [0], [0], [1], [0, 0, 1, 1], [], []>} : vector<256x32xbf16>, vector<32x32xbf16>, vector<256x32xf32> -> vector<256x32xf32>
    %c0_14 = arith.constant 0 : index
    %c0_15 = arith.constant 0 : index
    %14 = vector.load %arg7[%c0_14, %c0_15] : memref<1x32xf32, #tpu.memory_space<vmem>>, vector<1x32xf32>
    %15 = vector.broadcast %14 : vector<1x32xf32> to vector<256x32xf32>
    %16 = arith.addf %13, %15 : vector<256x32xf32>
    %17 = arith.truncf %6 : vector<256x32xf32> to vector<256x32xbf16>
    %18 = arith.truncf %11 : vector<256x32xf32> to vector<256x32xbf16>
    %19 = arith.truncf %16 : vector<256x32xf32> to vector<256x32xbf16>
    %cst_16 = arith.constant 0.000000e+00 : f32
    %20 = vector.broadcast %cst_16 : f32 to vector<256x32xf32>
    %21 = vector.extract_strided_slice %17 {offsets = [0, 0], sizes = [256, 8], strides = [1, 1]} : vector<256x32xbf16> to vector<256x8xbf16>
    %22 = vector.shape_cast %21 : vector<256x8xbf16> to vector<4x64x8xbf16>
    %23 = vector.extract_strided_slice %18 {offsets = [0, 0], sizes = [256, 8], strides = [1, 1]} : vector<256x32xbf16> to vector<256x8xbf16>
    %24 = vector.shape_cast %23 : vector<256x8xbf16> to vector<4x64x8xbf16>
    %25 = vector.extract_strided_slice %19 {offsets = [0, 0], sizes = [256, 8], strides = [1, 1]} : vector<256x32xbf16> to vector<256x8xbf16>
    %26 = vector.shape_cast %25 : vector<256x8xbf16> to vector<4x64x8xbf16>
    "tpu.trace_start"() <{level = 10 : i32, message = "wnd,wmd->wnm"}> : () -> ()
    %cst_17 = arith.constant dense<0.000000e+00> : vector<4x64x64xf32>
    %27 = tpu.matmul %22, %24, %cst_17 {dimension_numbers = #tpu.dot_dimension_numbers<[2], [2], [1], [1], [0, 0, 0, 1, 1, 1], [0], [0]>} : vector<4x64x8xbf16>, vector<4x64x8xbf16>, vector<4x64x64xf32> -> vector<4x64x64xf32>
    "tpu.trace_stop"() : () -> ()
    %c0_18 = arith.constant 0 : index
    %c0_19 = arith.constant 0 : index
    %c0_20 = arith.constant 0 : index
    %28 = vector.load %arg10[%c0_18, %c0_19, %c0_20] : memref<4x64x64xf32, #tpu.memory_space<vmem>>, vector<1x64x64xf32>
    %29 = vector.shape_cast %28 : vector<1x64x64xf32> to vector<64x64xf32>
    %30 = vector.shape_cast %29 : vector<64x64xf32> to vector<1x64x64xf32>
    %31 = vector.broadcast %30 : vector<1x64x64xf32> to vector<4x64x64xf32>
    %32 = arith.addf %27, %31 : vector<4x64x64xf32>
    %cst_21 = arith.constant dense<0xFF800000> : vector<4x64xf32>
    %33 = vector.multi_reduction <maximumf>, %32, %cst_21 [2] : vector<4x64x64xf32> to vector<4x64xf32>
    %34 = vector.shape_cast %33 : vector<4x64xf32> to vector<4x64x1xf32>
    %35 = vector.broadcast %34 : vector<4x64x1xf32> to vector<4x64x64xf32>
    %36 = arith.subf %32, %35 : vector<4x64x64xf32>
    %37 = math.exp %36 : vector<4x64x64xf32>
    %cst_22 = arith.constant dense<0.000000e+00> : vector<4x64xf32>
    %38 = vector.multi_reduction <add>, %37, %cst_22 [2] : vector<4x64x64xf32> to vector<4x64xf32>
    %39 = vector.shape_cast %38 : vector<4x64xf32> to vector<4x64x1xf32>
    %40 = tpu.reciprocal %39 {approx = true} : vector<4x64x1xf32> -> vector<4x64x1xf32>
    %41 = vector.broadcast %40 : vector<4x64x1xf32> to vector<4x64x64xf32>
    %42 = arith.mulf %37, %41 : vector<4x64x64xf32>
    %43 = arith.truncf %42 : vector<4x64x64xf32> to vector<4x64x64xbf16>
    "tpu.trace_start"() <{level = 10 : i32, message = "wnm,wmd->wnd"}> : () -> ()
    %cst_23 = arith.constant dense<0.000000e+00> : vector<4x64x8xf32>
    %44 = tpu.matmul %43, %26, %cst_23 {dimension_numbers = #tpu.dot_dimension_numbers<[2], [1], [1], [2], [0, 0, 0, 1, 1, 2], [0], [0]>} : vector<4x64x64xbf16>, vector<4x64x8xbf16>, vector<4x64x8xf32> -> vector<4x64x8xf32>
    "tpu.trace_stop"() : () -> ()
    %45 = vector.shape_cast %44 : vector<4x64x8xf32> to vector<256x8xf32>
    %46 = arith.truncf %45 : vector<256x8xf32> to vector<256x8xbf16>
    %c0_24 = arith.constant 0 : index
    %c0_25 = arith.constant 0 : index
    %47 = vector.load %arg8[%c0_24, %c0_25] : memref<32x32xbf16, #tpu.memory_space<vmem>>, vector<8x32xbf16>
    %cst_26 = arith.constant dense<0.000000e+00> : vector<256x32xf32>
    %48 = tpu.matmul %46, %47, %cst_26 {dimension_numbers = #tpu.dot_dimension_numbers<[1], [0], [0], [1], [0, 0, 1, 1], [], []>} : vector<256x8xbf16>, vector<8x32xbf16>, vector<256x32xf32> -> vector<256x32xf32>
    %49 = arith.addf %20, %48 : vector<256x32xf32>
    %50 = vector.extract_strided_slice %17 {offsets = [0, 8], sizes = [256, 8], strides = [1, 1]} : vector<256x32xbf16> to vector<256x8xbf16>
    %51 = vector.shape_cast %50 : vector<256x8xbf16> to vector<4x64x8xbf16>
    %52 = vector.extract_strided_slice %18 {offsets = [0, 8], sizes = [256, 8], strides = [1, 1]} : vector<256x32xbf16> to vector<256x8xbf16>
    %53 = vector.shape_cast %52 : vector<256x8xbf16> to vector<4x64x8xbf16>
    %54 = vector.extract_strided_slice %19 {offsets = [0, 8], sizes = [256, 8], strides = [1, 1]} : vector<256x32xbf16> to vector<256x8xbf16>
    %55 = vector.shape_cast %54 : vector<256x8xbf16> to vector<4x64x8xbf16>
    "tpu.trace_start"() <{level = 10 : i32, message = "wnd,wmd->wnm"}> : () -> ()
    %cst_27 = arith.constant dense<0.000000e+00> : vector<4x64x64xf32>
    %56 = tpu.matmul %51, %53, %cst_27 {dimension_numbers = #tpu.dot_dimension_numbers<[2], [2], [1], [1], [0, 0, 0, 1, 1, 1], [0], [0]>} : vector<4x64x8xbf16>, vector<4x64x8xbf16>, vector<4x64x64xf32> -> vector<4x64x64xf32>
    "tpu.trace_stop"() : () -> ()
    %c1 = arith.constant 1 : index
    %c0_28 = arith.constant 0 : index
    %c0_29 = arith.constant 0 : index
    %57 = vector.load %arg10[%c1, %c0_28, %c0_29] : memref<4x64x64xf32, #tpu.memory_space<vmem>>, vector<1x64x64xf32>
    %58 = vector.shape_cast %57 : vector<1x64x64xf32> to vector<64x64xf32>
    %59 = vector.shape_cast %58 : vector<64x64xf32> to vector<1x64x64xf32>
    %60 = vector.broadcast %59 : vector<1x64x64xf32> to vector<4x64x64xf32>
    %61 = arith.addf %56, %60 : vector<4x64x64xf32>
    %cst_30 = arith.constant dense<0xFF800000> : vector<4x64xf32>
    %62 = vector.multi_reduction <maximumf>, %61, %cst_30 [2] : vector<4x64x64xf32> to vector<4x64xf32>
    %63 = vector.shape_cast %62 : vector<4x64xf32> to vector<4x64x1xf32>
    %64 = vector.broadcast %63 : vector<4x64x1xf32> to vector<4x64x64xf32>
    %65 = arith.subf %61, %64 : vector<4x64x64xf32>
    %66 = math.exp %65 : vector<4x64x64xf32>
    %cst_31 = arith.constant dense<0.000000e+00> : vector<4x64xf32>
    %67 = vector.multi_reduction <add>, %66, %cst_31 [2] : vector<4x64x64xf32> to vector<4x64xf32>
    %68 = vector.shape_cast %67 : vector<4x64xf32> to vector<4x64x1xf32>
    %69 = tpu.reciprocal %68 {approx = true} : vector<4x64x1xf32> -> vector<4x64x1xf32>
    %70 = vector.broadcast %69 : vector<4x64x1xf32> to vector<4x64x64xf32>
    %71 = arith.mulf %66, %70 : vector<4x64x64xf32>
    %72 = arith.truncf %71 : vector<4x64x64xf32> to vector<4x64x64xbf16>
    "tpu.trace_start"() <{level = 10 : i32, message = "wnm,wmd->wnd"}> : () -> ()
    %cst_32 = arith.constant dense<0.000000e+00> : vector<4x64x8xf32>
    %73 = tpu.matmul %72, %55, %cst_32 {dimension_numbers = #tpu.dot_dimension_numbers<[2], [1], [1], [2], [0, 0, 0, 1, 1, 2], [0], [0]>} : vector<4x64x64xbf16>, vector<4x64x8xbf16>, vector<4x64x8xf32> -> vector<4x64x8xf32>
    "tpu.trace_stop"() : () -> ()
    %74 = vector.shape_cast %73 : vector<4x64x8xf32> to vector<256x8xf32>
    %75 = arith.truncf %74 : vector<256x8xf32> to vector<256x8xbf16>
    %c8 = arith.constant 8 : index
    %c0_33 = arith.constant 0 : index
    %76 = vector.load %arg8[%c8, %c0_33] : memref<32x32xbf16, #tpu.memory_space<vmem>>, vector<8x32xbf16>
    %cst_34 = arith.constant dense<0.000000e+00> : vector<256x32xf32>
    %77 = tpu.matmul %75, %76, %cst_34 {dimension_numbers = #tpu.dot_dimension_numbers<[1], [0], [0], [1], [0, 0, 1, 1], [], []>} : vector<256x8xbf16>, vector<8x32xbf16>, vector<256x32xf32> -> vector<256x32xf32>
    %78 = arith.addf %49, %77 : vector<256x32xf32>
    %79 = vector.extract_strided_slice %17 {offsets = [0, 16], sizes = [256, 8], strides = [1, 1]} : vector<256x32xbf16> to vector<256x8xbf16>
    %80 = vector.shape_cast %79 : vector<256x8xbf16> to vector<4x64x8xbf16>
    %81 = vector.extract_strided_slice %18 {offsets = [0, 16], sizes = [256, 8], strides = [1, 1]} : vector<256x32xbf16> to vector<256x8xbf16>
    %82 = vector.shape_cast %81 : vector<256x8xbf16> to vector<4x64x8xbf16>
    %83 = vector.extract_strided_slice %19 {offsets = [0, 16], sizes = [256, 8], strides = [1, 1]} : vector<256x32xbf16> to vector<256x8xbf16>
    %84 = vector.shape_cast %83 : vector<256x8xbf16> to vector<4x64x8xbf16>
    "tpu.trace_start"() <{level = 10 : i32, message = "wnd,wmd->wnm"}> : () -> ()
    %cst_35 = arith.constant dense<0.000000e+00> : vector<4x64x64xf32>
    %85 = tpu.matmul %80, %82, %cst_35 {dimension_numbers = #tpu.dot_dimension_numbers<[2], [2], [1], [1], [0, 0, 0, 1, 1, 1], [0], [0]>} : vector<4x64x8xbf16>, vector<4x64x8xbf16>, vector<4x64x64xf32> -> vector<4x64x64xf32>
    "tpu.trace_stop"() : () -> ()
    %c2 = arith.constant 2 : index
    %c0_36 = arith.constant 0 : index
    %c0_37 = arith.constant 0 : index
    %86 = vector.load %arg10[%c2, %c0_36, %c0_37] : memref<4x64x64xf32, #tpu.memory_space<vmem>>, vector<1x64x64xf32>
    %87 = vector.shape_cast %86 : vector<1x64x64xf32> to vector<64x64xf32>
    %88 = vector.shape_cast %87 : vector<64x64xf32> to vector<1x64x64xf32>
    %89 = vector.broadcast %88 : vector<1x64x64xf32> to vector<4x64x64xf32>
    %90 = arith.addf %85, %89 : vector<4x64x64xf32>
    %cst_38 = arith.constant dense<0xFF800000> : vector<4x64xf32>
    %91 = vector.multi_reduction <maximumf>, %90, %cst_38 [2] : vector<4x64x64xf32> to vector<4x64xf32>
    %92 = vector.shape_cast %91 : vector<4x64xf32> to vector<4x64x1xf32>
    %93 = vector.broadcast %92 : vector<4x64x1xf32> to vector<4x64x64xf32>
    %94 = arith.subf %90, %93 : vector<4x64x64xf32>
    %95 = math.exp %94 : vector<4x64x64xf32>
    %cst_39 = arith.constant dense<0.000000e+00> : vector<4x64xf32>
    %96 = vector.multi_reduction <add>, %95, %cst_39 [2] : vector<4x64x64xf32> to vector<4x64xf32>
    %97 = vector.shape_cast %96 : vector<4x64xf32> to vector<4x64x1xf32>
    %98 = tpu.reciprocal %97 {approx = true} : vector<4x64x1xf32> -> vector<4x64x1xf32>
    %99 = vector.broadcast %98 : vector<4x64x1xf32> to vector<4x64x64xf32>
    %100 = arith.mulf %95, %99 : vector<4x64x64xf32>
    %101 = arith.truncf %100 : vector<4x64x64xf32> to vector<4x64x64xbf16>
    "tpu.trace_start"() <{level = 10 : i32, message = "wnm,wmd->wnd"}> : () -> ()
    %cst_40 = arith.constant dense<0.000000e+00> : vector<4x64x8xf32>
    %102 = tpu.matmul %101, %84, %cst_40 {dimension_numbers = #tpu.dot_dimension_numbers<[2], [1], [1], [2], [0, 0, 0, 1, 1, 2], [0], [0]>} : vector<4x64x64xbf16>, vector<4x64x8xbf16>, vector<4x64x8xf32> -> vector<4x64x8xf32>
    "tpu.trace_stop"() : () -> ()
    %103 = vector.shape_cast %102 : vector<4x64x8xf32> to vector<256x8xf32>
    %104 = arith.truncf %103 : vector<256x8xf32> to vector<256x8xbf16>
    %c16 = arith.constant 16 : index
    %c0_41 = arith.constant 0 : index
    %105 = vector.load %arg8[%c16, %c0_41] : memref<32x32xbf16, #tpu.memory_space<vmem>>, vector<8x32xbf16>
    %cst_42 = arith.constant dense<0.000000e+00> : vector<256x32xf32>
    %106 = tpu.matmul %104, %105, %cst_42 {dimension_numbers = #tpu.dot_dimension_numbers<[1], [0], [0], [1], [0, 0, 1, 1], [], []>} : vector<256x8xbf16>, vector<8x32xbf16>, vector<256x32xf32> -> vector<256x32xf32>
    %107 = arith.addf %78, %106 : vector<256x32xf32>
    %108 = vector.extract_strided_slice %17 {offsets = [0, 24], sizes = [256, 8], strides = [1, 1]} : vector<256x32xbf16> to vector<256x8xbf16>
    %109 = vector.shape_cast %108 : vector<256x8xbf16> to vector<4x64x8xbf16>
    %110 = vector.extract_strided_slice %18 {offsets = [0, 24], sizes = [256, 8], strides = [1, 1]} : vector<256x32xbf16> to vector<256x8xbf16>
    %111 = vector.shape_cast %110 : vector<256x8xbf16> to vector<4x64x8xbf16>
    %112 = vector.extract_strided_slice %19 {offsets = [0, 24], sizes = [256, 8], strides = [1, 1]} : vector<256x32xbf16> to vector<256x8xbf16>
    %113 = vector.shape_cast %112 : vector<256x8xbf16> to vector<4x64x8xbf16>
    "tpu.trace_start"() <{level = 10 : i32, message = "wnd,wmd->wnm"}> : () -> ()
    %cst_43 = arith.constant dense<0.000000e+00> : vector<4x64x64xf32>
    %114 = tpu.matmul %109, %111, %cst_43 {dimension_numbers = #tpu.dot_dimension_numbers<[2], [2], [1], [1], [0, 0, 0, 1, 1, 1], [0], [0]>} : vector<4x64x8xbf16>, vector<4x64x8xbf16>, vector<4x64x64xf32> -> vector<4x64x64xf32>
    "tpu.trace_stop"() : () -> ()
    %c3 = arith.constant 3 : index
    %c0_44 = arith.constant 0 : index
    %c0_45 = arith.constant 0 : index
    %115 = vector.load %arg10[%c3, %c0_44, %c0_45] : memref<4x64x64xf32, #tpu.memory_space<vmem>>, vector<1x64x64xf32>
    %116 = vector.shape_cast %115 : vector<1x64x64xf32> to vector<64x64xf32>
    %117 = vector.shape_cast %116 : vector<64x64xf32> to vector<1x64x64xf32>
    %118 = vector.broadcast %117 : vector<1x64x64xf32> to vector<4x64x64xf32>
    %119 = arith.addf %114, %118 : vector<4x64x64xf32>
    %cst_46 = arith.constant dense<0xFF800000> : vector<4x64xf32>
    %120 = vector.multi_reduction <maximumf>, %119, %cst_46 [2] : vector<4x64x64xf32> to vector<4x64xf32>
    %121 = vector.shape_cast %120 : vector<4x64xf32> to vector<4x64x1xf32>
    %122 = vector.broadcast %121 : vector<4x64x1xf32> to vector<4x64x64xf32>
    %123 = arith.subf %119, %122 : vector<4x64x64xf32>
    %124 = math.exp %123 : vector<4x64x64xf32>
    %cst_47 = arith.constant dense<0.000000e+00> : vector<4x64xf32>
    %125 = vector.multi_reduction <add>, %124, %cst_47 [2] : vector<4x64x64xf32> to vector<4x64xf32>
    %126 = vector.shape_cast %125 : vector<4x64xf32> to vector<4x64x1xf32>
    %127 = tpu.reciprocal %126 {approx = true} : vector<4x64x1xf32> -> vector<4x64x1xf32>
    %128 = vector.broadcast %127 : vector<4x64x1xf32> to vector<4x64x64xf32>
    %129 = arith.mulf %124, %128 : vector<4x64x64xf32>
    %130 = arith.truncf %129 : vector<4x64x64xf32> to vector<4x64x64xbf16>
    "tpu.trace_start"() <{level = 10 : i32, message = "wnm,wmd->wnd"}> : () -> ()
    %cst_48 = arith.constant dense<0.000000e+00> : vector<4x64x8xf32>
    %131 = tpu.matmul %130, %113, %cst_48 {dimension_numbers = #tpu.dot_dimension_numbers<[2], [1], [1], [2], [0, 0, 0, 1, 1, 2], [0], [0]>} : vector<4x64x64xbf16>, vector<4x64x8xbf16>, vector<4x64x8xf32> -> vector<4x64x8xf32>
    "tpu.trace_stop"() : () -> ()
    %132 = vector.shape_cast %131 : vector<4x64x8xf32> to vector<256x8xf32>
    %133 = arith.truncf %132 : vector<256x8xf32> to vector<256x8xbf16>
    %c24 = arith.constant 24 : index
    %c0_49 = arith.constant 0 : index
    %134 = vector.load %arg8[%c24, %c0_49] : memref<32x32xbf16, #tpu.memory_space<vmem>>, vector<8x32xbf16>
    %cst_50 = arith.constant dense<0.000000e+00> : vector<256x32xf32>
    %135 = tpu.matmul %133, %134, %cst_50 {dimension_numbers = #tpu.dot_dimension_numbers<[1], [0], [0], [1], [0, 0, 1, 1], [], []>} : vector<256x8xbf16>, vector<8x32xbf16>, vector<256x32xf32> -> vector<256x32xf32>
    %136 = arith.addf %107, %135 : vector<256x32xf32>
    %c0_51 = arith.constant 0 : index
    %c0_52 = arith.constant 0 : index
    %137 = vector.load %arg9[%c0_51, %c0_52] : memref<1x32xf32, #tpu.memory_space<vmem>>, vector<1x32xf32>
    %138 = vector.broadcast %137 : vector<1x32xf32> to vector<256x32xf32>
    %139 = arith.addf %136, %138 : vector<256x32xf32>
    %140 = vector.shape_cast %139 : vector<256x32xf32> to vector<4x64x32xf32>
    %c0_53 = arith.constant 0 : index
    %c0_54 = arith.constant 0 : index
    %c0_55 = arith.constant 0 : index
    %141 = vector.load %arg11[%c0_53, %c0_54, %c0_55] : memref<4x64x32xf32, #tpu.memory_space<vmem>>, vector<4x64x32xf32>
    tpu.vector_store %arg11[%c0_53, %c0_54, %c0_55], %140 {strides = array<i32>} : memref<4x64x32xf32, #tpu.memory_space<vmem>>, vector<4x64x32xf32>,
    return
  }
  func.func @transform_0(%arg0: i32) -> (i32, i32, i32) {
    %c0_i32 = arith.constant 0 : i32
    %c0_i32_0 = arith.constant 0 : i32
    %c0_i32_1 = arith.constant 0 : i32
    return %arg0, %c0_i32, %c0_i32_0 : i32, i32, i32
  }
  func.func @transform_1(%arg0: i32) -> (i32, i32) {
    %c0_i32 = arith.constant 0 : i32
    %c0_i32_0 = arith.constant 0 : i32
    %c0_i32_1 = arith.constant 0 : i32
    return %c0_i32, %c0_i32_0 : i32, i32
  }
  func.func @transform_2(%arg0: i32) -> (i32, i32) {
    %c0_i32 = arith.constant 0 : i32
    %c0_i32_0 = arith.constant 0 : i32
    %c0_i32_1 = arith.constant 0 : i32
    return %c0_i32, %c0_i32_0 : i32, i32
  }
  func.func @transform_3(%arg0: i32) -> (i32, i32) {
    %c0_i32 = arith.constant 0 : i32
    %c0_i32_0 = arith.constant 0 : i32
    %c0_i32_1 = arith.constant 0 : i32
    return %c0_i32, %c0_i32_0 : i32, i32
  }
  func.func @transform_4(%arg0: i32) -> (i32, i32) {
    %c0_i32 = arith.constant 0 : i32
    %c0_i32_0 = arith.constant 0 : i32
    %c0_i32_1 = arith.constant 0 : i32
    return %c0_i32, %c0_i32_0 : i32, i32
  }
  func.func @transform_5(%arg0: i32) -> (i32, i32) {
    %c0_i32 = arith.constant 0 : i32
    %c0_i32_0 = arith.constant 0 : i32
    %c0_i32_1 = arith.constant 0 : i32
    return %c0_i32, %c0_i32_0 : i32, i32
  }
  func.func @transform_6(%arg0: i32) -> (i32, i32) {
    %c0_i32 = arith.constant 0 : i32
    %c0_i32_0 = arith.constant 0 : i32
    %c0_i32_1 = arith.constant 0 : i32
    return %c0_i32, %c0_i32_0 : i32, i32
  }
  func.func @transform_7(%arg0: i32) -> (i32, i32) {
    %c0_i32 = arith.constant 0 : i32
    %c0_i32_0 = arith.constant 0 : i32
    %c0_i32_1 = arith.constant 0 : i32
    return %c0_i32, %c0_i32_0 : i32, i32
  }
  func.func @transform_8(%arg0: i32) -> (i32, i32) {
    %c0_i32 = arith.constant 0 : i32
    %c0_i32_0 = arith.constant 0 : i32
    %c0_i32_1 = arith.constant 0 : i32
    return %c0_i32, %c0_i32_0 : i32, i32
  }
  func.func @transform_9(%arg0: i32) -> (i32, i32, i32) {
    %c0_i32 = arith.constant 0 : i32
    %c0_i32_0 = arith.constant 0 : i32
    %c0_i32_1 = arith.constant 0 : i32
    %c0_i32_2 = arith.constant 0 : i32
    return %c0_i32, %c0_i32_0, %c0_i32_1 : i32, i32, i32
  }
  func.func @transform_10(%arg0: i32) -> (i32, i32, i32) {
    %c0_i32 = arith.constant 0 : i32
    %c0_i32_0 = arith.constant 0 : i32
    %c0_i32_1 = arith.constant 0 : i32
    return %arg0, %c0_i32, %c0_i32_0 : i32, i32, i32
  }
}

</mosaic_0001>

<bundles_post_ra>
// kernel: window_attention_pallas.1
= control target key start
LH: loop header
LB: loop body
LE: loop exit
PB: predicated region body
PF: predicated region fallthrough
CT: control target
= control target key end

     0   :  { %s9006_s13 = smov 0   ;;  %s12184_s0 = inlined_call_operand.vmem [shape: bf16[12,64,32], index: 0, kind: input, shape index: {}]   ;;  %s12185_s1 = inlined_call_operand.vmem [shape: bf16[32,32], index: 1, kind: input, shape index: {}]   ;;  %s12186_s2 = inlined_call_operand.vmem [shape: f32[1,32], index: 2, kind: input, shape index: {}]   ;;  %s12187_s3 = inlined_call_operand.vmem [shape: bf16[32,32], index: 3, kind: input, shape index: {}]   ;;  %s12188_s4 = inlined_call_operand.vmem [shape: f32[1,32], index: 4, kind: input, shape index: {}]   ;;  %s12189_s5 = inlined_call_operand.vmem [shape: bf16[32,32], index: 5, kind: input, shape index: {}]   ;;  %s12190_s6 = inlined_call_operand.vmem [shape: f32[1,32], index: 6, kind: input, shape index: {}]   ;;  %s12191_s7 = inlined_call_operand.vmem [shape: bf16[32,32], index: 7, kind: input, shape index: {}]   ;;  %s12192_s8 = inlined_call_operand.vmem [shape: f32[1,32], index: 8, kind: input, shape index: {}]   ;;  %s12193_s9 = inlined_call_operand.vmem [shape: f32[4,64,64], index: 9, kind: input, shape index: {}]   ;;  %s12194_s10 = inlined_call_operand.vmem [shape: f32[12,64,32], index: 10, kind: output, shape index: {}]  }
   0x1 LB: > { %s6789_s14 = sadd.s32 4294967295, %s8946_s13   ;;  %p6793_p0 = scmp.ge.s32.totalorder %s8946_s13, 1  ;;  %s8946_s13 = sphi %s9006_s13, %s20_s13  }
   0x2   : > { %p314_p1 = scmp.lt.s32.totalorder %s8946_s13, 4 }
   0x4   : > { %p315_p2 = pnand %p6793_p0, %p314_p1 }
   0x6   : > { %318 = sbr.rel (%p315_p2) target bundleno = 3707 (0xe7b), region = 60 }
   0xd   : > { %v8406_v0 = vld [vmem:[%s12187_s3] sm:$0xff]   ;;  %s6794_s17 = sshll.u32 %s6789_s14, 2  ;;  %v8408_v2 = vld [vmem:[%s12187_s3 + $0x8] sm:$0xff]   ;;  %vm504_vm0 = vcmask 261120   ;;  %vm1138_vm1 = vcmask 64512   ;;  %s8948_s18 = smov 120  }
   0xe   : > { %v8407_v1 = vld [vmem:[%s12185_s1] sm:$0xff]   ;;  %p355_p3 = scmp.lt.s32.totalorder %s6794_s17, 11  ;;  %7508 = vmatprep.subr.bf16.mxu1 %v8406_v0  ;;  %v8410_v3 = vld [vmem:[%s12185_s1 + $0x8] sm:$0xff]   ;;  %vm1495_vm2 = vcmask 523264   ;;  %s8949_s19 = smov 112   ;;  %vm3455_vm3 = vcmask 1043456  }
   0xf   : > { %7509 = vmatpush3.bf16.msra.mxu1 %v8406_v0  ;;  %7472 = vmatprep.subr.bf16.mxu0 %v8407_v1  ;;  %v8426_v4 = vld [vmem:[%s12189_s5] sm:$0xff]   ;;  %v8427_v21 = vld [vmem:[%s12189_s5 + $0x8] sm:$0xff]   ;;  %s8950_s22 = smov 104  }
  0x10   : > { %s12608_s17 = smov (!%p355_p3, %s6794_s17), 11  ;;  %7510 = vmatprep.subr.bf16.mxu1 %v8408_v2  ;;  %7473 = vmatpush3.bf16.msra.mxu0 %v8407_v1  ;;  %v9107_v22 = vld [vmem:[%s12186_s2] ss:$0 sm:$0xff] }
  0x11   : > { %s7092_s24 = sshll.u32 %s12608_s17, 5  ;;  %7474 = vmatprep.subr.bf16.mxu0 %v8410_v3  ;;  %v9112_v24 = vld [vmem:[%s12188_s4] ss:$0 sm:$0xff] }
  0x12   : > { %s9032_s27 = scalar_lea.vmem %s12184_s0, %s7092_s24  ;;  %s7093_s24 = sshll.u32 %s12608_s17, 6 }
  0x13   : > { %7511 = vmatpush3.bf16.msra.mxu1 %v8408_v2  ;;  %v8409_v5 = vld [vmem:[%s9032_s27] sm:$0xff]   ;;  %v8411_v6 = vld [vmem:[%s9032_s27 + $0x8] sm:$0xff]   ;;  %v8412_v7 = vld [vmem:[%s9032_s27 + $0x10] sm:$0xff]   ;;  %s12058_s29 = scalar_lea.vmem %s12194_s10, %s7093_s24 }
  0x14   : > { %7475 = vmatpush3.bf16.msra.mxu0 %v8410_v3  ;;  %7512 = vmatprep.mubr.msk.bf16.mxu1 %vm504_vm0, %v8409_v5  ;;  %v8413_v8 = vld [vmem:[%s9032_s27 + $0x18] sm:$0xff]   ;;  %v8414_v9 = vld [vmem:[%s9032_s27 + $0x20] sm:$0xff]   ;;  %v8415_v10 = vld [vmem:[%s9032_s27 + $0x28] sm:$0xff]  }
  0x15   : > { %7476 = vmatprep.mubr.msk.bf16.mxu0 %vm504_vm0, %v8409_v5  ;;  %7544 = vmatprep.subr.bf16.mxu0 %v8426_v4  ;;  %v8416_v11 = vld [vmem:[%s9032_s27 + $0x30] sm:$0xff]   ;;  %v8417_v12 = vld [vmem:[%s9032_s27 + $0x38] sm:$0xff]   ;;  %v8418_v13 = vld [vmem:[%s9032_s27 + $0x40] sm:$0xff]  }
  0x16   : > { %7513 = vmatmul.mubr.msk.bf16.vlgmr.msra.gmra.mrb[0].mxu1 %vm504_vm0, %v8411_v6  ;;  %v8419_v14 = vld [vmem:[%s9032_s27 + $0x48] sm:$0xff]   ;;  %v8420_v15 = vld [vmem:[%s9032_s27 + $0x50] sm:$0xff]   ;;  %v8421_v16 = vld [vmem:[%s9032_s27 + $0x58] sm:$0xff]  }
  0x17   : > { %7477 = vmatmul.mubr.msk.bf16.vlgmr.msra.gmra.mrb[0].mxu0 %vm504_vm0, %v8411_v6  ;;  %7516 = vmatprep.mubr.msk.bf16.mxu1 %vm504_vm0, %v8412_v7  ;;  %v8422_v17 = vld [vmem:[%s9032_s27 + $0x60] sm:$0xff]   ;;  %v8423_v18 = vld [vmem:[%s9032_s27 + $0x68] sm:$0xff]   ;;  %v8424_v19 = vld [vmem:[%s9032_s27 + $0x70] sm:$0xff]  }
  0x18   : > { %7480 = vmatprep.mubr.msk.bf16.mxu0 %vm504_vm0, %v8412_v7  ;;  %7545 = vmatpush3.bf16.msra.mxu0 %v8426_v4  ;;  %v8425_v20 = vld [vmem:[%s9032_s27 + $0x78] sm:$0xff]  }
  0x19   : > { %7546 = vmatprep.subr.bf16.mxu0 %v8427_v21 }
  0x1c   : > { %7547 = vmatpush3.bf16.msra.mxu0 %v8427_v21 }
  0x1e   : > { %7517 = vmatmul.mubr.msk.bf16.gmra.mrb[4].mxu1 %vm504_vm0, %v8413_v8 }
  0x1f   : > { %7520 = vmatprep.mubr.msk.bf16.mxu1 %vm504_vm0, %v8414_v9  ;;  %7481 = vmatmul.mubr.msk.bf16.gmra.mrb[4].mxu0 %vm504_vm0, %v8413_v8 }
  0x20   : > { %7484 = vmatprep.mubr.msk.bf16.mxu0 %vm504_vm0, %v8414_v9 }
  0x26   : > { %7521 = vmatmul.mubr.msk.bf16.gmra.mrb[8].mxu1 %vm504_vm0, %v8415_v10 }
  0x27   : > { %7524 = vmatprep.mubr.msk.bf16.mxu1 %vm504_vm0, %v8416_v11  ;;  %7485 = vmatmul.mubr.msk.bf16.gmra.mrb[8].mxu0 %vm504_vm0, %v8415_v10 }
  0x28   : > { %7488 = vmatprep.mubr.msk.bf16.mxu0 %vm504_vm0, %v8416_v11 }
  0x2e   : > { %7525 = vmatmul.mubr.msk.bf16.gmra.mrb[12].mxu1 %vm504_vm0, %v8417_v12 }
  0x2f   : > { %7528 = vmatprep.mubr.msk.bf16.mxu1 %vm504_vm0, %v8418_v13  ;;  %7489 = vmatmul.mubr.msk.bf16.gmra.mrb[12].mxu0 %vm504_vm0, %v8417_v12 }
  0x30   : > { %7492 = vmatprep.mubr.msk.bf16.mxu0 %vm504_vm0, %v8418_v13 }
  0x36   : > { %7529 = vmatmul.mubr.msk.bf16.gmra.mrb[16].mxu1 %vm504_vm0, %v8419_v14 }
  0x37   : > { %7532 = vmatprep.mubr.msk.bf16.mxu1 %vm504_vm0, %v8420_v15  ;;  %7493 = vmatmul.mubr.msk.bf16.gmra.mrb[16].mxu0 %vm504_vm0, %v8419_v14 }
  0x38   : > { %7496 = vmatprep.mubr.msk.bf16.mxu0 %vm504_vm0, %v8420_v15 }
  0x3e   : > { %7533 = vmatmul.mubr.msk.bf16.gmra.mrb[20].mxu1 %vm504_vm0, %v8421_v16 }
  0x3f   : > { %7536 = vmatprep.mubr.msk.bf16.mxu1 %vm504_vm0, %v8422_v17  ;;  %7497 = vmatmul.mubr.msk.bf16.gmra.mrb[20].mxu0 %vm504_vm0, %v8421_v16 }
  0x40   : > { %7500 = vmatprep.mubr.msk.bf16.mxu0 %vm504_vm0, %v8422_v17 }
  0x46   : > { %7537 = vmatmul.mubr.msk.bf16.gmra.mrb[24].mxu1 %vm504_vm0, %v8423_v18 }
  0x47   : > { %7540 = vmatprep.mubr.msk.bf16.mxu1 %vm504_vm0, %v8424_v19  ;;  %7501 = vmatmul.mubr.msk.bf16.gmra.mrb[24].mxu0 %vm504_vm0, %v8423_v18 }
  0x48   : > { %7504 = vmatprep.mubr.msk.bf16.mxu0 %vm504_vm0, %v8424_v19 }
  0x4e   : > { %7541 = vmatmul.mubr.msk.bf16.gmra.mrb[28].mxu1 %vm504_vm0, %v8425_v20 }
  0x4f   : > { %7505 = vmatmul.mubr.msk.bf16.gmra.mrb[28].mxu0 %vm504_vm0, %v8425_v20 }
  0x50   : > { %7548 = vmatprep.mubr.msk.bf16.mxu0 %vm504_vm0, %v8409_v5 }
  0x57   : > { %7549 = vmatmul.mubr.msk.bf16.vlgmr.msra.gmra.mrb[32].mxu0 %vm504_vm0, %v8411_v6 }
  0x58   : > { %7552 = vmatprep.mubr.msk.bf16.mxu0 %vm504_vm0, %v8412_v7 }
  0x5f   : > { %7553 = vmatmul.mubr.msk.bf16.gmra.mrb[36].mxu0 %vm504_vm0, %v8413_v8 }
  0x60   : > { %7556 = vmatprep.mubr.msk.bf16.mxu0 %vm504_vm0, %v8414_v9 }
  0x67   : > { %7557 = vmatmul.mubr.msk.bf16.gmra.mrb[40].mxu0 %vm504_vm0, %v8415_v10 }
  0x68   : > { %7560 = vmatprep.mubr.msk.bf16.mxu0 %vm504_vm0, %v8416_v11 }
  0x6f   : > { %7561 = vmatmul.mubr.msk.bf16.gmra.mrb[44].mxu0 %vm504_vm0, %v8417_v12 }
  0x70   : > { %7564 = vmatprep.mubr.msk.bf16.mxu0 %vm504_vm0, %v8418_v13 }
  0x77   : > { %7565 = vmatmul.mubr.msk.bf16.gmra.mrb[48].mxu0 %vm504_vm0, %v8419_v14 }
  0x78   : > { %7568 = vmatprep.mubr.msk.bf16.mxu0 %vm504_vm0, %v8420_v15 }
  0x7f   : > { %7569 = vmatmul.mubr.msk.bf16.gmra.mrb[52].mxu0 %vm504_vm0, %v8421_v16 }
  0x80   : > { %7572 = vmatprep.mubr.msk.bf16.mxu0 %vm504_vm0, %v8422_v17 }
  0x87   : > { %7573 = vmatmul.mubr.msk.bf16.gmra.mrb[56].mxu0 %vm504_vm0, %v8423_v18 }
  0x88   : > { %7576 = vmatprep.mubr.msk.bf16.mxu0 %vm504_vm0, %v8424_v19 }
  0x8f   : > { %7577 = vmatmul.mubr.msk.bf16.gmra.mrb[60].mxu0 %vm504_vm0, %v8425_v20 }
  0xe9   : > { %v7514_v23 = vpop.f32.mrb[0].mxu1 }
  0xea   : > { %v771_v25 = vpop.f32.mrb[1].mxu1  ;;  %v7478_v26 = vpop.f32.mrb[0].mxu0  ;;  %v780_v30 = vadd.f32 %v7514_v23, %v9112_v24 }
  0xeb   : > { %v7515_v27 = vpop.f32.mrb[2].mxu1  ;;  %v596_v28 = vadd.f32 %v7478_v26, %v9107_v22  ;;  %v587_v29 = vpop.f32.mrb[1].mxu0  ;;  %v772_v35 = vadd.f32 %v9112_v24, %v771_v25 }
  0xec   : > { %v783_v31 = vadd.f32 %v7515_v27, %v9112_v24  ;;  %v774_v32 = vpop.f32.mrb[3].mxu1  ;;  %v588_v33 = vadd.f32 %v9107_v22, %v587_v29  ;;  %v7479_v34 = vpop.f32.mrb[2].mxu0 }
  0xed   : > { %v775_v36 = vadd.f32 %v9112_v24, %v774_v32  ;;  %v599_v37 = vadd.f32 %v7479_v34, %v9107_v22  ;;  %v590_v38 = vpop.f32.mrb[3].mxu0 }
  0xee   : > { %v9121_v39 = vpack.c.bf16 %v783_v31, %v780_v30  ;;  %v591_v40 = vadd.f32 %v9107_v22, %v590_v38 }
  0xef   : > { %v9124_v41 = vpack.c.bf16 %v775_v36, %v772_v35  ;;  %v9126_v42 = vpack.c.bf16 %v599_v37, %v596_v28 }
  0xf0   : > { %12319 = vst [vmem:[#allocation2_spill] sm:$0xff] %v9121_v39  ;;  %2216 = vrot.lane.b32.xlu1 %v9121_v39, %s8948_s18  ;;  %v9130_v43 = vpack.c.bf16 %v591_v40, %v588_v33  ;;  %v1155_v2 = vsel %vm1138_vm1, %v9121_v39, 0 }
  0xf1   : > { %12320 = vst [vmem:[#allocation3_spill] sm:$0xff] %v9124_v41  ;;  %12321 = vst [vmem:[#allocation4_spill] sm:$0xff] %v9126_v42  ;;  %v7518_v44 = vpop.f32.mrb[4].mxu1  ;;  %2214 = vrot.lane.b32.xlu0 %v9124_v41, %s8948_s18  ;;  %8326 = vmatprep.subr.msk.bf16.mxu1 %vm1138_vm1, %v9124_v41  ;;  %v1152_v45 = vsel %vm1138_vm1, %v9124_v41, 0 }
  0xf2   : > { %12322 = vst [vmem:[#allocation5_spill] sm:$0xff] %v9130_v43  ;;  %v796_v46 = vadd.f32 %v7518_v44, %v9112_v24  ;;  %v787_v47 = vpop.f32.mrb[5].mxu1  ;;  %7581 = vmatpush3.bf16.xpose.msra.mxu1 %v1152_v45  ;;  %v7482_v48 = vpop.f32.mrb[4].mxu0  ;;  %7588 = vmatprep.mubr.msk.bf16.mxu1 %vm1138_vm1, %v9130_v43 }
  0xf3   : > { %v788_v49 = vadd.f32 %v9112_v24, %v787_v47  ;;  %v7519_v50 = vpop.f32.mrb[6].mxu1  ;;  %8327 = vmatprep.subr.msk.bf16.mxu1 %vm1138_vm1, %v9121_v39  ;;  %v612_v51 = vadd.f32 %v7482_v48, %v9107_v22  ;;  %v603_v52 = vpop.f32.mrb[5].mxu0 }
  0xf4   : > { %v799_v53 = vadd.f32 %v7519_v50, %v9112_v24  ;;  %v790_v54 = vpop.f32.mrb[7].mxu1  ;;  %2204 = vrot.lane.b32.xlu1 %v9126_v42, %s8948_s18  ;;  %v604_v55 = vadd.f32 %v9107_v22, %v603_v52  ;;  %v7483_v56 = vpop.f32.mrb[6].mxu0 }
  0xf5   : > { %v791_v57 = vadd.f32 %v9112_v24, %v790_v54  ;;  %2202 = vrot.lane.b32.xlu0 %v9130_v43, %s8948_s18  ;;  %v615_v58 = vadd.f32 %v7483_v56, %v9107_v22  ;;  %v606_v59 = vpop.f32.mrb[7].mxu0 }
  0xf6   : > { %v9153_v60 = vpack.c.bf16 %v799_v53, %v796_v46  ;;  %v607_v61 = vadd.f32 %v9107_v22, %v606_v59 }
  0xf7   : > { %v9156_v62 = vpack.c.bf16 %v791_v57, %v788_v49  ;;  %v9158_v63 = vpack.c.bf16 %v615_v58, %v612_v51 }
  0xf8   : > { %12323 = vst [vmem:[#allocation6_spill] sm:$0xff] %v9153_v60  ;;  %2220 = vrot.lane.b32.xlu1 %v9153_v60, %s8948_s18  ;;  %v9162_v0 = vpack.c.bf16 %v607_v61, %v604_v55  ;;  %v1161_v50 = vsel %vm1138_vm1, %v9153_v60, 0 }
  0xf9   : > { %12324 = vst [vmem:[#allocation7_spill] sm:$0xff] %v9156_v62  ;;  %12325 = vst [vmem:[#allocation8_spill] sm:$0xff] %v9158_v63  ;;  %v7522_v1 = vpop.f32.mrb[8].mxu1  ;;  %2218 = vrot.lane.b32.xlu0 %v9156_v62, %s8948_s18  ;;  %v1158_v25 = vsel %vm1138_vm1, %v9156_v62, 0 }
  0xfa   : > { %12326 = vst [vmem:[#allocation9_spill] sm:$0xff] %v9162_v0  ;;  %v812_v3 = vadd.f32 %v7522_v1, %v9112_v24  ;;  %v803_v4 = vpop.f32.mrb[9].mxu1  ;;  %7583 = vmatpush3.bf16.xpose.msra.mxu1 %v1155_v2  ;;  %v7486_v5 = vpop.f32.mrb[8].mxu0 }
  0xfb   : > { %v804_v6 = vadd.f32 %v9112_v24, %v803_v4  ;;  %v7523_v7 = vpop.f32.mrb[10].mxu1  ;;  %8328 = vmatprep.subr.msk.bf16.mxu1 %vm1138_vm1, %v9156_v62  ;;  %v628_v8 = vadd.f32 %v7486_v5, %v9107_v22  ;;  %v619_v9 = vpop.f32.mrb[9].mxu0 }
  0xfc   : > { %v815_v10 = vadd.f32 %v7523_v7, %v9112_v24  ;;  %v806_v11 = vpop.f32.mrb[11].mxu1  ;;  %v620_v12 = vadd.f32 %v9107_v22, %v619_v9  ;;  %v7487_v13 = vpop.f32.mrb[10].mxu0 }
  0xfd   : > { %v807_v14 = vadd.f32 %v9112_v24, %v806_v11  ;;  %v631_v15 = vadd.f32 %v7487_v13, %v9107_v22  ;;  %v622_v16 = vpop.f32.mrb[11].mxu0 }
  0xfe   : > { %v9177_v17 = vpack.c.bf16 %v815_v10, %v812_v3  ;;  %v623_v18 = vadd.f32 %v9107_v22, %v622_v16 }
  0xff   : > { %v9180_v19 = vpack.c.bf16 %v807_v14, %v804_v6  ;;  %v9182_v20 = vpack.c.bf16 %v631_v15, %v628_v8 }
 0x100   : > { %12327 = vst [vmem:[#allocation10_spill] sm:$0xff] %v9177_v17  ;;  %2329 = vrot.lane.b32.xlu1 %v9177_v17, %s8948_s18  ;;  %v9186_v21 = vpack.c.bf16 %v623_v18, %v620_v12 }
 0x101   : > { %12328 = vst [vmem:[#allocation11_spill] sm:$0xff] %v9180_v19  ;;  %12329 = vst [vmem:[#allocation12_spill] sm:$0xff] %v9182_v20  ;;  %v7526_v23 = vpop.f32.mrb[12].mxu1  ;;  %v1241_v12 = vsel %vm1138_vm1, %v9180_v19, 0 }
 0x102   : > { %12330 = vst [vmem:[#allocation13_spill] sm:$0xff] %v9186_v21  ;;  %v828_v26 = vadd.f32 %v7526_v23, %v9112_v24  ;;  %v819_v27 = vpop.f32.mrb[13].mxu1  ;;  %7585 = vmatpush3.bf16.xpose.msra.mxu1 %v1158_v25  ;;  %v7490_v28 = vpop.f32.mrb[12].mxu0 }
 0x103   : > { %v820_v29 = vadd.f32 %v9112_v24, %v819_v27  ;;  %v7527_v30 = vpop.f32.mrb[14].mxu1  ;;  %8329 = vmatprep.subr.msk.bf16.mxu1 %vm1138_vm1, %v9153_v60  ;;  %v644_v31 = vadd.f32 %v7490_v28, %v9107_v22  ;;  %v635_v32 = vpop.f32.mrb[13].mxu0 }
 0x104   : > { %v831_v33 = vadd.f32 %v7527_v30, %v9112_v24  ;;  %v822_v34 = vpop.f32.mrb[15].mxu1  ;;  %2327 = vrot.lane.b32.xlu1 %v9180_v19, %s8948_s18  ;;  %v636_v35 = vadd.f32 %v9107_v22, %v635_v32  ;;  %v7491_v36 = vpop.f32.mrb[14].mxu0 }
 0x105   : > { %v823_v37 = vadd.f32 %v9112_v24, %v822_v34  ;;  %v647_v38 = vadd.f32 %v7491_v36, %v9107_v22  ;;  %v638_v40 = vpop.f32.mrb[15].mxu0 }
 0x106   : > { %v9201_v44 = vpack.c.bf16 %v831_v33, %v828_v26  ;;  %v639_v45 = vadd.f32 %v9107_v22, %v638_v40 }
 0x107   : > { %v9204_v46 = vpack.c.bf16 %v823_v37, %v820_v29  ;;  %v9206_v47 = vpack.c.bf16 %v647_v38, %v644_v31 }
 0x108   : > { %12331 = vst [vmem:[#allocation14_spill] sm:$0xff] %v9201_v44  ;;  %v9208_v48 = vpack.c.bf16 %v639_v45, %v636_v35  ;;  %v1244_v45 = vsel %vm1138_vm1, %v9177_v17, 0 }
 0x109   : > { %12332 = vst [vmem:[#allocation15_spill] sm:$0xff] %v9204_v46  ;;  %12333 = vst [vmem:[#allocation16_spill] sm:$0xff] %v9206_v47  ;;  %v7530_v49 = vpop.f32.mrb[16].mxu1  ;;  %2331 = vrot.lane.b32.xlu1 %v9204_v46, %s8948_s18 }
 0x10a   : > { %12334 = vst [vmem:[#allocation17_spill] sm:$0xff] %v9208_v48  ;;  %v844_v51 = vadd.f32 %v7530_v49, %v9112_v24  ;;  %v835_v52 = vpop.f32.mrb[17].mxu1  ;;  %7587 = vmatpush3.bf16.xpose.msra.mxu1 %v1161_v50  ;;  %v7494_v53 = vpop.f32.mrb[16].mxu0 }
 0x10b   : > { %v836_v54 = vadd.f32 %v9112_v24, %v835_v52  ;;  %v7531_v55 = vpop.f32.mrb[18].mxu1  ;;  %8330 = vmatprep.subr.msk.bf16.mxu1 %vm1138_vm1, %v9180_v19  ;;  %v660_v56 = vadd.f32 %v7494_v53, %v9107_v22  ;;  %v651_v57 = vpop.f32.mrb[17].mxu0 }
 0x10c   : > { %v847_v58 = vadd.f32 %v7531_v55, %v9112_v24  ;;  %v838_v59 = vpop.f32.mrb[19].mxu1  ;;  %v652_v61 = vadd.f32 %v9107_v22, %v651_v57  ;;  %v7495_v1 = vpop.f32.mrb[18].mxu0 }
 0x10d   : > { %v839_v2 = vadd.f32 %v9112_v24, %v838_v59  ;;  %v663_v3 = vadd.f32 %v7495_v1, %v9107_v22  ;;  %v654_v4 = vpop.f32.mrb[19].mxu0 }
 0x10e   : > { %v9223_v5 = vpack.c.bf16 %v847_v58, %v844_v51  ;;  %v655_v6 = vadd.f32 %v9107_v22, %v654_v4 }
 0x10f   : > { %v9226_v7 = vpack.c.bf16 %v839_v2, %v836_v54  ;;  %v9228_v8 = vpack.c.bf16 %v663_v3, %v660_v56 }
 0x110   : > { %12335 = vst [vmem:[#allocation18_spill] sm:$0xff] %v9223_v5  ;;  %v9230_v9 = vpack.c.bf16 %v655_v6, %v652_v61  ;;  %v1333_v38 = vsel %vm1138_vm1, %v9223_v5, 0 }
 0x111   : > { %12336 = vst [vmem:[#allocation19_spill] sm:$0xff] %v9226_v7  ;;  %12337 = vst [vmem:[#allocation20_spill] sm:$0xff] %v9228_v8  ;;  %8334 = vmatprep.subr.msk.bf16.mxu0 %vm1138_vm1, %v9226_v7  ;;  %2440 = vrot.lane.b32.xlu0 %v9226_v7, %s8948_s18  ;;  %v1330_v10 = vsel %vm1138_vm1, %v9226_v7, 0  ;;  %v7534_v11 = vpop.f32.mrb[20].mxu1  ;;  %v9506_v7 = vld [vmem:[%s12193_s9 + $0x28] sm:$0xff] }
 0x112   : > { %12338 = vst [vmem:[#allocation21_spill] sm:$0xff] %v9230_v9  ;;  %7589 = vmatmul.mubr.msk.bf16.vlgmr.msra.gmra.mrb[32].mxu1 %vm1138_vm1, %v9126_v42  ;;  %7613 = vmatpush3.bf16.xpose.msra.mxu0 %v1330_v10  ;;  %v860_v13 = vadd.f32 %v7534_v11, %v9112_v24  ;;  %v851_v14 = vpop.f32.mrb[21].mxu1  ;;  %v7498_v15 = vpop.f32.mrb[20].mxu0 }
 0x113   : > { %7597 = vmatpush3.bf16.xpose.msra.mxu1 %v1241_v12  ;;  %8335 = vmatprep.subr.msk.bf16.mxu0 %vm1138_vm1, %v9223_v5  ;;  %v852_v16 = vadd.f32 %v9112_v24, %v851_v14  ;;  %v7535_v18 = vpop.f32.mrb[22].mxu1  ;;  %v676_v23 = vadd.f32 %v7498_v15, %v9107_v22  ;;  %v667_v25 = vpop.f32.mrb[21].mxu0  ;;  %v1247_v14 = vsel %vm1138_vm1, %v9204_v46, 0 }
 0x114   : > { %8331 = vmatprep.subr.msk.bf16.mxu1 %vm1138_vm1, %v9177_v17  ;;  %7592 = vmatprep.mubr.msk.bf16.mxu1 %vm1138_vm1, %v9162_v0  ;;  %v863_v26 = vadd.f32 %v7535_v18, %v9112_v24  ;;  %v854_v27 = vpop.f32.mrb[23].mxu1  ;;  %v668_v28 = vadd.f32 %v9107_v22, %v667_v25  ;;  %v7499_v29 = vpop.f32.mrb[22].mxu0 }
 0x115   : > { %v855_v30 = vadd.f32 %v9112_v24, %v854_v27  ;;  %7620 = vmatprep.mubr.msk.bf16.mxu0 %vm1138_vm1, %v9230_v9  ;;  %v679_v31 = vadd.f32 %v7499_v29, %v9107_v22  ;;  %v670_v32 = vpop.f32.mrb[23].mxu0 }
 0x116   : > { %v9257_v33 = vpack.c.bf16 %v863_v26, %v860_v13  ;;  %v671_v34 = vadd.f32 %v9107_v22, %v670_v32 }
 0x117   : > { %v9260_v35 = vpack.c.bf16 %v855_v30, %v852_v16  ;;  %v9262_v36 = vpack.c.bf16 %v679_v31, %v676_v23 }
 0x118   : > { %12339 = vst [vmem:[#allocation22_spill] sm:$0xff] %v9257_v33  ;;  %v9264_v37 = vpack.c.bf16 %v671_v34, %v668_v28 }
 0x119   : > { %12340 = vst [vmem:[#allocation23_spill] sm:$0xff] %v9260_v35  ;;  %12341 = vst [vmem:[#allocation24_spill] sm:$0xff] %v9262_v36  ;;  %v7538_v40 = vpop.f32.mrb[24].mxu1  ;;  %v1336_v6 = vsel %vm1138_vm1, %v9260_v35, 0 }
 0x11a   : > { %12342 = vst [vmem:[#allocation25_spill] sm:$0xff] %v9264_v37  ;;  %7593 = vmatmul.mubr.msk.bf16.gmra.mrb[36].mxu1 %vm1138_vm1, %v9158_v63  ;;  %7615 = vmatpush3.bf16.xpose.msra.mxu0 %v1333_v38  ;;  %v876_v49 = vadd.f32 %v7538_v40, %v9112_v24  ;;  %v867_v50 = vpop.f32.mrb[25].mxu1  ;;  %v7502_v51 = vpop.f32.mrb[24].mxu0 }
 0x11b   : > { %7599 = vmatpush3.bf16.xpose.msra.mxu1 %v1244_v45  ;;  %8336 = vmatprep.subr.msk.bf16.mxu0 %vm1138_vm1, %v9260_v35  ;;  %v868_v52 = vadd.f32 %v9112_v24, %v867_v50  ;;  %v7539_v53 = vpop.f32.mrb[26].mxu1  ;;  %v692_v54 = vadd.f32 %v7502_v51, %v9107_v22  ;;  %v683_v55 = vpop.f32.mrb[25].mxu0 }
 0x11c   : > { %8332 = vmatprep.subr.msk.bf16.mxu1 %vm1138_vm1, %v9204_v46  ;;  %v879_v56 = vadd.f32 %v7539_v53, %v9112_v24  ;;  %v870_v57 = vpop.f32.mrb[27].mxu1  ;;  %7604 = vmatprep.mubr.msk.bf16.mxu1 %vm1138_vm1, %v9186_v21  ;;  %v684_v58 = vadd.f32 %v9107_v22, %v683_v55  ;;  %v7503_v59 = vpop.f32.mrb[26].mxu0  ;;  %v1250_v53 = vsel %vm1138_vm1, %v9201_v44, 0 }
 0x11d   : > { %v871_v61 = vadd.f32 %v9112_v24, %v870_v57  ;;  %v695_v1 = vadd.f32 %v7503_v59, %v9107_v22  ;;  %v686_v2 = vpop.f32.mrb[27].mxu0 }
 0x11e   : > { %v9285_v3 = vpack.c.bf16 %v879_v56, %v876_v49  ;;  %v687_v4 = vadd.f32 %v9107_v22, %v686_v2 }
 0x11f   : > { %v9290_v10 = vpack.c.bf16 %v871_v61, %v868_v52  ;;  %v9292_v11 = vpack.c.bf16 %v695_v1, %v692_v54  ;;  %v1339_v52 = vsel %vm1138_vm1, %v9257_v33, 0  ;;  %v9349_v54 = vld [vmem:[%s12190_s6] ss:$0 sm:$0xff] }
 0x120   : > { %12343 = vst [vmem:[#allocation26_spill] sm:$0xff] %v9285_v3  ;;  %v9294_v12 = vpack.c.bf16 %v687_v4, %v684_v58 }
 0x121   : > { %12344 = vst [vmem:[#allocation27_spill] sm:$0xff] %v9290_v10  ;;  %12345 = vst [vmem:[#allocation28_spill] sm:$0xff] %v9292_v11  ;;  %v7542_v13 = vpop.f32.mrb[28].mxu1 }
 0x122   : > { %12346 = vst [vmem:[#allocation29_spill] sm:$0xff] %v9294_v12  ;;  %7617 = vmatpush3.bf16.xpose.msra.mxu0 %v1336_v6  ;;  %v892_v15 = vadd.f32 %v7542_v13, %v9112_v24  ;;  %v883_v16 = vpop.f32.mrb[29].mxu1  ;;  %v7506_v18 = vpop.f32.mrb[28].mxu0 }
 0x123   : > { %7601 = vmatpush3.bf16.xpose.msra.mxu1 %v1247_v14  ;;  %8337 = vmatprep.subr.msk.bf16.mxu0 %vm1138_vm1, %v9257_v33  ;;  %v884_v23 = vadd.f32 %v9112_v24, %v883_v16  ;;  %v7543_v25 = vpop.f32.mrb[30].mxu1  ;;  %v708_v26 = vadd.f32 %v7506_v18, %v9107_v22  ;;  %v699_v27 = vpop.f32.mrb[29].mxu0 }
 0x124   : > { %8333 = vmatprep.subr.msk.bf16.mxu1 %vm1138_vm1, %v9201_v44  ;;  %v895_v28 = vadd.f32 %v7543_v25, %v9112_v24  ;;  %v886_v29 = vpop.f32.mrb[31].mxu1  ;;  %v700_v30 = vadd.f32 %v9107_v22, %v699_v27  ;;  %v7507_v31 = vpop.f32.mrb[30].mxu0 }
 0x125   : > { %v887_v32 = vadd.f32 %v9112_v24, %v886_v29  ;;  %v711_v34 = vadd.f32 %v7507_v31, %v9107_v22  ;;  %v702_v38 = vpop.f32.mrb[31].mxu0  ;;  %v1422_v24 = vsel %vm1138_vm1, %v9285_v3, 0 }
 0x126   : > { %v9309_v40 = vpack.c.bf16 %v895_v28, %v892_v15  ;;  %v703_v45 = vadd.f32 %v9107_v22, %v702_v38  ;;  %v1419_v22 = vsel %vm1138_vm1, %v9290_v10, 0 }
 0x127   : > { %v9312_v49 = vpack.c.bf16 %v887_v32, %v884_v23  ;;  %v9314_v50 = vpack.c.bf16 %v711_v34, %v708_v26 }
 0x128   : > { %12347 = vst [vmem:[#allocation30_spill] sm:$0xff] %v9309_v40  ;;  %v9316_v51 = vpack.c.bf16 %v703_v45, %v700_v30  ;;  %v1428_v15 = vsel %vm1138_vm1, %v9309_v40, 0 }
 0x129   : > { %12348 = vst [vmem:[#allocation31_spill] sm:$0xff] %v9312_v49  ;;  %12349 = vst [vmem:[#allocation32_spill] sm:$0xff] %v9314_v50  ;;  %v1425_v58 = vsel %vm1138_vm1, %v9312_v49, 0 }
 0x12a   : > { %12350 = vst [vmem:[#allocation33_spill] sm:$0xff] %v9316_v51  ;;  %7619 = vmatpush3.bf16.xpose.msra.mxu0 %v1339_v52  ;;  %v7550_v55 = vpop.f32.mrb[32].mxu0 }
 0x12b   : > { %7603 = vmatpush3.bf16.xpose.msra.mxu1 %v1250_v53  ;;  %v964_v56 = vadd.f32 %v7550_v55, %v9349_v54  ;;  %v955_v57 = vpop.f32.mrb[33].mxu0 }
 0x12c   : > { %8338 = vmatprep.subr.msk.bf16.mxu1 %vm1138_vm1, %v9290_v10  ;;  %v956_v59 = vadd.f32 %v9349_v54, %v955_v57  ;;  %v7551_v61 = vpop.f32.mrb[34].mxu0 }
 0x12d   : > { %v967_v1 = vadd.f32 %v7551_v61, %v9349_v54  ;;  %v958_v2 = vpop.f32.mrb[35].mxu0 }
 0x12e   : > { %v959_v4 = vadd.f32 %v9349_v54, %v958_v2 }
 0x12f   : > { %v9359_v6 = vpack.c.bf16 %v967_v1, %v964_v56 }
 0x130   : > { %v9361_v13 = vpack.c.bf16 %v959_v4, %v956_v59 }
 0x131   : > { %7621 = vmatmul.mubr.msk.bf16.vlgmr.msra.gmra.mrb[64].mxu0 %vm1138_vm1, %v9228_v8  ;;  %12351 = vst [vmem:[#allocation34_spill] sm:$0xff] %v9359_v6 }
 0x132   : > { %7605 = vmatmul.mubr.msk.bf16.vlgmr.msra.gmra.mrb[40].mxu1 %vm1138_vm1, %v9182_v20  ;;  %7624 = vmatprep.mubr.msk.bf16.mxu0 %vm1138_vm1, %v9264_v37  ;;  %12352 = vst [vmem:[#allocation35_spill] sm:$0xff] %v9361_v13  ;;  %v7554_v14 = vpop.f32.mrb[36].mxu0 }
 0x133   : > { %7629 = vmatpush3.bf16.xpose.msra.mxu1 %v1419_v22  ;;  %7608 = vmatprep.mubr.msk.bf16.mxu1 %vm1138_vm1, %v9208_v48  ;;  %v971_v16 = vpop.f32.mrb[37].mxu0  ;;  %v980_v28 = vadd.f32 %v7554_v14, %v9349_v54 }
 0x134   : > { %8339 = vmatprep.subr.msk.bf16.mxu1 %vm1138_vm1, %v9285_v3  ;;  %7644 = vmatprep.subr.bf16.mxu0 %v9361_v13  ;;  %v7555_v18 = vpop.f32.mrb[38].mxu0  ;;  %v972_v25 = vadd.f32 %v9349_v54, %v971_v16 }
 0x135   : > { %7645 = vmatpush3.bf16.msra.mxu0 %v9361_v13  ;;  %v974_v23 = vpop.f32.mrb[39].mxu0  ;;  %v983_v29 = vadd.f32 %v7555_v18, %v9349_v54 }
 0x136   : > { %7646 = vmatprep.subr.bf16.mxu0 %v9359_v6  ;;  %v975_v26 = vadd.f32 %v9349_v54, %v974_v23 }
 0x137   : > { %v9381_v32 = vpack.c.bf16 %v983_v29, %v980_v28 }
 0x138   : > { %v9371_v27 = vpack.c.bf16 %v975_v26, %v972_v25 }
 0x139   : > { %7625 = vmatmul.mubr.msk.bf16.gmra.mrb[68].mxu0 %vm1138_vm1, %v9262_v36  ;;  %12354 = vst [vmem:[#allocation37_spill] sm:$0xff] %v9381_v32 }
 0x13a   : > { %7609 = vmatmul.mubr.msk.bf16.gmra.mrb[44].mxu1 %vm1138_vm1, %v9206_v47  ;;  %7647 = vmatpush3.bf16.msra.mxu0 %v9359_v6  ;;  %12353 = vst [vmem:[#allocation36_spill] sm:$0xff] %v9371_v27  ;;  %v7558_v30 = vpop.f32.mrb[40].mxu0 }
 0x13b   : > { %7631 = vmatpush3.bf16.xpose.msra.mxu1 %v1422_v24  ;;  %7636 = vmatprep.mubr.msk.bf16.mxu1 %vm1138_vm1, %v9294_v12  ;;  %v987_v31 = vpop.f32.mrb[41].mxu0  ;;  %v996_v22 = vadd.f32 %v7558_v30, %v9349_v54 }
 0x13c   : > { %8340 = vmatprep.subr.msk.bf16.mxu1 %vm1138_vm1, %v9312_v49  ;;  %7648 = vmatprep.subr.bf16.mxu0 %v9371_v27  ;;  %v7559_v34 = vpop.f32.mrb[42].mxu0  ;;  %v988_v45 = vadd.f32 %v9349_v54, %v987_v31 }
 0x13d   : > { %v990_v38 = vpop.f32.mrb[43].mxu0  ;;  %v999_v24 = vadd.f32 %v7559_v34, %v9349_v54 }
 0x13e   : > { %7649 = vmatpush3.bf16.msra.mxu0 %v9371_v27  ;;  %v991_v52 = vadd.f32 %v9349_v54, %v990_v38 }
 0x13f   : > { %7650 = vmatprep.subr.bf16.mxu0 %v9381_v32  ;;  %v9394_v57 = vpack.c.bf16 %v999_v24, %v996_v22 }
 0x140   : > { %v9387_v53 = vpack.c.bf16 %v991_v52, %v988_v45 }
 0x141   : > { %12356 = vst [vmem:[#allocation39_spill] sm:$0xff] %v9394_v57 }
 0x142   : > { %7651 = vmatpush3.bf16.msra.mxu0 %v9381_v32  ;;  %12355 = vst [vmem:[#allocation38_spill] sm:$0xff] %v9387_v53  ;;  %v7562_v55 = vpop.f32.mrb[44].mxu0 }
 0x143   : > { %7633 = vmatpush3.bf16.xpose.msra.mxu1 %v1425_v58  ;;  %v1003_v56 = vpop.f32.mrb[45].mxu0  ;;  %v1012_v4 = vadd.f32 %v7562_v55, %v9349_v54 }
 0x144   : > { %8341 = vmatprep.subr.msk.bf16.mxu1 %vm1138_vm1, %v9309_v40  ;;  %v7563_v58 = vpop.f32.mrb[46].mxu0  ;;  %v1004_v61 = vadd.f32 %v9349_v54, %v1003_v56 }
 0x145   : > { %v1006_v59 = vpop.f32.mrb[47].mxu0  ;;  %v1015_v14 = vadd.f32 %v7563_v58, %v9349_v54 }
 0x146   : > { %v1007_v1 = vadd.f32 %v9349_v54, %v1006_v59 }
 0x148   : > { %v9400_v2 = vpack.c.bf16 %v1007_v1, %v1004_v61 }
 0x14a   : > { %12357 = vst [vmem:[#allocation40_spill] sm:$0xff] %v9400_v2  ;;  %v7566_v16 = vpop.f32.mrb[48].mxu0 }
 0x14b   : > { %7635 = vmatpush3.bf16.xpose.msra.mxu1 %v1428_v15  ;;  %v9406_v15 = vpack.c.bf16 %v1015_v14, %v1012_v4  ;;  %v1019_v18 = vpop.f32.mrb[49].mxu0  ;;  %v1028_v26 = vadd.f32 %v7566_v16, %v9349_v54 }
 0x14c   : > { %7660 = vmatprep.subr.bf16.mxu1 %v9387_v53  ;;  %v7567_v23 = vpop.f32.mrb[50].mxu0  ;;  %v1020_v28 = vadd.f32 %v9349_v54, %v1019_v18 }
 0x14d   : > { %12358 = vst [vmem:[#allocation41_spill] sm:$0xff] %v9406_v15  ;;  %v1022_v25 = vpop.f32.mrb[51].mxu0  ;;  %v1031_v29 = vadd.f32 %v7567_v23, %v9349_v54 }
 0x14e   : > { %v1023_v30 = vadd.f32 %v9349_v54, %v1022_v25 }
 0x14f   : > { %v9415_v31 = vpack.c.bf16 %v1031_v29, %v1028_v26 }
 0x150   : > { %v9417_v34 = vpack.c.bf16 %v1023_v30, %v1020_v28 }
 0x151   : > { %12359 = vst [vmem:[#allocation42_spill] sm:$0xff] %v9415_v31 }
 0x152   : > { %7637 = vmatmul.mubr.msk.bf16.vlgmr.msra.gmra.mrb[48].mxu1 %vm1138_vm1, %v9292_v11  ;;  %12360 = vst [vmem:[#allocation43_spill] sm:$0xff] %v9417_v34  ;;  %v7570_v38 = vpop.f32.mrb[52].mxu0  ;;  %7676 = vmatprep.subr.bf16.mxu0 %v9417_v34 }
 0x153   : > { %7640 = vmatprep.mubr.msk.bf16.mxu1 %vm1138_vm1, %v9316_v51  ;;  %7661 = vmatpush3.bf16.msra.mxu1 %v9387_v53  ;;  %v1035_v45 = vpop.f32.mrb[53].mxu0  ;;  %v1044_v24 = vadd.f32 %v7570_v38, %v9349_v54 }
 0x154   : > { %7662 = vmatprep.subr.bf16.mxu1 %v9394_v57  ;;  %v7571_v52 = vpop.f32.mrb[54].mxu0  ;;  %v1036_v55 = vadd.f32 %v9349_v54, %v1035_v45 }
 0x155   : > { %v1038_v22 = vpop.f32.mrb[55].mxu0  ;;  %v1047_v56 = vadd.f32 %v7571_v52, %v9349_v54 }
 0x156   : > { %v1039_v58 = vadd.f32 %v9349_v54, %v1038_v22 }
 0x157   : > { %7663 = vmatpush3.bf16.msra.mxu1 %v9394_v57  ;;  %v9424_v59 = vpack.c.bf16 %v1047_v56, %v1044_v24 }
 0x158   : > { %7664 = vmatprep.subr.bf16.mxu1 %v9400_v2  ;;  %v9426_v61 = vpack.c.bf16 %v1039_v58, %v1036_v55 }
 0x159   : > { %12361 = vst [vmem:[#allocation44_spill] sm:$0xff] %v9424_v59 }
 0x15a   : > { %7641 = vmatmul.mubr.msk.bf16.gmra.mrb[52].mxu1 %vm1138_vm1, %v9314_v50  ;;  %12362 = vst [vmem:[#allocation45_spill] sm:$0xff] %v9426_v61  ;;  %v7574_v1 = vpop.f32.mrb[56].mxu0 }
 0x15b   : > { %7665 = vmatpush3.bf16.msra.mxu1 %v9400_v2  ;;  %v1060_v4 = vadd.f32 %v7574_v1, %v9349_v54  ;;  %v1051_v14 = vpop.f32.mrb[57].mxu0 }
 0x15c   : > { %7666 = vmatprep.subr.bf16.mxu1 %v9406_v15  ;;  %v1052_v16 = vadd.f32 %v9349_v54, %v1051_v14  ;;  %v7575_v18 = vpop.f32.mrb[58].mxu0  ;;  %v9453_v14 = vld [vmem:[%s12193_s9] sm:$0xff] }
 0x15d   : > { %v1063_v23 = vadd.f32 %v7575_v18, %v9349_v54  ;;  %v1054_v25 = vpop.f32.mrb[59].mxu0 }
 0x15e   : > { %v1055_v26 = vadd.f32 %v9349_v54, %v1054_v25  ;;  %v9466_v25 = vld [vmem:[%s12193_s9 + $0x8] sm:$0xff] }
 0x15f   : > { %7667 = vmatpush3.bf16.msra.mxu1 %v9406_v15  ;;  %v9432_v29 = vpack.c.bf16 %v1063_v23, %v1060_v4  ;;  %v9448_v4 = vld [vmem:[%s12193_s9 + $0x10] sm:$0xff] }
 0x160   : > { %v9434_v30 = vpack.c.bf16 %v1055_v26, %v1052_v16 }
 0x161   : > { %12363 = vst [vmem:[#allocation46_spill] sm:$0xff] %v9432_v29 }
 0x162   : > { %v7578_v28 = vpop.f32.mrb[60].mxu0  ;;  %12364 = vst [vmem:[#allocation47_spill] sm:$0xff] %v9434_v30  ;;  %7692 = vmatprep.subr.bf16.mxu1 %v9434_v30 }
 0x163   : > { %v1067_v38 = vpop.f32.mrb[61].mxu0  ;;  %v1076_v45 = vadd.f32 %v7578_v28, %v9349_v54 }
 0x164   : > { %v7579_v52 = vpop.f32.mrb[62].mxu0  ;;  %v1068_v24 = vadd.f32 %v9349_v54, %v1067_v38 }
 0x165   : > { %v1070_v22 = vpop.f32.mrb[63].mxu0  ;;  %v1079_v55 = vadd.f32 %v7579_v52, %v9349_v54 }
 0x166   : > { %v1071_v56 = vadd.f32 %v9349_v54, %v1070_v22  ;;  %v9458_v54 = vld [vmem:[%s12193_s9 + $0x18] sm:$0xff] }
 0x167   : > { %v9441_v58 = vpack.c.bf16 %v1079_v55, %v1076_v45  ;;  %v9484_v55 = vld [vmem:[%s12193_s9 + $0x30] sm:$0xff] }
 0x168   : > { %v9443_v1 = vpack.c.bf16 %v1071_v56, %v1068_v24 }
 0x169   : > { %12365 = vst [vmem:[#allocation48_spill] sm:$0xff] %v9441_v58 }
 0x16a   : > { %12366 = vst [vmem:[#allocation49_spill] sm:$0xff] %v9443_v1 }
 0x1e5   : > { %v7590_v16 = vpop.f32.mrb[32].mxu1 }
 0x1e6   : > { %v9461_v18 = vadd.f32 %v7590_v16, %v9448_v4  ;;  %v1197_v23 = vpop.f32.mrb[33].mxu1 }
 0x1e7   : > { %v9469_v26 = vadd.f32 %v1197_v23, %v9453_v14  ;;  %v7591_v28 = vpop.f32.mrb[34].mxu1 }
 0x1e8   : > { %v1502_v38 = vsel %vm1495_vm2, %v9461_v18, -inf  ;;  %v9474_v45 = vadd.f32 %v7591_v28, %v9458_v54  ;;  %v1200_v52 = vpop.f32.mrb[35].mxu1  ;;  %v9493_v28 = vld [vmem:[%s12193_s9 + $0x38] sm:$0xff] }
 0x1e9   : > { %1503 = vmax.xlane.f32.xlu1 %v1502_v38  ;;  %v9477_v22 = vadd.f32 %v1200_v52, %v9466_v25  ;;  %v1496_v24 = vsel %vm1495_vm2, %v9469_v26, -inf }
 0x1ea   : > { %1497 = vmax.xlane.f32.xlu0 %v1496_v24  ;;  %v1505_v56 = vsel %vm1495_vm2, %v9474_v45, -inf  ;;  %v9501_v24 = vld [vmem:[%s12193_s9 + $0x20] sm:$0xff] }
 0x1eb   : > { %v1499_v23 = vsel %vm1495_vm2, %v9477_v22, -inf }
 0x1ed   : > { %1506 = vmax.xlane.f32.xlu1 %v1505_v56  ;;  %v7594_v16 = vpop.f32.mrb[36].mxu1 }
 0x1ee   : > { %v9496_v38 = vadd.f32 %v7594_v16, %v9484_v55  ;;  %v1213_v52 = vpop.f32.mrb[37].mxu1  ;;  %1500 = vmax.xlane.f32.xlu0 %v1499_v23 }
 0x1ef   : > { %v7595_v56 = vpop.f32.mrb[38].mxu1  ;;  %v9514_v43 = vadd.f32 %v1213_v52, %v9501_v24 }
 0x1f0   : > { %v9509_v46 = vadd.f32 %v7595_v56, %v9493_v28  ;;  %v1514_v16 = vsel %vm1495_vm2, %v9496_v38, -inf  ;;  %v1216_v42 = vpop.f32.mrb[39].mxu1 }
 0x1f1   : > { %v9519_v17 = vadd.f32 %v1216_v42, %v9506_v7  ;;  %v1508_v62 = vsel %vm1495_vm2, %v9514_v43, -inf }
 0x1f2   : > { %1515 = vmax.xlane.f32.xlu0 %v1514_v16  ;;  %v1517_v23 = vsel %vm1495_vm2, %v9509_v46, -inf }
 0x1f3   : > { %1518 = vmax.xlane.f32.xlu1 %v1517_v23  ;;  %v1511_v56 = vsel %vm1495_vm2, %v9519_v17, -inf }
 0x1f6   : > { %1509 = vmax.xlane.f32.xlu0 %v1508_v62 }
 0x1f7   : > { %1512 = vmax.xlane.f32.xlu1 %v1511_v56 }
 0x204   : > { %v7622_v19 = vpop.f32.mrb[64].mxu0 }
 0x205   : > { %v7606_v41 = vpop.f32.mrb[40].mxu1  ;;  %v1375_v52 = vpop.f32.mrb[65].mxu0  ;;  %v9532_v1 = vadd.f32 %v7622_v19, %v9448_v4 }
 0x206   : > { %v9526_v16 = vadd.f32 %v7606_v41, %v9448_v4  ;;  %v1286_v60 = vpop.f32.mrb[41].mxu1  ;;  %v7623_v39 = vpop.f32.mrb[66].mxu0 }
 0x207   : > { %v7607_v58 = vpop.f32.mrb[42].mxu1  ;;  %v1378_v42 = vpop.f32.mrb[67].mxu0  ;;  %v9537_v29 = vadd.f32 %v7623_v39, %v9458_v54  ;;  %v9542_v30 = vadd.f32 %v1286_v60, %v9453_v14  ;;  %v9552_v60 = vadd.f32 %v1375_v52, %v9453_v14 }
 0x208   : > { %v9529_v23 = vadd.f32 %v7607_v58, %v9458_v54  ;;  %v1526_v62 = vsel %vm1495_vm2, %v9526_v16, -inf  ;;  %v1289_v56 = vpop.f32.mrb[43].mxu1  ;;  %v1550_v58 = vsel %vm1495_vm2, %v9532_v1, -inf  ;;  %v9557_v13 = vadd.f32 %v1378_v42, %v9466_v25 }
 0x209   : > { %1527 = vmax.xlane.f32.xlu0 %v1526_v62  ;;  %v9547_v32 = vadd.f32 %v1289_v56, %v9466_v25  ;;  %v1553_v39 = vsel %vm1495_vm2, %v9537_v29, -inf  ;;  %v1520_v57 = vsel %vm1495_vm2, %v9542_v30, -inf }
 0x20a   : > { %v1529_v41 = vsel %vm1495_vm2, %v9529_v23, -inf }
 0x20b   : > { %1530 = vmax.xlane.f32.xlu1 %v1529_v41  ;;  %v1523_v56 = vsel %vm1495_vm2, %v9547_v32, -inf }
 0x20c   : > { %v7626_v19 = vpop.f32.mrb[68].mxu0 }
 0x20d   : > { %1551 = vmax.xlane.f32.xlu0 %v1550_v58  ;;  %v7610_v15 = vpop.f32.mrb[44].mxu1  ;;  %v1391_v2 = vpop.f32.mrb[69].mxu0  ;;  %v9572_v42 = vadd.f32 %v7626_v19, %v9484_v55 }
 0x20e   : > { %v1302_v62 = vpop.f32.mrb[45].mxu1  ;;  %v7627_v27 = vpop.f32.mrb[70].mxu0  ;;  %v9562_v53 = vadd.f32 %v7610_v15, %v9484_v55 }
 0x20f   : > { %1554 = vmax.xlane.f32.xlu1 %v1553_v39  ;;  %v7611_v41 = vpop.f32.mrb[46].mxu1  ;;  %v1394_v6 = vpop.f32.mrb[71].mxu0  ;;  %v1544_v39 = vsel %vm1495_vm2, %v9552_v60, -inf  ;;  %v9577_v15 = vadd.f32 %v7627_v27, %v9493_v28  ;;  %v9592_v27 = vadd.f32 %v1391_v2, %v9501_v24 }
 0x210   : > { %v1305_v58 = vpop.f32.mrb[47].mxu1  ;;  %v9567_v52 = vadd.f32 %v7611_v41, %v9493_v28  ;;  %v9582_v41 = vadd.f32 %v1302_v62, %v9501_v24  ;;  %v9597_v62 = vadd.f32 %v1394_v6, %v9506_v7 }
 0x211   : > { %1521 = vmax.xlane.f32.xlu0 %v1520_v57  ;;  %v1547_v57 = vsel %vm1495_vm2, %v9557_v13, -inf  ;;  %v9587_v19 = vadd.f32 %v1305_v58, %v9506_v7  ;;  %v1556_v58 = vsel %vm1495_vm2, %v9592_v27, -inf }
 0x212   : > { %v1559_v50 = vsel %vm1495_vm2, %v9597_v62, -inf }
 0x213   : > { %1524 = vmax.xlane.f32.xlu1 %v1523_v56  ;;  %v1538_v56 = vsel %vm1495_vm2, %v9562_v53, -inf }
 0x215   : > { %1545 = vmax.xlane.f32.xlu0 %v1544_v39  ;;  %v1541_v39 = vsel %vm1495_vm2, %v9567_v52, -inf }
 0x217   : > { %1548 = vmax.xlane.f32.xlu1 %v1547_v57  ;;  %v1562_v57 = vsel %vm1495_vm2, %v9572_v42, -inf }
 0x219   : > { %1539 = vmax.xlane.f32.xlu0 %v1538_v56  ;;  %v1565_v56 = vsel %vm1495_vm2, %v9577_v15, -inf }
 0x21b   : > { %1542 = vmax.xlane.f32.xlu1 %v1541_v39  ;;  %v1532_v39 = vsel %vm1495_vm2, %v9582_v41, -inf }
 0x21d   : > { %1563 = vmax.xlane.f32.xlu0 %v1562_v57  ;;  %v1535_v57 = vsel %vm1495_vm2, %v9587_v19, -inf }
 0x21f   : > { %1566 = vmax.xlane.f32.xlu1 %v1565_v56 }
 0x221   : > { %1533 = vmax.xlane.f32.xlu0 %v1532_v39 }
 0x223   : > { %1536 = vmax.xlane.f32.xlu1 %v1535_v57 }
 0x225   : > { %v7638_v51 = vpop.f32.mrb[48].mxu1  ;;  %1557 = vmax.xlane.f32.xlu0 %v1556_v58 }
 0x226   : > { %v9604_v56 = vadd.f32 %v7638_v51, %v9448_v4  ;;  %v1464_v2 = vpop.f32.mrb[49].mxu1 }
 0x227   : > { %v9609_v39 = vadd.f32 %v1464_v2, %v9453_v14  ;;  %v7639_v6 = vpop.f32.mrb[50].mxu1  ;;  %1560 = vmax.xlane.f32.xlu1 %v1559_v50 }
 0x228   : > { %v9612_v12 = vadd.f32 %v7639_v6, %v9458_v54  ;;  %v1574_v57 = vsel %vm1495_vm2, %v9604_v56, -inf  ;;  %v1467_v11 = vpop.f32.mrb[51].mxu1 }
 0x229   : > { %1575 = vmax.xlane.f32.xlu0 %v1574_v57  ;;  %v9617_v51 = vadd.f32 %v1467_v11, %v9466_v25  ;;  %v1568_v14 = vsel %vm1495_vm2, %v9609_v39, -inf }
 0x22a   : > { %v1577_v4 = vsel %vm1495_vm2, %v9612_v12, -inf }
 0x22b   : > { %1578 = vmax.xlane.f32.xlu1 %v1577_v4  ;;  %v1571_v2 = vsel %vm1495_vm2, %v9617_v51, -inf }
 0x22d   : > { %v7642_v58 = vpop.f32.mrb[52].mxu1  ;;  %1569 = vmax.xlane.f32.xlu0 %v1568_v14 }
 0x22e   : > { %v9624_v50 = vadd.f32 %v7642_v58, %v9484_v55  ;;  %v1480_v54 = vpop.f32.mrb[53].mxu1 }
 0x22f   : > { %v9629_v6 = vadd.f32 %v1480_v54, %v9501_v24  ;;  %v7643_v11 = vpop.f32.mrb[54].mxu1  ;;  %1572 = vmax.xlane.f32.xlu1 %v1571_v2  ;;  %v9649_v2 = vpop.permute.xlu0 %2214 }
 0x230   : > { %v9632_v25 = vadd.f32 %v7643_v11, %v9493_v28  ;;  %v1586_v57 = vsel %vm1495_vm2, %v9624_v50, -inf  ;;  %v1483_v4 = vpop.f32.mrb[55].mxu1  ;;  %v9645_v28 = vpop.permute.xlu1 %2216  ;;  %12369 = vst [vmem:[#allocation52_spill] sm:$0xff] %v9649_v2 }
 0x231   : > { %1587 = vmax.xlane.f32.xlu0 %v1586_v57  ;;  %v9637_v55 = vadd.f32 %v1483_v4, %v9506_v7  ;;  %v1580_v24 = vsel %vm1495_vm2, %v9629_v6, -inf  ;;  %12367 = vst [vmem:[#allocation50_spill] sm:$0xff] %v9645_v28 }
 0x232   : > { %v1589_v14 = vsel %vm1495_vm2, %v9632_v25, -inf }
 0x233   : > { %1590 = vmax.xlane.f32.xlu1 %v1589_v14  ;;  %v1583_v58 = vsel %vm1495_vm2, %v9637_v55, -inf  ;;  %v9655_v57 = vpop.permute.xlu0 %2202 }
 0x234   : > { %v9647_v54 = vpop.permute.xlu1 %2204  ;;  %12372 = vst [vmem:[#allocation55_spill] sm:$0xff] %v9655_v57 }
 0x235   : > { %1581 = vmax.xlane.f32.xlu0 %v1580_v24  ;;  %12368 = vst [vmem:[#allocation51_spill] sm:$0xff] %v9647_v54 }
 0x237   : > { %1584 = vmax.xlane.f32.xlu1 %v1583_v58  ;;  %v9659_v14 = vpop.permute.xlu0 %2218 }
 0x238   : > { %v9651_v7 = vpop.permute.xlu1 %2220  ;;  %12374 = vst [vmem:[#allocation57_spill] sm:$0xff] %v9659_v14 }
 0x239   : > { %12370 = vst [vmem:[#allocation53_spill] sm:$0xff] %v9651_v7 }
 0x23b   : > { %v9663_v24 = vpop.permute.xlu0 %2440 }
 0x23c   : > { %v9653_v11 = vpop.permute.xlu1 %2329  ;;  %12376 = vst [vmem:[#allocation59_spill] sm:$0xff] %v9663_v24 }
 0x23d   : > { %12371 = vst [vmem:[#allocation54_spill] sm:$0xff] %v9653_v11 }
 0x240   : > { %v9657_v4 = vpop.permute.xlu1 %2327 }
 0x241   : > { %12373 = vst [vmem:[#allocation56_spill] sm:$0xff] %v9657_v4 }
 0x244   : > { %v9661_v59 = vpop.permute.xlu1 %2331 }
 0x245   : > { %12375 = vst [vmem:[#allocation58_spill] sm:$0xff] %v9661_v59 }
 0x276   : > { %v1504_v58 = vpop.xlane.xlu1 %1503 }
 0x277   : > { %v1594_v28 = vsub.f32 %v9461_v18, %v1504_v58  ;;  %v1498_v54 = vpop.xlane.xlu0 %1497 }
 0x278   : > { %v1592_v2 = vsub.f32 %v9469_v26, %v1498_v54 }
 0x279   : > { %v1628_v36 = vmul.f32 1.442695, %v1594_v28 }
 0x27a   : > { %v1624_v7 = vmul.f32 1.442695, %v1592_v2  ;;  %v1507_v40 = vpop.xlane.xlu1 %1506 }
 0x27b   : > { %8428 = vpow2.f32 %v1628_v36  ;;  %v1595_v11 = vsub.f32 %v9474_v45, %v1507_v40  ;;  %v1501_v57 = vpop.xlane.xlu0 %1500 }
 0x27c   : > { %v1593_v4 = vsub.f32 %v9477_v22, %v1501_v57  ;;  %8430 = vpow2.f32 %v1624_v7 }
 0x27d   : > { %v1630_v14 = vmul.f32 1.442695, %v1595_v11 }
 0x27e   : > { %v1626_v59 = vmul.f32 1.442695, %v1593_v4 }
 0x27f   : > { %8432 = vpow2.f32 %v1630_v14  ;;  %v1516_v24 = vpop.xlane.xlu0 %1515 }
 0x280   : > { %v1598_v61 = vsub.f32 %v9496_v38, %v1516_v24  ;;  %v1519_v18 = vpop.xlane.xlu1 %1518  ;;  %8434 = vpow2.f32 %v1626_v59 }
 0x281   : > { %v1599_v26 = vsub.f32 %v9509_v46, %v1519_v18 }
 0x282   : > { %v1636_v28 = vmul.f32 1.442695, %v1598_v61 }
 0x283   : > { %v1638_v54 = vmul.f32 1.442695, %v1599_v26  ;;  %v1510_v2 = vpop.xlane.xlu0 %1509 }
 0x284   : > { %8436 = vpow2.f32 %v1636_v28  ;;  %v1596_v36 = vsub.f32 %v9514_v43, %v1510_v2  ;;  %v1513_v40 = vpop.xlane.xlu1 %1512 }
 0x285   : > { %v9672_v45 = vpop.eup %8428  ;;  %8438 = vpow2.f32 %v1638_v54  ;;  %v1597_v22 = vsub.f32 %v9519_v17, %v1513_v40 }
 0x286   : > { %v1632_v7 = vmul.f32 1.442695, %v1596_v36  ;;  %v1694_v38 = vsel %vm1495_vm2, %v9672_v45, 0.0  ;;  %v9677_v11 = vpop.eup %8430 }
 0x287   : > { %v1634_v59 = vmul.f32 1.442695, %v1597_v22  ;;  %1695 = vadd.xlane.f32.xlu0 %v1694_v38  ;;  %v1688_v61 = vsel %vm1495_vm2, %v9677_v11, 0.0 }
 0x288   : > { %8440 = vpow2.f32 %v1632_v7 }
 0x289   : > { %v9679_v46 = vpop.eup %8432  ;;  %8442 = vpow2.f32 %v1634_v59 }
 0x28a   : > { %v1697_v43 = vsel %vm1495_vm2, %v9679_v46, 0.0  ;;  %v9685_v57 = vpop.eup %8434 }
 0x28b   : > { %1698 = vadd.xlane.f32.xlu1 %v1697_v43  ;;  %1689 = vadd.xlane.f32.xlu0 %v1688_v61  ;;  %v1691_v4 = vsel %vm1495_vm2, %v9685_v57, 0.0 }
 0x28e   : > { %v9687_v17 = vpop.eup %8436 }
 0x28f   : > { %v9691_v14 = vpop.eup %8438  ;;  %1692 = vadd.xlane.f32.xlu1 %v1691_v4  ;;  %v1706_v24 = vsel %vm1495_vm2, %v9687_v17, 0.0 }
 0x290   : > { %1707 = vadd.xlane.f32.xlu0 %v1706_v24  ;;  %v1709_v18 = vsel %vm1495_vm2, %v9691_v14, 0.0 }
 0x292   : > { %v9695_v58 = vpop.eup %8440 }
 0x293   : > { %v9699_v26 = vpop.eup %8442  ;;  %1710 = vadd.xlane.f32.xlu1 %v1709_v18  ;;  %v1700_v28 = vsel %vm1495_vm2, %v9695_v58, 0.0 }
 0x294   : > { %1701 = vadd.xlane.f32.xlu0 %v1700_v28  ;;  %v1703_v2 = vsel %vm1495_vm2, %v9699_v26, 0.0 }
 0x296   : > { %v1528_v54 = vpop.xlane.xlu0 %1527 }
 0x297   : > { %v1602_v36 = vsub.f32 %v9526_v16, %v1528_v54  ;;  %1704 = vadd.xlane.f32.xlu1 %v1703_v2 }
 0x298   : > { %v1531_v40 = vpop.xlane.xlu1 %1530 }
 0x299   : > { %v1644_v22 = vmul.f32 1.442695, %v1602_v36  ;;  %v1603_v7 = vsub.f32 %v9529_v23, %v1531_v40 }
 0x29a   : > { %v1552_v38 = vpop.xlane.xlu0 %1551 }
 0x29b   : > { %8444 = vpow2.f32 %v1644_v22  ;;  %v1646_v59 = vmul.f32 1.442695, %v1603_v7  ;;  %v1610_v43 = vsub.f32 %v9532_v1, %v1552_v38 }
 0x29c   : > { %v1555_v61 = vpop.xlane.xlu1 %1554 }
 0x29d   : > { %8446 = vpow2.f32 %v1646_v59  ;;  %v1660_v4 = vmul.f32 1.442695, %v1610_v43  ;;  %v1611_v24 = vsub.f32 %v9537_v29, %v1555_v61 }
 0x29e   : > { %v1522_v18 = vpop.xlane.xlu0 %1521 }
 0x29f   : > { %8448 = vpow2.f32 %v1660_v4  ;;  %v1662_v28 = vmul.f32 1.442695, %v1611_v24  ;;  %v1600_v16 = vsub.f32 %v9542_v30, %v1522_v18 }
 0x2a0   : > { %v1525_v54 = vpop.xlane.xlu1 %1524 }
 0x2a1   : > { %8450 = vpow2.f32 %v1662_v28  ;;  %v1640_v2 = vmul.f32 1.442695, %v1600_v16  ;;  %v1601_v23 = vsub.f32 %v9547_v32, %v1525_v54 }
 0x2a2   : > { %v1546_v36 = vpop.xlane.xlu0 %1545 }
 0x2a3   : > { %8452 = vpow2.f32 %v1640_v2  ;;  %v1642_v40 = vmul.f32 1.442695, %v1601_v23  ;;  %v1608_v1 = vsub.f32 %v9552_v60, %v1546_v36 }
 0x2a4   : > { %v1549_v22 = vpop.xlane.xlu1 %1548 }
 0x2a5   : > { %v9712_v7 = vpop.eup %8444  ;;  %8454 = vpow2.f32 %v1642_v40  ;;  %v1656_v29 = vmul.f32 1.442695, %v1608_v1  ;;  %v1609_v38 = vsub.f32 %v9557_v13, %v1549_v22 }
 0x2a6   : > { %v1540_v59 = vpop.xlane.xlu0 %1539  ;;  %v1718_v30 = vsel %vm1495_vm2, %v9712_v7, 0.0 }
 0x2a7   : > { %v9717_v43 = vpop.eup %8446  ;;  %8456 = vpow2.f32 %v1656_v29  ;;  %v1658_v32 = vmul.f32 1.442695, %v1609_v38  ;;  %v1606_v61 = vsub.f32 %v9562_v53, %v1540_v59  ;;  %1719 = vadd.xlane.f32.xlu0 %v1718_v30 }
 0x2a8   : > { %v1543_v4 = vpop.xlane.xlu1 %1542  ;;  %v1721_v60 = vsel %vm1495_vm2, %v9717_v43, 0.0 }
 0x2a9   : > { %v9722_v24 = vpop.eup %8448  ;;  %8458 = vpow2.f32 %v1658_v32  ;;  %v1652_v18 = vmul.f32 1.442695, %v1606_v61  ;;  %v1607_v13 = vsub.f32 %v9567_v52, %v1543_v4  ;;  %1722 = vadd.xlane.f32.xlu1 %v1721_v60 }
 0x2aa   : > { %v1564_v28 = vpop.xlane.xlu0 %1563  ;;  %v1742_v16 = vsel %vm1495_vm2, %v9722_v24, 0.0 }
 0x2ab   : > { %v9727_v54 = vpop.eup %8450  ;;  %8460 = vpow2.f32 %v1652_v18  ;;  %v1654_v53 = vmul.f32 1.442695, %v1607_v13  ;;  %v1614_v2 = vsub.f32 %v9572_v42, %v1564_v28  ;;  %1743 = vadd.xlane.f32.xlu0 %v1742_v16 }
 0x2ac   : > { %v1567_v23 = vpop.xlane.xlu1 %1566  ;;  %v1745_v36 = vsel %vm1495_vm2, %v9727_v54, 0.0 }
 0x2ad   : > { %v9732_v40 = vpop.eup %8452  ;;  %8462 = vpow2.f32 %v1654_v53  ;;  %v1668_v52 = vmul.f32 1.442695, %v1614_v2  ;;  %v1615_v1 = vsub.f32 %v9577_v15, %v1567_v23  ;;  %1746 = vadd.xlane.f32.xlu1 %v1745_v36 }
 0x2ae   : > { %v1534_v22 = vpop.xlane.xlu0 %1533  ;;  %v1712_v29 = vsel %vm1495_vm2, %v9732_v40, 0.0 }
 0x2af   : > { %v9737_v38 = vpop.eup %8454  ;;  %8464 = vpow2.f32 %v1668_v52  ;;  %v1670_v42 = vmul.f32 1.442695, %v1615_v1  ;;  %v1604_v59 = vsub.f32 %v9582_v41, %v1534_v22  ;;  %1713 = vadd.xlane.f32.xlu0 %v1712_v29 }
 0x2b0   : > { %v1537_v30 = vpop.xlane.xlu1 %1536  ;;  %v1715_v32 = vsel %vm1495_vm2, %v9737_v38, 0.0 }
 0x2b1   : > { %v9742_v61 = vpop.eup %8456  ;;  %8466 = vpow2.f32 %v1670_v42  ;;  %v1648_v15 = vmul.f32 1.442695, %v1604_v59  ;;  %v1605_v4 = vsub.f32 %v9587_v19, %v1537_v30  ;;  %1716 = vadd.xlane.f32.xlu1 %v1715_v32 }
 0x2b2   : > { %v1558_v60 = vpop.xlane.xlu0 %1557  ;;  %v1736_v18 = vsel %vm1495_vm2, %v9742_v61, 0.0 }
 0x2b3   : > { %v9747_v13 = vpop.eup %8458  ;;  %8468 = vpow2.f32 %v1648_v15  ;;  %v1650_v41 = vmul.f32 1.442695, %v1605_v4  ;;  %v1612_v28 = vsub.f32 %v9592_v27, %v1558_v60  ;;  %1737 = vadd.xlane.f32.xlu0 %v1736_v18 }
 0x2b4   : > { %v1561_v16 = vpop.xlane.xlu1 %1560  ;;  %v1739_v53 = vsel %vm1495_vm2, %v9747_v13, 0.0 }
 0x2b5   : > { %v9752_v2 = vpop.eup %8460  ;;  %8470 = vpow2.f32 %v1650_v41  ;;  %v1664_v19 = vmul.f32 1.442695, %v1612_v28  ;;  %v1613_v23 = vsub.f32 %v9597_v62, %v1561_v16  ;;  %1740 = vadd.xlane.f32.xlu1 %v1739_v53 }
 0x2b6   : > { %v1576_v36 = vpop.xlane.xlu0 %1575  ;;  %v1730_v52 = vsel %vm1495_vm2, %v9752_v2, 0.0 }
 0x2b7   : > { %v9757_v1 = vpop.eup %8462  ;;  %8472 = vpow2.f32 %v1664_v19  ;;  %v1666_v27 = vmul.f32 1.442695, %v1613_v23  ;;  %v1618_v22 = vsub.f32 %v9604_v56, %v1576_v36  ;;  %1731 = vadd.xlane.f32.xlu0 %v1730_v52 }
 0x2b8   : > { %v1579_v29 = vpop.xlane.xlu1 %1578  ;;  %v1733_v42 = vsel %vm1495_vm2, %v9757_v1, 0.0 }
 0x2b9   : > { %v9762_v59 = vpop.eup %8464  ;;  %8474 = vpow2.f32 %v1666_v27  ;;  %v1676_v62 = vmul.f32 1.442695, %v1618_v22  ;;  %v1619_v30 = vsub.f32 %v9612_v12, %v1579_v29  ;;  %1734 = vadd.xlane.f32.xlu1 %v1733_v42 }
 0x2ba   : > { %v1570_v32 = vpop.xlane.xlu0 %1569  ;;  %v1754_v15 = vsel %vm1495_vm2, %v9762_v59, 0.0 }
 0x2bb   : > { %v9767_v4 = vpop.eup %8466  ;;  %8476 = vpow2.f32 %v1676_v62  ;;  %v1678_v56 = vmul.f32 1.442695, %v1619_v30  ;;  %v1616_v60 = vsub.f32 %v9609_v39, %v1570_v32  ;;  %1755 = vadd.xlane.f32.xlu0 %v1754_v15 }
 0x2bc   : > { %v1573_v18 = vpop.xlane.xlu1 %1572  ;;  %v1757_v41 = vsel %vm1495_vm2, %v9767_v4, 0.0 }
 0x2bd   : > { %v9772_v28 = vpop.eup %8468  ;;  %8478 = vpow2.f32 %v1678_v56  ;;  %v1672_v12 = vmul.f32 1.442695, %v1616_v60  ;;  %v1617_v16 = vsub.f32 %v9617_v51, %v1573_v18  ;;  %1758 = vadd.xlane.f32.xlu1 %v1757_v41 }
 0x2be   : > { %v1724_v53 = vsel %vm1495_vm2, %v9772_v28, 0.0  ;;  %v1588_v60 = vpop.xlane.xlu0 %1587 }
 0x2bf   : > { %v9777_v19 = vpop.eup %8470  ;;  %8480 = vpow2.f32 %v1672_v12  ;;  %v1674_v23 = vmul.f32 1.442695, %v1617_v16  ;;  %1725 = vadd.xlane.f32.xlu0 %v1724_v53  ;;  %v1622_v12 = vsub.f32 %v9624_v50, %v1588_v60 }
 0x2c0   : > { %v1727_v39 = vsel %vm1495_vm2, %v9777_v19, 0.0  ;;  %v1591_v18 = vpop.xlane.xlu1 %1590 }
 0x2c1   : > { %v9781_v36 = vpop.eup %8472  ;;  %8482 = vpow2.f32 %v1674_v23  ;;  %1728 = vadd.xlane.f32.xlu1 %v1727_v39  ;;  %v1684_v23 = vmul.f32 1.442695, %v1622_v12 }
 0x2c2   : > { %v1748_v52 = vsel %vm1495_vm2, %v9781_v36, 0.0  ;;  %v1582_v41 = vpop.xlane.xlu0 %1581 }
 0x2c3   : > { %v9785_v51 = vpop.eup %8474  ;;  %1749 = vadd.xlane.f32.xlu0 %v1748_v52  ;;  %v1620_v53 = vsub.f32 %v9629_v6, %v1582_v41  ;;  %v1623_v52 = vsub.f32 %v9632_v25, %v1591_v18  ;;  %8484 = vpow2.f32 %v1684_v23 }
 0x2c4   : > { %v1751_v27 = vsel %vm1495_vm2, %v9785_v51, 0.0  ;;  %v1585_v16 = vpop.xlane.xlu1 %1584 }
 0x2c5   : > { %v9789_v22 = vpop.eup %8476  ;;  %1752 = vadd.xlane.f32.xlu1 %v1751_v27  ;;  %v1621_v39 = vsub.f32 %v9637_v55, %v1585_v16  ;;  %v1680_v27 = vmul.f32 1.442695, %v1620_v53 }
 0x2c6   : > { %v1766_v29 = vsel %vm1495_vm2, %v9789_v22, 0.0 }
 0x2c7   : > { %v9793_v42 = vpop.eup %8478  ;;  %1767 = vadd.xlane.f32.xlu0 %v1766_v29  ;;  %v1682_v29 = vmul.f32 1.442695, %v1621_v39  ;;  %8486 = vpow2.f32 %v1680_v27 }
 0x2c8   : > { %v1769_v62 = vsel %vm1495_vm2, %v9793_v42, 0.0 }
 0x2c9   : > { %v9797_v30 = vpop.eup %8480  ;;  %1770 = vadd.xlane.f32.xlu1 %v1769_v62  ;;  %v1686_v62 = vmul.f32 1.442695, %v1623_v52  ;;  %8488 = vpow2.f32 %v1682_v29 }
 0x2ca   : > { %v1760_v32 = vsel %vm1495_vm2, %v9797_v30, 0.0 }
 0x2cb   : > { %v9801_v15 = vpop.eup %8482  ;;  %1761 = vadd.xlane.f32.xlu0 %v1760_v32  ;;  %8490 = vpow2.f32 %v1686_v62 }
 0x2cc   : > { %v1763_v56 = vsel %vm1495_vm2, %v9801_v15, 0.0 }
 0x2cd   : > { %1764 = vadd.xlane.f32.xlu1 %v1763_v56  ;;  %v9813_v32 = vpop.eup %8484 }
 0x2ce   : > { %v1778_v50 = vsel %vm1495_vm2, %v9813_v32, 0.0 }
 0x2d1   : > { %v9815_v56 = vpop.eup %8486 }
 0x2d2   : > { %v1772_v25 = vsel %vm1495_vm2, %v9815_v56, 0.0 }
 0x2d3   : > { %v9819_v6 = vpop.eup %8488 }
 0x2d4   : > { %v1775_v60 = vsel %vm1495_vm2, %v9819_v6, 0.0 }
 0x2d5   : > { %v9823_v55 = vpop.eup %8490 }
 0x2d6   : > { %v1781_v18 = vsel %vm1495_vm2, %v9823_v55, 0.0 }
 0x2de   : > { %2442 = vrot.lane.b32.xlu1 %v9223_v5, %s8948_s18 }
 0x2e1   : > { %2333 = vrot.lane.b32.xlu0 %v9201_v44, %s8948_s18 }
 0x300   : > { %1779 = vadd.xlane.f32.xlu0 %v1778_v50 }
 0x302   : > { %1773 = vadd.xlane.f32.xlu1 %v1772_v25 }
 0x304   : > { %1776 = vadd.xlane.f32.xlu0 %v1775_v60 }
 0x306   : > { %1782 = vadd.xlane.f32.xlu1 %v1781_v18 }
 0x314   : > { %v1696_v41 = vpop.xlane.xlu0 %1695 }
 0x317   : > { %2317 = vrot.lane.b32.xlu1 %v9182_v20, %s8948_s18 }
 0x318   : > { %v1699_v12 = vpop.xlane.xlu1 %1698  ;;  %v1690_v16 = vpop.xlane.xlu0 %1689 }
 0x319   : > { %8492 = vrcp.f32 %v1699_v12 }
 0x31a   : > { %2315 = vrot.lane.b32.xlu0 %v9186_v21, %s8948_s18  ;;  %8494 = vrcp.f32 %v1690_v16 }
 0x31b   : > { %2553 = vrot.lane.b32.xlu1 %v9290_v10, %s8948_s18  ;;  %8496 = vrcp.f32 %v1696_v41 }
 0x31c   : > { %v1693_v53 = vpop.xlane.xlu1 %1692 }
 0x31d   : > { %8498 = vrcp.f32 %v1693_v53  ;;  %v1708_v23 = vpop.xlane.xlu0 %1707 }
 0x31e   : > { %2444 = vrot.lane.b32.xlu0 %v9260_v35, %s8948_s18 }
 0x31f   : > { %2319 = vrot.lane.b32.xlu1 %v9208_v48, %s8948_s18 }
 0x320   : > { %v1711_v39 = vpop.xlane.xlu1 %1710 }
 0x321   : > { %v1702_v52 = vpop.xlane.xlu0 %1701  ;;  %8500 = vrcp.f32 %v1711_v39 }
 0x322   : > { %2206 = vrot.lane.b32.xlu0 %v9162_v0, %s8948_s18  ;;  %8502 = vrcp.f32 %v1702_v52 }
 0x323   : > { %2321 = vrot.lane.b32.xlu1 %v9206_v47, %s8948_s18  ;;  %v8493_v27 = vpop.eup %8492  ;;  %8504 = vrcp.f32 %v1708_v23 }
 0x324   : > { %v1705_v29 = vpop.xlane.xlu1 %1704  ;;  %v8495_v62 = vpop.eup %8494  ;;  %v1819_v60 = vmul.f32 %v8493_v27, %v9679_v46 }
 0x325   : > { %8506 = vrcp.f32 %v1705_v29  ;;  %v8497_v50 = vpop.eup %8496  ;;  %v1816_v18 = vmul.f32 %v8495_v62, %v9677_v11  ;;  %v12377_v62 = vld [vmem:[#allocation45_spill] sm:$0xff] }
 0x326   : > { %2208 = vrot.lane.b32.xlu0 %v9158_v63, %s8948_s18  ;;  %v1818_v12 = vmul.f32 %v8497_v50, %v9672_v45  ;;  %v12378_v50 = vld [vmem:[#allocation30_spill] sm:$0xff] }
 0x327   : > { %v8499_v25 = vpop.eup %8498  ;;  %2555 = vrot.lane.b32.xlu1 %v9285_v3, %s8948_s18 }
 0x328   : > { %v1817_v41 = vmul.f32 %v8499_v25, %v9685_v57  ;;  %v1849_v53 = vpack.c.bf16 %v1819_v60, %v1818_v12  ;;  %v12381_v60 = vld [vmem:[#allocation28_spill] sm:$0xff]  ;;  %v12382_v12 = vld [vmem:[#allocation29_spill] sm:$0xff] }
 0x32a   : > { %2446 = vrot.lane.b32.xlu0 %v9257_v33, %s8948_s18  ;;  %v1848_v16 = vpack.c.bf16 %v1817_v41, %v1816_v18 }
 0x32b   : > { %2430 = vrot.lane.b32.xlu1 %v9228_v8, %s8948_s18  ;;  %v8501_v23 = vpop.eup %8500 }
 0x32c   : > { %7652 = vmatprep.mubr.msk.bf16.mxu0 %vm1495_vm2, %v1848_v16  ;;  %v8503_v46 = vpop.eup %8502  ;;  %v1823_v11 = vmul.f32 %v8501_v23, %v9691_v14  ;;  %v12383_v16 = vld [vmem:[#allocation52_spill] sm:$0xff] }
 0x32d   : > { %7653 = vmatmul.mubr.msk.bf16.vlgmr.msra.gmra.mrb[72].mxu0 %vm1495_vm2, %v1849_v53  ;;  %v8505_v39 = vpop.eup %8504  ;;  %v1820_v57 = vmul.f32 %v8503_v46, %v9695_v58  ;;  %v12379_v58 = vld [vmem:[#allocation24_spill] sm:$0xff] }
 0x32e   : > { %7677 = vmatpush3.bf16.msra.mxu0 %v9417_v34  ;;  %2428 = vrot.lane.b32.xlu0 %v9230_v9, %s8948_s18  ;;  %v1822_v27 = vmul.f32 %v8505_v39, %v9687_v17  ;;  %v12384_v53 = vld [vmem:[#allocation32_spill] sm:$0xff]  ;;  %v12385_v39 = vld [vmem:[#allocation33_spill] sm:$0xff] }
 0x32f   : > { %v8507_v45 = vpop.eup %8506  ;;  %7678 = vmatprep.subr.bf16.mxu0 %v9415_v31  ;;  %2432 = vrot.lane.b32.xlu1 %v9264_v37, %s8948_s18 }
 0x330   : > { %v1821_v52 = vmul.f32 %v8507_v45, %v9699_v26  ;;  %v1851_v25 = vpack.c.bf16 %v1823_v11, %v1822_v27  ;;  %v12380_v26 = vld [vmem:[#allocation44_spill] sm:$0xff]  ;;  %v12386_v45 = vld [vmem:[#allocation38_spill] sm:$0xff]  ;;  %v12388_v27 = vld [vmem:[#allocation39_spill] sm:$0xff] }
 0x332   : > { %7679 = vmatpush3.bf16.msra.mxu0 %v9415_v31  ;;  %2557 = vrot.lane.b32.xlu0 %v9312_v49, %s8948_s18  ;;  %v1850_v29 = vpack.c.bf16 %v1821_v52, %v1820_v57  ;;  %v12387_v52 = vld [vmem:[#allocation35_spill] sm:$0xff] }
 0x333   : > { %7680 = vmatprep.subr.bf16.mxu0 %v12377_v62  ;;  %2559 = vrot.lane.b32.xlu1 %v12378_v50, %s8948_s18 }
 0x334   : > { %7656 = vmatprep.mubr.msk.bf16.mxu0 %vm1495_vm2, %v1850_v29  ;;  %v1720_v14 = vpop.xlane.xlu0 %1719 }
 0x335   : > { %7657 = vmatmul.mubr.msk.bf16.gmra.mrb[76].mxu0 %vm1495_vm2, %v1851_v25 }
 0x336   : > { %7681 = vmatpush3.bf16.msra.mxu0 %v12377_v62  ;;  %v1723_v17 = vpop.xlane.xlu1 %1722  ;;  %2434 = vrot.lane.b32.xlu0 %v12379_v58, %s8948_s18  ;;  %v12392_v58 = vld [vmem:[#allocation40_spill] sm:$0xff] }
 0x337   : > { %7682 = vmatprep.subr.bf16.mxu0 %v12380_v26  ;;  %2543 = vrot.lane.b32.xlu1 %v12381_v60, %s8948_s18  ;;  %8508 = vrcp.f32 %v1723_v17  ;;  %v12389_v17 = vld [vmem:[#allocation34_spill] sm:$0xff] }
 0x338   : > { %v1744_v18 = vpop.xlane.xlu0 %1743 }
 0x33a   : > { %7683 = vmatpush3.bf16.msra.mxu0 %v12380_v26  ;;  %v1747_v41 = vpop.xlane.xlu1 %1746  ;;  %2541 = vrot.lane.b32.xlu0 %v12382_v12, %s8948_s18 }
 0x33b   : > { %8342 = vmatprep.subr.msk.bf16.mxu0 %vm1138_vm1, %v12383_v16  ;;  %2547 = vrot.lane.b32.xlu1 %v12384_v53, %s8948_s18 }
 0x33c   : > { %v1714_v23 = vpop.xlane.xlu0 %1713 }
 0x33d   : > { %8510 = vrcp.f32 %v1714_v23 }
 0x33e   : > { %8512 = vrcp.f32 %v1720_v14  ;;  %v1717_v46 = vpop.xlane.xlu1 %1716  ;;  %2545 = vrot.lane.b32.xlu0 %v12385_v39, %s8948_s18  ;;  %v12391_v39 = vld [vmem:[#allocation37_spill] sm:$0xff] }
 0x33f   : > { %8514 = vrcp.f32 %v1717_v46  ;;  %3115 = vrot.lane.b32.xlu1 %v12386_v45, %s8948_s18 }
 0x340   : > { %8516 = vrcp.f32 %v1747_v41  ;;  %v1738_v11 = vpop.xlane.xlu0 %1737  ;;  %v12390_v41 = vld [vmem:[#allocation36_spill] sm:$0xff] }
 0x341   : > { %8518 = vrcp.f32 %v1738_v11  ;;  %v8509_v25 = vpop.eup %8508 }
 0x342   : > { %8520 = vrcp.f32 %v1744_v18  ;;  %v1741_v57 = vpop.xlane.xlu1 %1740  ;;  %3022 = vrot.lane.b32.xlu0 %v12387_v52, %s8948_s18  ;;  %v1827_v45 = vmul.f32 %v8509_v25, %v9717_v43 }
 0x343   : > { %8522 = vrcp.f32 %v1741_v57  ;;  %3117 = vrot.lane.b32.xlu1 %v12388_v27, %s8948_s18 }
 0x344   : > { %v1732_v29 = vpop.xlane.xlu0 %1731 }
 0x346   : > { %v1735_v14 = vpop.xlane.xlu1 %1734  ;;  %3024 = vrot.lane.b32.xlu0 %v12389_v17, %s8948_s18 }
 0x347   : > { %v8511_v23 = vpop.eup %8510  ;;  %3026 = vrot.lane.b32.xlu1 %v12390_v41, %s8948_s18  ;;  %8524 = vrcp.f32 %v1735_v14  ;;  %v12393_v14 = vld [vmem:[#allocation41_spill] sm:$0xff] }
 0x348   : > { %v8513_v46 = vpop.eup %8512  ;;  %v1756_v18 = vpop.xlane.xlu0 %1755  ;;  %v1824_v27 = vmul.f32 %v8511_v23, %v9732_v40  ;;  %v12398_v23 = vld [vmem:[#allocation48_spill] sm:$0xff] }
 0x349   : > { %v8515_v11 = vpop.eup %8514  ;;  %v1826_v17 = vmul.f32 %v8513_v46, %v9712_v7 }
 0x34a   : > { %v8517_v52 = vpop.eup %8516  ;;  %v1759_v57 = vpop.xlane.xlu1 %1758  ;;  %3028 = vrot.lane.b32.xlu0 %v12391_v39, %s8948_s18  ;;  %v1825_v12 = vmul.f32 %v8515_v11, %v9737_v38 }
 0x34b   : > { %v8519_v53 = vpop.eup %8518  ;;  %3119 = vrot.lane.b32.xlu1 %v12392_v58, %s8948_s18  ;;  %v1853_v25 = vpack.c.bf16 %v1827_v45, %v1826_v17  ;;  %v1835_v50 = vmul.f32 %v8517_v52, %v9727_v54  ;;  %v12395_v52 = vld [vmem:[#allocation46_spill] sm:$0xff] }
 0x34c   : > { %v8521_v41 = vpop.eup %8520  ;;  %v1726_v60 = vpop.xlane.xlu0 %1725  ;;  %v1852_v49 = vpack.c.bf16 %v1825_v12, %v1824_v27  ;;  %v1832_v40 = vmul.f32 %v8519_v53, %v9742_v61  ;;  %v12394_v12 = vld [vmem:[#allocation47_spill] sm:$0xff] }
 0x34d   : > { %v8523_v43 = vpop.eup %8522  ;;  %8526 = vrcp.f32 %v1726_v60  ;;  %v1834_v38 = vmul.f32 %v8521_v41, %v9722_v24  ;;  %v2235_v24 = vsel %vm1138_vm1, %v12383_v16, 0 }
 0x34e   : > { %8528 = vrcp.f32 %v1732_v29  ;;  %v1729_v39 = vpop.xlane.xlu1 %1728  ;;  %7668 = vmatprep.mubr.msk.bf16.mxu1 %vm1495_vm2, %v1852_v49  ;;  %v1833_v7 = vmul.f32 %v8523_v43, %v9747_v13  ;;  %v12396_v13 = vld [vmem:[#allocation49_spill] sm:$0xff] }
 0x34f   : > { %8530 = vrcp.f32 %v1729_v39  ;;  %3121 = vrot.lane.b32.xlu1 %v12393_v14, %s8948_s18  ;;  %7669 = vmatmul.mubr.msk.bf16.vlgmr.msra.gmra.mrb[56].mxu1 %vm1495_vm2, %v1853_v25  ;;  %v1857_v45 = vpack.c.bf16 %v1835_v50, %v1834_v38  ;;  %v12397_v50 = vld [vmem:[#allocation50_spill] sm:$0xff] }
 0x350   : > { %8532 = vrcp.f32 %v1759_v57  ;;  %7693 = vmatpush3.bf16.msra.mxu1 %v12394_v12  ;;  %v1750_v54 = vpop.xlane.xlu0 %1749  ;;  %v1856_v60 = vpack.c.bf16 %v1833_v7, %v1832_v40  ;;  %v2238_v25 = vsel %vm1138_vm1, %v12397_v50, 0 }
 0x351   : > { %7694 = vmatprep.subr.bf16.mxu1 %v12395_v52  ;;  %8534 = vrcp.f32 %v1750_v54  ;;  %v8525_v53 = vpop.eup %8524  ;;  %v12399_v54 = vld [vmem:[#allocation57_spill] sm:$0xff] }
 0x352   : > { %8536 = vrcp.f32 %v1756_v18  ;;  %v1753_v49 = vpop.xlane.xlu1 %1752  ;;  %7684 = vmatprep.mubr.msk.bf16.mxu0 %vm1495_vm2, %v1856_v60  ;;  %v1831_v41 = vmul.f32 %v8525_v53, %v9757_v1  ;;  %v12400_v60 = vld [vmem:[#allocation56_spill] sm:$0xff] }
 0x353   : > { %8538 = vrcp.f32 %v1753_v49  ;;  %3208 = vrot.lane.b32.xlu1 %v9417_v34, %s8948_s18  ;;  %7685 = vmatmul.mubr.msk.bf16.vlgmr.msra.gmra.mrb[80].mxu0 %vm1495_vm2, %v1857_v45 }
 0x354   : > { %7695 = vmatpush3.bf16.msra.mxu1 %v12395_v52  ;;  %7709 = vmatpush3.bf16.xpose.msra.mxu0 %v2235_v24  ;;  %v1768_v61 = vpop.xlane.xlu0 %1767 }
 0x355   : > { %7696 = vmatprep.subr.bf16.mxu1 %v12396_v13  ;;  %8343 = vmatprep.subr.msk.bf16.mxu0 %vm1138_vm1, %v12397_v50 }
 0x356   : > { %v1771_v39 = vpop.xlane.xlu1 %1770 }
 0x357   : > { %v8527_v27 = vpop.eup %8526  ;;  %3210 = vrot.lane.b32.xlu1 %v9415_v31, %s8948_s18  ;;  %8540 = vrcp.f32 %v1771_v39 }
 0x358   : > { %v8529_v29 = vpop.eup %8528  ;;  %7697 = vmatpush3.bf16.msra.mxu1 %v12396_v13  ;;  %v1762_v16 = vpop.xlane.xlu0 %1761  ;;  %v1828_v11 = vmul.f32 %v8527_v27, %v9772_v28 }
 0x359   : > { %v8531_v17 = vpop.eup %8530  ;;  %7698 = vmatprep.subr.bf16.mxu1 %v12398_v23  ;;  %8542 = vrcp.f32 %v1762_v16  ;;  %v1830_v40 = vmul.f32 %v8529_v29, %v9752_v2 }
 0x35a   : > { %v8533_v46 = vpop.eup %8532  ;;  %8544 = vrcp.f32 %v1768_v61  ;;  %v1765_v18 = vpop.xlane.xlu1 %1764  ;;  %v1829_v57 = vmul.f32 %v8531_v17, %v9777_v19 }
 0x35b   : > { %v8535_v43 = vpop.eup %8534  ;;  %8546 = vrcp.f32 %v1765_v18  ;;  %v1855_v28 = vpack.c.bf16 %v1831_v41, %v1830_v40  ;;  %v1839_v19 = vmul.f32 %v8533_v46, %v9767_v4  ;;  %v2241_v4 = vsel %vm1138_vm1, %v12399_v54, 0 }
 0x35c   : > { %v8537_v7 = vpop.eup %8536  ;;  %7699 = vmatpush3.bf16.msra.mxu1 %v12398_v23  ;;  %7711 = vmatpush3.bf16.xpose.msra.mxu0 %v2238_v25  ;;  %v1854_v38 = vpack.c.bf16 %v1829_v57, %v1828_v11  ;;  %v1836_v45 = vmul.f32 %v8535_v43, %v9781_v36  ;;  %v12401_v36 = vld [vmem:[#allocation55_spill] sm:$0xff]  ;;  %v12403_v11 = vld [vmem:[#allocation54_spill] sm:$0xff] }
 0x35d   : > { %v8539_v1 = vpop.eup %8538  ;;  %8344 = vmatprep.subr.msk.bf16.mxu0 %vm1138_vm1, %v12399_v54  ;;  %8346 = vmatprep.subr.msk.bf16.mxu1 %vm1138_vm1, %v12400_v60  ;;  %v1838_v49 = vmul.f32 %v8537_v7, %v9762_v59  ;;  %v12402_v59 = vld [vmem:[#allocation53_spill] sm:$0xff]  ;;  %v12406_v25 = vld [vmem:[#allocation58_spill] sm:$0xff] }
 0x35e   : > { %7672 = vmatprep.mubr.msk.bf16.mxu1 %vm1495_vm2, %v1854_v38  ;;  %v1837_v2 = vmul.f32 %v8539_v1, %v9785_v51  ;;  %v2244_v18 = vsel %vm1138_vm1, %v12402_v59, 0  ;;  %v2443_v43 = vpop.permute.xlu1 %2442  ;;  %v2354_v40 = vsel %vm1138_vm1, %v12406_v25, 0  ;;  %v2334_v38 = vpop.permute.xlu0 %2333 }
 0x35f   : > { %7673 = vmatmul.mubr.msk.bf16.gmra.mrb[60].mxu1 %vm1495_vm2, %v1855_v28  ;;  %v1859_v61 = vpack.c.bf16 %v1839_v19, %v1838_v49  ;;  %v2464_v7 = vsel %vm1138_vm1, %v2443_v43, 0  ;;  %v2357_v1 = vsel %vm1138_vm1, %v2334_v38, 0 }
 0x360   : > { %v1858_v24 = vpack.c.bf16 %v1837_v2, %v1836_v45 }
 0x361   : > { %v8541_v50 = vpop.eup %8540 }
 0x362   : > { %7688 = vmatprep.mubr.msk.bf16.mxu0 %vm1495_vm2, %v1858_v24  ;;  %v1843_v27 = vmul.f32 %v8541_v50, %v9793_v42  ;;  %v2348_v42 = vsel %vm1138_vm1, %v12400_v60, 0 }
 0x363   : > { %v8543_v53 = vpop.eup %8542  ;;  %7689 = vmatmul.mubr.msk.bf16.gmra.mrb[84].mxu0 %vm1495_vm2, %v1859_v61 }
 0x364   : > { %v8545_v39 = vpop.eup %8544  ;;  %7713 = vmatpush3.bf16.xpose.msra.mxu0 %v2241_v4  ;;  %7716 = vmatprep.mubr.msk.bf16.mxu0 %vm1138_vm1, %v12401_v36  ;;  %v1840_v29 = vmul.f32 %v8543_v53, %v9797_v30  ;;  %v12404_v30 = vld [vmem:[#allocation59_spill] sm:$0xff] }
 0x365   : > { %v8547_v51 = vpop.eup %8546  ;;  %8345 = vmatprep.subr.msk.bf16.mxu0 %vm1138_vm1, %v12402_v59  ;;  %v1842_v17 = vmul.f32 %v8545_v39, %v9789_v22  ;;  %v12405_v22 = vld [vmem:[#allocation51_spill] sm:$0xff]  ;;  %v2461_v57 = vsel %vm1138_vm1, %v12404_v30, 0 }
 0x366   : > { %v1841_v16 = vmul.f32 %v8547_v51, %v9801_v15  ;;  %v2351_v15 = vsel %vm1138_vm1, %v12403_v11, 0 }
 0x367   : > { %v1861_v46 = vpack.c.bf16 %v1843_v27, %v1842_v17 }
 0x368   : > { %v1860_v41 = vpack.c.bf16 %v1841_v16, %v1840_v29 }
 0x36a   : > { %7700 = vmatprep.mubr.msk.bf16.mxu1 %vm1495_vm2, %v1860_v41 }
 0x36b   : > { %7701 = vmatmul.mubr.msk.bf16.vlgmr.msra.gmra.mrb[64].mxu1 %vm1495_vm2, %v1861_v46 }
 0x36c   : > { %7715 = vmatpush3.bf16.xpose.msra.mxu0 %v2244_v18  ;;  %7725 = vmatpush3.bf16.xpose.msra.mxu1 %v2348_v42 }
 0x36d   : > { %8347 = vmatprep.subr.msk.bf16.mxu1 %vm1138_vm1, %v12403_v11  ;;  %8350 = vmatprep.subr.msk.bf16.mxu0 %vm1138_vm1, %v12404_v30 }
 0x373   : > { %7717 = vmatmul.mubr.msk.bf16.vlgmr.msra.gmra.mrb[88].mxu0 %vm1138_vm1, %v12405_v22 }
 0x374   : > { %7727 = vmatpush3.bf16.xpose.msra.mxu1 %v2351_v15  ;;  %7741 = vmatpush3.bf16.xpose.msra.mxu0 %v2461_v57 }
 0x375   : > { %8348 = vmatprep.subr.msk.bf16.mxu1 %vm1138_vm1, %v12406_v25  ;;  %8351 = vmatprep.subr.msk.bf16.mxu0 %vm1138_vm1, %v2443_v43 }
 0x37c   : > { %7729 = vmatpush3.bf16.xpose.msra.mxu1 %v2354_v40  ;;  %7743 = vmatpush3.bf16.xpose.msra.mxu0 %v2464_v7 }
 0x37d   : > { %8349 = vmatprep.subr.msk.bf16.mxu1 %vm1138_vm1, %v2334_v38 }
 0x384   : > { %7731 = vmatpush3.bf16.xpose.msra.mxu1 %v2357_v1 }
 0x38d   : > { %v1780_v54 = vpop.xlane.xlu0 %1779 }
 0x38f   : > { %v1774_v60 = vpop.xlane.xlu1 %1773 }
 0x390   : > { %8548 = vrcp.f32 %v1774_v60 }
 0x391   : > { %8550 = vrcp.f32 %v1780_v54  ;;  %v1777_v28 = vpop.xlane.xlu0 %1776 }
 0x392   : > { %8552 = vrcp.f32 %v1777_v28 }
 0x393   : > { %v1783_v19 = vpop.xlane.xlu1 %1782 }
 0x394   : > { %8554 = vrcp.f32 %v1783_v19 }
 0x395   : > { %v2316_v45 = vpop.permute.xlu0 %2315 }
 0x397   : > { %v2318_v2 = vpop.permute.xlu1 %2317 }
 0x399   : > { %v2445_v49 = vpop.permute.xlu0 %2444 }
 0x39a   : > { %v8549_v24 = vpop.eup %8548  ;;  %8352 = vmatprep.subr.msk.bf16.mxu0 %vm1138_vm1, %v2445_v49  ;;  %v2467_v61 = vsel %vm1138_vm1, %v2445_v49, 0 }
 0x39b   : > { %v8551_v50 = vpop.eup %8550  ;;  %v2554_v53 = vpop.permute.xlu1 %2553  ;;  %7745 = vmatpush3.bf16.xpose.msra.mxu0 %v2467_v61  ;;  %v1844_v36 = vmul.f32 %v8549_v24, %v9815_v56 }
 0x39c   : > { %v8553_v4 = vpop.eup %8552  ;;  %8354 = vmatprep.subr.msk.bf16.mxu1 %vm1138_vm1, %v2554_v53  ;;  %v1846_v16 = vmul.f32 %v8551_v50, %v9813_v32  ;;  %v2574_v11 = vsel %vm1138_vm1, %v2554_v53, 0 }
 0x39d   : > { %v2207_v39 = vpop.permute.xlu0 %2206  ;;  %v1845_v51 = vmul.f32 %v8553_v4, %v9819_v6 }
 0x39e   : > { %v8555_v27 = vpop.eup %8554  ;;  %7720 = vmatprep.mubr.msk.bf16.mxu0 %vm1138_vm1, %v2207_v39 }
 0x39f   : > { %v2320_v59 = vpop.permute.xlu1 %2319  ;;  %v1862_v29 = vpack.c.bf16 %v1845_v51, %v1844_v36  ;;  %v1847_v17 = vmul.f32 %v8555_v27, %v9823_v55 }
 0x3a1   : > { %7704 = vmatprep.mubr.msk.bf16.mxu1 %vm1495_vm2, %v1862_v29  ;;  %v2209_v41 = vpop.permute.xlu0 %2208  ;;  %v1863_v46 = vpack.c.bf16 %v1847_v17, %v1846_v16 }
 0x3a2   : > { %7721 = vmatmul.mubr.msk.bf16.gmra.mrb[92].mxu0 %vm1138_vm1, %v2209_v41 }
 0x3a3   : > { %v2322_v18 = vpop.permute.xlu1 %2321  ;;  %7705 = vmatmul.mubr.msk.bf16.gmra.mrb[68].mxu1 %vm1495_vm2, %v1863_v46  ;;  %v10125_v46 = vld [vmem:[%s12193_s9 + $0x48] sm:$0xff] }
 0x3a4   : > { %7732 = vmatprep.mubr.msk.bf16.mxu1 %vm1138_vm1, %v2316_v45 }
 0x3a5   : > { %v2447_v56 = vpop.permute.xlu0 %2446 }
 0x3a6   : > { %8353 = vmatprep.subr.msk.bf16.mxu0 %vm1138_vm1, %v2447_v56  ;;  %v2470_v6 = vsel %vm1138_vm1, %v2447_v56, 0 }
 0x3a7   : > { %v2556_v42 = vpop.permute.xlu1 %2555  ;;  %7747 = vmatpush3.bf16.xpose.msra.mxu0 %v2470_v6 }
 0x3a8   : > { %v2577_v43 = vsel %vm1138_vm1, %v2556_v42, 0 }
 0x3a9   : > { %v2429_v32 = vpop.permute.xlu0 %2428 }
 0x3aa   : > { %7748 = vmatprep.mubr.msk.bf16.mxu0 %vm1138_vm1, %v2429_v32 }
 0x3ab   : > { %v2431_v55 = vpop.permute.xlu1 %2430  ;;  %7733 = vmatmul.mubr.msk.bf16.vlgmr.msra.gmra.mrb[72].mxu1 %vm1138_vm1, %v2318_v2 }
 0x3ac   : > { %7757 = vmatpush3.bf16.xpose.msra.mxu1 %v2574_v11  ;;  %7736 = vmatprep.mubr.msk.bf16.mxu1 %vm1138_vm1, %v2320_v59 }
 0x3ad   : > { %8355 = vmatprep.subr.msk.bf16.mxu1 %vm1138_vm1, %v2556_v42  ;;  %v2558_v30 = vpop.permute.xlu0 %2557  ;;  %v10112_v42 = vld [vmem:[%s12193_s9 + $0x40] sm:$0xff] }
 0x3ae   : > { %7749 = vmatmul.mubr.msk.bf16.vlgmr.msra.gmra.mrb[96].mxu0 %vm1138_vm1, %v2431_v55  ;;  %v2580_v1 = vsel %vm1138_vm1, %v2558_v30, 0 }
 0x3af   : > { %v2433_v22 = vpop.permute.xlu1 %2432 }
 0x3b0   : > { %7752 = vmatprep.mubr.msk.bf16.mxu0 %vm1138_vm1, %v2433_v22 }
 0x3b1   : > { %v2435_v15 = vpop.permute.xlu0 %2434 }
 0x3b3   : > { %v2560_v57 = vpop.permute.xlu1 %2559  ;;  %7737 = vmatmul.mubr.msk.bf16.gmra.mrb[76].mxu1 %vm1138_vm1, %v2322_v18 }
 0x3b4   : > { %7759 = vmatpush3.bf16.xpose.msra.mxu1 %v2577_v43  ;;  %v2583_v45 = vsel %vm1138_vm1, %v2560_v57, 0  ;;  %v10117_v43 = vld [vmem:[%s12193_s9 + $0x58] sm:$0xff] }
 0x3b5   : > { %8356 = vmatprep.subr.msk.bf16.mxu1 %vm1138_vm1, %v2558_v30  ;;  %v2542_v25 = vpop.permute.xlu0 %2541 }
 0x3b6   : > { %7753 = vmatmul.mubr.msk.bf16.gmra.mrb[100].mxu0 %vm1138_vm1, %v2435_v15  ;;  %7764 = vmatprep.mubr.msk.bf16.mxu1 %vm1138_vm1, %v2542_v25 }
 0x3b7   : > { %v2544_v40 = vpop.permute.xlu1 %2543 }
 0x3b9   : > { %v2546_v7 = vpop.permute.xlu0 %2545 }
 0x3bb   : > { %v2548_v38 = vpop.permute.xlu1 %2547 }
 0x3bc   : > { %7761 = vmatpush3.bf16.xpose.msra.mxu1 %v2580_v1 }
 0x3bd   : > { %8357 = vmatprep.subr.msk.bf16.mxu1 %vm1138_vm1, %v2560_v57  ;;  %v3023_v54 = vpop.permute.xlu0 %3022 }
 0x3be   : > { %7772 = vmatprep.subr.bf16.mxu0 %v3023_v54 }
 0x3bf   : > { %v3116_v60 = vpop.permute.xlu1 %3115  ;;  %7773 = vmatpush3.bf16.msra.mxu0 %v3023_v54 }
 0x3c1   : > { %v3025_v28 = vpop.permute.xlu0 %3024 }
 0x3c2   : > { %7774 = vmatprep.subr.bf16.mxu0 %v3025_v28 }
 0x3c3   : > { %v3118_v19 = vpop.permute.xlu1 %3117  ;;  %7775 = vmatpush3.bf16.msra.mxu0 %v3025_v28 }
 0x3c4   : > { %7763 = vmatpush3.bf16.xpose.msra.mxu1 %v2583_v45  ;;  %v10107_v45 = vld [vmem:[%s12193_s9 + $0x50] sm:$0xff] }
 0x3c5   : > { %7788 = vmatprep.subr.bf16.mxu1 %v3116_v60  ;;  %v3029_v49 = vpop.permute.xlu0 %3028 }
 0x3c7   : > { %v3027_v2 = vpop.permute.xlu1 %3026 }
 0x3c8   : > { %7776 = vmatprep.subr.bf16.mxu0 %v3027_v2 }
 0x3c9   : > { %7777 = vmatpush3.bf16.msra.mxu0 %v3027_v2 }
 0x3ca   : > { %7778 = vmatprep.subr.bf16.mxu0 %v3029_v49 }
 0x3cb   : > { %7765 = vmatmul.mubr.msk.bf16.vlgmr.msra.gmra.mrb[80].mxu1 %vm1138_vm1, %v2544_v40  ;;  %v3120_v24 = vpop.permute.xlu1 %3119 }
 0x3cc   : > { %7768 = vmatprep.mubr.msk.bf16.mxu1 %vm1138_vm1, %v2546_v7  ;;  %7789 = vmatpush3.bf16.msra.mxu1 %v3116_v60 }
 0x3cd   : > { %7790 = vmatprep.subr.bf16.mxu1 %v3118_v19  ;;  %7779 = vmatpush3.bf16.msra.mxu0 %v3029_v49 }
 0x3cf   : > { %v3122_v61 = vpop.permute.xlu1 %3121 }
 0x3d0   : > { %7791 = vmatpush3.bf16.msra.mxu1 %v3118_v19 }
 0x3d1   : > { %7792 = vmatprep.subr.bf16.mxu1 %v3120_v24 }
 0x3d3   : > { %7769 = vmatmul.mubr.msk.bf16.gmra.mrb[84].mxu1 %vm1138_vm1, %v2548_v38  ;;  %v10017_v50 = vpop.permute.xlu1 %3208 }
 0x3d4   : > { %7793 = vmatpush3.bf16.msra.mxu1 %v3120_v24  ;;  %7804 = vmatprep.subr.bf16.mxu0 %v10017_v50 }
 0x3d5   : > { %7794 = vmatprep.subr.bf16.mxu1 %v3122_v61 }
 0x3d8   : > { %7795 = vmatpush3.bf16.msra.mxu1 %v3122_v61 }
 0x400   : > { %v10020_v53 = vpop.f32.mrb[72].mxu0 }
 0x401   : > { %12407 = vst [vmem:[#allocation52_spill] sm:$0xff] %v10020_v53  ;;  %v10022_v4 = vpop.f32.mrb[73].mxu0 }
 0x402   : > { %12408 = vst [vmem:[#allocation47_spill] sm:$0xff] %v10022_v4  ;;  %v10024_v39 = vpop.f32.mrb[74].mxu0 }
 0x403   : > { %12409 = vst [vmem:[#allocation46_spill] sm:$0xff] %v10024_v39  ;;  %v10028_v51 = vpop.f32.mrb[75].mxu0 }
 0x404   : > { %12410 = vst [vmem:[#allocation49_spill] sm:$0xff] %v10028_v51 }
 0x408   : > { %v10032_v59 = vpop.f32.mrb[76].mxu0 }
 0x409   : > { %12411 = vst [vmem:[#allocation50_spill] sm:$0xff] %v10032_v59  ;;  %v10034_v29 = vpop.f32.mrb[77].mxu0 }
 0x40a   : > { %12412 = vst [vmem:[#allocation48_spill] sm:$0xff] %v10034_v29  ;;  %v10036_v16 = vpop.f32.mrb[78].mxu0 }
 0x40b   : > { %12413 = vst [vmem:[#allocation57_spill] sm:$0xff] %v10036_v16  ;;  %v10040_v41 = vpop.f32.mrb[79].mxu0 }
 0x40c   : > { %12414 = vst [vmem:[#allocation56_spill] sm:$0xff] %v10040_v41 }
 0x422   : > { %v10044_v18 = vpop.f32.mrb[56].mxu1 }
 0x423   : > { %12415 = vst [vmem:[#allocation55_spill] sm:$0xff] %v10044_v18  ;;  %v10046_v56 = vpop.f32.mrb[57].mxu1 }
 0x424   : > { %12416 = vst [vmem:[#allocation53_spill] sm:$0xff] %v10046_v56  ;;  %v10048_v6 = vpop.f32.mrb[58].mxu1 }
 0x425   : > { %12417 = vst [vmem:[#allocation54_spill] sm:$0xff] %v10048_v6  ;;  %v10052_v32 = vpop.f32.mrb[59].mxu1 }
 0x426   : > { %12418 = vst [vmem:[#allocation59_spill] sm:$0xff] %v10052_v32  ;;  %v10056_v11 = vpop.f32.mrb[80].mxu0 }
 0x427   : > { %12419 = vst [vmem:[#allocation51_spill] sm:$0xff] %v10056_v11  ;;  %v10058_v30 = vpop.f32.mrb[81].mxu0 }
 0x428   : > { %12420 = vst [vmem:[#allocation58_spill] sm:$0xff] %v10058_v30  ;;  %v10060_v22 = vpop.f32.mrb[82].mxu0 }
 0x429   : > { %12421 = vst [vmem:[#allocation60_spill] sm:$0xff] %v10060_v22  ;;  %v10064_v57 = vpop.f32.mrb[83].mxu0 }
 0x42a   : > { %12422 = vst [vmem:[#allocation61_spill] sm:$0xff] %v10064_v57 }
 0x432   : > { %v10068_v25 = vpop.f32.mrb[60].mxu1 }
 0x433   : > { %12423 = vst [vmem:[#allocation62_spill] sm:$0xff] %v10068_v25  ;;  %v10070_v40 = vpop.f32.mrb[61].mxu1 }
 0x434   : > { %12424 = vst [vmem:[#allocation63_spill] sm:$0xff] %v10070_v40  ;;  %v10072_v7 = vpop.f32.mrb[62].mxu1 }
 0x435   : > { %12425 = vst [vmem:[#allocation64_spill] sm:$0xff] %v10072_v7  ;;  %v10076_v1 = vpop.f32.mrb[63].mxu1 }
 0x436   : > { %12426 = vst [vmem:[#allocation65_spill] sm:$0xff] %v10076_v1  ;;  %v10080_v60 = vpop.f32.mrb[84].mxu0 }
 0x437   : > { %12427 = vst [vmem:[#allocation66_spill] sm:$0xff] %v10080_v60  ;;  %v10082_v28 = vpop.f32.mrb[85].mxu0 }
 0x438   : > { %12428 = vst [vmem:[#allocation67_spill] sm:$0xff] %v10082_v28  ;;  %v10084_v19 = vpop.f32.mrb[86].mxu0 }
 0x439   : > { %12429 = vst [vmem:[#allocation68_spill] sm:$0xff] %v10084_v19  ;;  %v10088_v2 = vpop.f32.mrb[87].mxu0 }
 0x43a   : > { %12430 = vst [vmem:[#allocation69_spill] sm:$0xff] %v10088_v2  ;;  %v10169_v2 = vld [vmem:[%s12193_s9 + $0x68] sm:$0xff] }
 0x43e   : > { %v10092_v24 = vpop.f32.mrb[64].mxu1 }
 0x43f   : > { %12431 = vst [vmem:[#allocation70_spill] sm:$0xff] %v10092_v24  ;;  %v10094_v61 = vpop.f32.mrb[65].mxu1 }
 0x440   : > { %12432 = vst [vmem:[#allocation71_spill] sm:$0xff] %v10094_v61  ;;  %v10096_v15 = vpop.f32.mrb[66].mxu1 }
 0x441   : > { %12433 = vst [vmem:[#allocation72_spill] sm:$0xff] %v10096_v15  ;;  %v10100_v38 = vpop.f32.mrb[67].mxu1 }
 0x442   : > { %12434 = vst [vmem:[#allocation73_spill] sm:$0xff] %v10100_v38 }
 0x446   : > { %v7718_v49 = vpop.f32.mrb[88].mxu0 }
 0x447   : > { %v10120_v55 = vadd.f32 %v7718_v49, %v10107_v45  ;;  %v2280_v54 = vpop.f32.mrb[89].mxu0 }
 0x448   : > { %v7719_v17 = vpop.f32.mrb[90].mxu0  ;;  %v10128_v36 = vadd.f32 %v10112_v42, %v2280_v54  ;;  %v10147_v54 = vld [vmem:[%s12193_s9 + $0x70] sm:$0xff] }
 0x449   : > { %v10131_v27 = vadd.f32 %v7719_v17, %v10117_v43  ;;  %v2283_v24 = vpop.f32.mrb[91].mxu0  ;;  %v2656_v15 = vsel %vm1495_vm2, %v10120_v55, -inf }
 0x44a   : > { %2657 = vmax.xlane.f32.xlu0 %v2656_v15  ;;  %v10136_v49 = vadd.f32 %v10125_v46, %v2283_v24  ;;  %v2650_v38 = vsel %vm1495_vm2, %v10128_v36, -inf  ;;  %v10152_v24 = vld [vmem:[%s12193_s9 + $0x60] sm:$0xff] }
 0x44b   : > { %v2659_v61 = vsel %vm1495_vm2, %v10131_v27, -inf }
 0x44c   : > { %2660 = vmax.xlane.f32.xlu1 %v2659_v61  ;;  %v2653_v17 = vsel %vm1495_vm2, %v10136_v49, -inf  ;;  %v10157_v61 = vld [vmem:[%s12193_s9 + $0x78] sm:$0xff] }
 0x44e   : > { %2651 = vmax.xlane.f32.xlu0 %v2650_v38 }
 0x450   : > { %2654 = vmax.xlane.f32.xlu1 %v2653_v17 }
 0x475   : > { %v7722_v15 = vpop.f32.mrb[92].mxu0 }
 0x476   : > { %v10160_v38 = vadd.f32 %v7722_v15, %v10147_v54  ;;  %v10162_v17 = vpop.f32.mrb[68].mxu1  ;;  %v2296_v60 = vpop.f32.mrb[93].mxu0 }
 0x477   : > { %12435 = vst [vmem:[#allocation74_spill] sm:$0xff] %v10162_v17  ;;  %v10164_v19 = vpop.f32.mrb[69].mxu1  ;;  %v7723_v28 = vpop.f32.mrb[94].mxu0  ;;  %v10172_v11 = vadd.f32 %v10152_v24, %v2296_v60 }
 0x478   : > { %12436 = vst [vmem:[#allocation75_spill] sm:$0xff] %v10164_v19  ;;  %v10175_v22 = vadd.f32 %v7723_v28, %v10157_v61  ;;  %v10177_v30 = vpop.f32.mrb[70].mxu1  ;;  %v2299_v15 = vpop.f32.mrb[95].mxu0  ;;  %v2668_v57 = vsel %vm1495_vm2, %v10160_v38, -inf }
 0x479   : > { %12437 = vst [vmem:[#allocation76_spill] sm:$0xff] %v10177_v30  ;;  %v10183_v7 = vpop.f32.mrb[71].mxu1  ;;  %2669 = vmax.xlane.f32.xlu0 %v2668_v57  ;;  %v10186_v40 = vadd.f32 %v10169_v2, %v2299_v15  ;;  %v2662_v1 = vsel %vm1495_vm2, %v10172_v11, -inf }
 0x47a   : > { %12438 = vst [vmem:[#allocation77_spill] sm:$0xff] %v10183_v7  ;;  %v2671_v28 = vsel %vm1495_vm2, %v10175_v22, -inf }
 0x47b   : > { %2672 = vmax.xlane.f32.xlu1 %v2671_v28  ;;  %v2665_v25 = vsel %vm1495_vm2, %v10186_v40, -inf }
 0x47d   : > { %2663 = vmax.xlane.f32.xlu0 %v2662_v1 }
 0x47e   : > { %v7734_v18 = vpop.f32.mrb[72].mxu1 }
 0x47f   : > { %v10197_v57 = vadd.f32 %v7734_v18, %v10107_v45  ;;  %v2393_v15 = vpop.f32.mrb[73].mxu1  ;;  %2666 = vmax.xlane.f32.xlu1 %v2665_v25 }
 0x480   : > { %v7735_v17 = vpop.f32.mrb[74].mxu1  ;;  %v10215_v32 = vadd.f32 %v10112_v42, %v2393_v15 }
 0x481   : > { %v10200_v60 = vadd.f32 %v7735_v17, %v10117_v43  ;;  %v2396_v30 = vpop.f32.mrb[75].mxu1  ;;  %v7750_v19 = vpop.f32.mrb[96].mxu0  ;;  %v2680_v28 = vsel %vm1495_vm2, %v10197_v57, -inf }
 0x482   : > { %v10205_v1 = vadd.f32 %v7750_v19, %v10107_v45  ;;  %2681 = vmax.xlane.f32.xlu0 %v2680_v28  ;;  %v2506_v7 = vpop.f32.mrb[97].mxu0  ;;  %v2674_v15 = vsel %vm1495_vm2, %v10215_v32, -inf  ;;  %v10236_v4 = vadd.f32 %v10125_v46, %v2396_v30 }
 0x483   : > { %v7751_v6 = vpop.f32.mrb[98].mxu0  ;;  %v2683_v18 = vsel %vm1495_vm2, %v10200_v60, -inf }
 0x484   : > { %v10210_v25 = vadd.f32 %v7751_v6, %v10117_v43  ;;  %2684 = vmax.xlane.f32.xlu1 %v2683_v18  ;;  %v2509_v17 = vpop.f32.mrb[99].mxu0  ;;  %v2704_v56 = vsel %vm1495_vm2, %v10205_v1, -inf  ;;  %v10223_v6 = vadd.f32 %v10112_v42, %v2506_v7 }
 0x485   : > { %v10220_v28 = vadd.f32 %v10125_v46, %v2509_v17 }
 0x486   : > { %v7738_v59 = vpop.f32.mrb[76].mxu1  ;;  %2705 = vmax.xlane.f32.xlu0 %v2704_v56  ;;  %v2707_v19 = vsel %vm1495_vm2, %v10210_v25, -inf  ;;  %v2698_v51 = vsel %vm1495_vm2, %v10223_v6, -inf }
 0x487   : > { %v2409_v16 = vpop.f32.mrb[77].mxu1 }
 0x488   : > { %v7739_v29 = vpop.f32.mrb[78].mxu1  ;;  %2708 = vmax.xlane.f32.xlu1 %v2707_v19  ;;  %v2701_v19 = vsel %vm1495_vm2, %v10220_v28, -inf }
 0x489   : > { %v2412_v18 = vpop.f32.mrb[79].mxu1  ;;  %v7754_v41 = vpop.f32.mrb[100].mxu0  ;;  %v10228_v56 = vadd.f32 %v7739_v29, %v10157_v61  ;;  %v10246_v29 = vadd.f32 %v7738_v59, %v10147_v54 }
 0x48a   : > { %2675 = vmax.xlane.f32.xlu0 %v2674_v15  ;;  %v2522_v53 = vpop.f32.mrb[101].mxu0  ;;  %v10251_v30 = vadd.f32 %v10169_v2, %v2412_v18  ;;  %v10266_v18 = vadd.f32 %v10152_v24, %v2409_v16 }
 0x48b   : > { %v10231_v39 = vadd.f32 %v10152_v24, %v2522_v53  ;;  %v7755_v17 = vpop.f32.mrb[102].mxu0  ;;  %v2695_v53 = vsel %vm1495_vm2, %v10228_v56, -inf }
 0x48c   : > { %2702 = vmax.xlane.f32.xlu1 %v2701_v19  ;;  %v2525_v7 = vpop.f32.mrb[103].mxu0  ;;  %v10241_v15 = vadd.f32 %v7755_v17, %v10157_v61  ;;  %v2677_v19 = vsel %vm1495_vm2, %v10236_v4, -inf  ;;  %v10256_v17 = vadd.f32 %v7754_v41, %v10147_v54 }
 0x48d   : > { %v10261_v59 = vadd.f32 %v10169_v2, %v2525_v7 }
 0x48e   : > { %2699 = vmax.xlane.f32.xlu0 %v2698_v51  ;;  %v2719_v51 = vsel %vm1495_vm2, %v10241_v15, -inf }
 0x48f   : > { %v2713_v41 = vsel %vm1495_vm2, %v10261_v59, -inf }
 0x490   : > { %2696 = vmax.xlane.f32.xlu1 %v2695_v53  ;;  %v2692_v53 = vsel %vm1495_vm2, %v10246_v29, -inf }
 0x492   : > { %2678 = vmax.xlane.f32.xlu0 %v2677_v19  ;;  %v2689_v19 = vsel %vm1495_vm2, %v10251_v30, -inf }
 0x494   : > { %2720 = vmax.xlane.f32.xlu1 %v2719_v51  ;;  %v2716_v51 = vsel %vm1495_vm2, %v10256_v17, -inf }
 0x496   : > { %2693 = vmax.xlane.f32.xlu0 %v2692_v53  ;;  %v2686_v53 = vsel %vm1495_vm2, %v10266_v18, -inf }
 0x498   : > { %2690 = vmax.xlane.f32.xlu1 %v2689_v19 }
 0x49a   : > { %2717 = vmax.xlane.f32.xlu0 %v2716_v51 }
 0x49c   : > { %2714 = vmax.xlane.f32.xlu1 %v2713_v41 }
 0x49e   : > { %v7766_v7 = vpop.f32.mrb[80].mxu1  ;;  %2687 = vmax.xlane.f32.xlu0 %v2686_v53 }
 0x49f   : > { %v2619_v34 = vpop.f32.mrb[81].mxu1 }
 0x4a0   : > { %v7767_v58 = vpop.f32.mrb[82].mxu1 }
 0x4a1   : > { %v10275_v19 = vadd.f32 %v7767_v58, %v10117_v43  ;;  %v2622_v16 = vpop.f32.mrb[83].mxu1 }
 0x4a2   : > { %v10278_v31 = vadd.f32 %v10125_v46, %v2622_v16 }
 0x4a3   : > { %v2731_v51 = vsel %vm1495_vm2, %v10275_v19, -inf }
 0x4a4   : > { %2732 = vmax.xlane.f32.xlu1 %v2731_v51  ;;  %v2725_v53 = vsel %vm1495_vm2, %v10278_v31, -inf }
 0x4a6   : > { %v7770_v14 = vpop.f32.mrb[84].mxu1 }
 0x4a7   : > { %v10283_v41 = vadd.f32 %v7770_v14, %v10147_v54  ;;  %v2635_v8 = vpop.f32.mrb[85].mxu1 }
 0x4a8   : > { %v10288_v37 = vadd.f32 %v10152_v24, %v2635_v8  ;;  %2726 = vmax.xlane.f32.xlu1 %v2725_v53  ;;  %v7771_v58 = vpop.f32.mrb[86].mxu1  ;;  %v10305_v8 = vadd.f32 %v7766_v7, %v10107_v45  ;;  %v10309_v24 = vpop.permute.xlu1 %3210 }
 0x4a9   : > { %v10291_v46 = vadd.f32 %v7771_v58, %v10157_v61  ;;  %v2638_v43 = vpop.f32.mrb[87].mxu1  ;;  %v10312_v61 = vadd.f32 %v10112_v42, %v2619_v34 }
 0x4aa   : > { %v10294_v16 = vadd.f32 %v10169_v2, %v2638_v43  ;;  %v2710_v2 = vsel %vm1495_vm2, %v10231_v39, -inf  ;;  %v2728_v51 = vsel %vm1495_vm2, %v10305_v8, -inf }
 0x4ab   : > { %v2743_v14 = vsel %vm1495_vm2, %v10291_v46, -inf  ;;  %v2722_v7 = vsel %vm1495_vm2, %v10312_v61, -inf }
 0x4ac   : > { %2744 = vmax.xlane.f32.xlu1 %v2743_v14  ;;  %v2737_v54 = vsel %vm1495_vm2, %v10294_v16, -inf }
 0x4b0   : > { %2738 = vmax.xlane.f32.xlu1 %v2737_v54 }
 0x4b4   : > { %3212 = vrot.lane.b32.xlu0 %v12377_v62, %s8948_s18 }
 0x4c1   : > { %3214 = vrot.lane.b32.xlu1 %v12380_v26, %s8948_s18 }
 0x4d3   : > { %2711 = vmax.xlane.f32.xlu0 %v2710_v2 }
 0x4d7   : > { %v2658_v53 = vpop.xlane.xlu0 %2657  ;;  %2729 = vmax.xlane.f32.xlu0 %v2728_v51 }
 0x4d8   : > { %v2748_v58 = vsub.f32 %v10120_v55, %v2658_v53  ;;  %v2740_v55 = vsel %vm1495_vm2, %v10283_v41, -inf  ;;  %v2734_v53 = vsel %vm1495_vm2, %v10288_v37, -inf }
 0x4d9   : > { %v2661_v43 = vpop.xlane.xlu1 %2660 }
 0x4da   : > { %v2782_v14 = vmul.f32 1.442695, %v2748_v58  ;;  %v2749_v45 = vsub.f32 %v10131_v27, %v2661_v43 }
 0x4db   : > { %v2652_v54 = vpop.xlane.xlu0 %2651  ;;  %2723 = vmax.xlane.f32.xlu0 %v2722_v7 }
 0x4dc   : > { %8556 = vpow2.f32 %v2782_v14  ;;  %v2784_v2 = vmul.f32 1.442695, %v2749_v45  ;;  %v2746_v34 = vsub.f32 %v10128_v36, %v2652_v54 }
 0x4dd   : > { %v2655_v42 = vpop.xlane.xlu1 %2654 }
 0x4de   : > { %8558 = vpow2.f32 %v2784_v2  ;;  %v2778_v62 = vmul.f32 1.442695, %v2746_v34  ;;  %v2747_v51 = vsub.f32 %v10136_v49, %v2655_v42 }
 0x4df   : > { %2741 = vmax.xlane.f32.xlu0 %v2740_v55 }
 0x4e0   : > { %8560 = vpow2.f32 %v2778_v62  ;;  %v2780_v27 = vmul.f32 1.442695, %v2747_v51 }
 0x4e2   : > { %8562 = vpow2.f32 %v2780_v27 }
 0x4e3   : > { %2735 = vmax.xlane.f32.xlu0 %v2734_v53 }
 0x4e6   : > { %v10326_v58 = vpop.eup %8556 }
 0x4e7   : > { %v2848_v36 = vsel %vm1495_vm2, %v10326_v58, 0.0 }
 0x4e8   : > { %v10330_v43 = vpop.eup %8558  ;;  %2849 = vadd.xlane.f32.xlu0 %v2848_v36 }
 0x4e9   : > { %v2851_v49 = vsel %vm1495_vm2, %v10330_v43, 0.0 }
 0x4ea   : > { %v10334_v14 = vpop.eup %8560  ;;  %2852 = vadd.xlane.f32.xlu1 %v2851_v49 }
 0x4eb   : > { %v2842_v62 = vsel %vm1495_vm2, %v10334_v14, 0.0 }
 0x4ec   : > { %v10338_v45 = vpop.eup %8562  ;;  %2843 = vadd.xlane.f32.xlu0 %v2842_v62 }
 0x4ed   : > { %v2845_v7 = vsel %vm1495_vm2, %v10338_v45, 0.0 }
 0x4ee   : > { %2846 = vadd.xlane.f32.xlu1 %v2845_v7 }
 0x506   : > { %v2670_v54 = vpop.xlane.xlu0 %2669 }
 0x507   : > { %v2752_v2 = vsub.f32 %v10160_v38, %v2670_v54 }
 0x508   : > { %v2673_v34 = vpop.xlane.xlu1 %2672 }
 0x509   : > { %v2790_v42 = vmul.f32 1.442695, %v2752_v2  ;;  %v2753_v51 = vsub.f32 %v10175_v22, %v2673_v34 }
 0x50a   : > { %v2664_v55 = vpop.xlane.xlu0 %2663 }
 0x50b   : > { %8564 = vpow2.f32 %v2790_v42  ;;  %v2792_v27 = vmul.f32 1.442695, %v2753_v51  ;;  %v2750_v53 = vsub.f32 %v10172_v11, %v2664_v55 }
 0x50c   : > { %v2667_v36 = vpop.xlane.xlu1 %2666 }
 0x50d   : > { %8566 = vpow2.f32 %v2792_v27  ;;  %v2786_v49 = vmul.f32 1.442695, %v2750_v53  ;;  %v2751_v62 = vsub.f32 %v10186_v40, %v2667_v36 }
 0x50f   : > { %8568 = vpow2.f32 %v2786_v49  ;;  %v2788_v26 = vmul.f32 1.442695, %v2751_v62  ;;  %v2682_v7 = vpop.xlane.xlu0 %2681 }
 0x510   : > { %v2756_v9 = vsub.f32 %v10197_v57, %v2682_v7 }
 0x511   : > { %8570 = vpow2.f32 %v2788_v26  ;;  %v2685_v38 = vpop.xlane.xlu1 %2684 }
 0x512   : > { %v2798_v54 = vmul.f32 1.442695, %v2756_v9  ;;  %v2757_v27 = vsub.f32 %v10200_v60, %v2685_v38 }
 0x513   : > { %v2706_v2 = vpop.xlane.xlu0 %2705 }
 0x514   : > { %8572 = vpow2.f32 %v2798_v54  ;;  %v2764_v22 = vsub.f32 %v10205_v1, %v2706_v2  ;;  %v2800_v38 = vmul.f32 1.442695, %v2757_v27 }
 0x515   : > { %v10348_v34 = vpop.eup %8564  ;;  %v2709_v11 = vpop.xlane.xlu1 %2708 }
 0x516   : > { %v2814_v42 = vmul.f32 1.442695, %v2764_v22  ;;  %v2860_v51 = vsel %vm1495_vm2, %v10348_v34, 0.0 }
 0x517   : > { %v10352_v40 = vpop.eup %8566  ;;  %2861 = vadd.xlane.f32.xlu0 %v2860_v51  ;;  %v2676_v55 = vpop.xlane.xlu0 %2675 }
 0x518   : > { %8574 = vpow2.f32 %v2814_v42  ;;  %v2754_v26 = vsub.f32 %v10215_v32, %v2676_v55  ;;  %v2863_v9 = vsel %vm1495_vm2, %v10352_v40, 0.0 }
 0x519   : > { %v10357_v57 = vpop.eup %8568  ;;  %v2703_v1 = vpop.xlane.xlu1 %2702  ;;  %2864 = vadd.xlane.f32.xlu1 %v2863_v9 }
 0x51a   : > { %v2794_v53 = vmul.f32 1.442695, %v2754_v26  ;;  %v2763_v36 = vsub.f32 %v10220_v28, %v2703_v1  ;;  %v2854_v49 = vsel %vm1495_vm2, %v10357_v57, 0.0  ;;  %v2765_v28 = vsub.f32 %v10210_v25, %v2709_v11 }
 0x51b   : > { %v10363_v62 = vpop.eup %8570  ;;  %2855 = vadd.xlane.f32.xlu0 %v2854_v49  ;;  %v2700_v7 = vpop.xlane.xlu0 %2699 }
 0x51c   : > { %8576 = vpow2.f32 %v2794_v53  ;;  %v2812_v32 = vmul.f32 1.442695, %v2763_v36  ;;  %v2762_v54 = vsub.f32 %v10223_v6, %v2700_v7  ;;  %v2857_v2 = vsel %vm1495_vm2, %v10363_v62, 0.0 }
 0x51d   : > { %v2697_v22 = vpop.xlane.xlu1 %2696  ;;  %2858 = vadd.xlane.f32.xlu1 %v2857_v2  ;;  %v2816_v9 = vmul.f32 1.442695, %v2765_v28 }
 0x51e   : > { %v10368_v60 = vpop.eup %8572  ;;  %8578 = vpow2.f32 %v2812_v32  ;;  %v2810_v42 = vmul.f32 1.442695, %v2762_v54  ;;  %v2761_v49 = vsub.f32 %v10228_v56, %v2697_v22 }
 0x51f   : > { %v2679_v51 = vpop.xlane.xlu0 %2678  ;;  %v2872_v55 = vsel %vm1495_vm2, %v10368_v60, 0.0 }
 0x520   : > { %8580 = vpow2.f32 %v2810_v42  ;;  %2873 = vadd.xlane.f32.xlu0 %v2872_v55  ;;  %v2755_v1 = vsub.f32 %v10236_v4, %v2679_v51  ;;  %v2808_v28 = vmul.f32 1.442695, %v2761_v49 }
 0x521   : > { %v10373_v26 = vpop.xlane.xlu1 %2720  ;;  %8582 = vpow2.f32 %v2800_v38 }
 0x522   : > { %v10375_v6 = vpop.eup %8574  ;;  %8584 = vpow2.f32 %v2816_v9  ;;  %v2796_v7 = vmul.f32 1.442695, %v2755_v1 }
 0x523   : > { %v2694_v53 = vpop.xlane.xlu0 %2693  ;;  %v2896_v25 = vsel %vm1495_vm2, %v10375_v6, 0.0 }
 0x524   : > { %v2760_v11 = vsub.f32 %v10246_v29, %v2694_v53  ;;  %2897 = vadd.xlane.f32.xlu0 %v2896_v25 }
 0x525   : > { %v2691_v27 = vpop.xlane.xlu1 %2690 }
 0x526   : > { %v10381_v36 = vpop.eup %8576  ;;  %v2806_v32 = vmul.f32 1.442695, %v2760_v11  ;;  %v2759_v42 = vsub.f32 %v10251_v30, %v2691_v27 }
 0x527   : > { %v2718_v54 = vpop.xlane.xlu0 %2717  ;;  %v2866_v2 = vsel %vm1495_vm2, %v10381_v36, 0.0 }
 0x528   : > { %v10386_v4 = vpop.eup %8578  ;;  %8586 = vpow2.f32 %v2806_v32  ;;  %v2768_v38 = vsub.f32 %v10256_v17, %v2718_v54  ;;  %2867 = vadd.xlane.f32.xlu0 %v2866_v2  ;;  %v2804_v53 = vmul.f32 1.442695, %v2759_v42 }
 0x529   : > { %8588 = vpow2.f32 %v2796_v7  ;;  %v2715_v56 = vpop.xlane.xlu1 %2714  ;;  %v2893_v55 = vsel %vm1495_vm2, %v10386_v4, 0.0 }
 0x52a   : > { %v10389_v29 = vpop.eup %8580  ;;  %v2822_v51 = vmul.f32 1.442695, %v2768_v38  ;;  %v2767_v30 = vsub.f32 %v10261_v59, %v2715_v56 }
 0x52b   : > { %v2688_v22 = vpop.xlane.xlu0 %2687  ;;  %v2890_v9 = vsel %vm1495_vm2, %v10389_v29, 0.0  ;;  %v10396_v1 = vpop.eup %8582 }
 0x52c   : > { %8590 = vpow2.f32 %v2822_v51  ;;  %v2758_v17 = vsub.f32 %v10266_v18, %v2688_v22  ;;  %2894 = vadd.xlane.f32.xlu0 %v2893_v55  ;;  %2891 = vadd.xlane.f32.xlu1 %v2890_v9  ;;  %v2875_v11 = vsel %vm1495_vm2, %v10396_v1, 0.0  ;;  %v10402_v27 = vpop.eup %8584  ;;  %v2820_v7 = vmul.f32 1.442695, %v2767_v30 }
 0x52d   : > { %8592 = vpow2.f32 %v2808_v28  ;;  %v2899_v18 = vsel %vm1495_vm2, %v10402_v27, 0.0 }
 0x52e   : > { %v2802_v25 = vmul.f32 1.442695, %v2758_v17 }
 0x52f   : > { %v10434_v30 = vpop.permute.xlu0 %3212 }
 0x530   : > { %8594 = vpow2.f32 %v2802_v25  ;;  %2876 = vadd.xlane.f32.xlu1 %v2875_v11  ;;  %v2769_v25 = vsub.f32 %v10241_v15, %v10373_v26 }
 0x531   : > { %8596 = vpow2.f32 %v2804_v53  ;;  %v2733_v53 = vpop.xlane.xlu1 %2732 }
 0x532   : > { %v10404_v49 = vpop.eup %8586  ;;  %8598 = vpow2.f32 %v2820_v7 }
 0x533   : > { %12439 = vst [vmem:[#allocation78_spill] sm:$0xff] %v10404_v49  ;;  %v2884_v32 = vsel %vm1495_vm2, %v10404_v49, 0.0  ;;  %v10410_v54 = vpop.eup %8588 }
 0x534   : > { %2900 = vadd.xlane.f32.xlu1 %v2899_v18  ;;  %2885 = vadd.xlane.f32.xlu0 %v2884_v32  ;;  %v2869_v2 = vsel %vm1495_vm2, %v10410_v54, 0.0  ;;  %v2824_v32 = vmul.f32 1.442695, %v2769_v25 }
 0x535   : > { %v2727_v7 = vpop.xlane.xlu1 %2726 }
 0x536   : > { %v10412_v59 = vpop.eup %8590  ;;  %v2771_v15 = vsub.f32 %v10278_v31, %v2727_v7 }
 0x537   : > { %12440 = vst [vmem:[#allocation79_spill] sm:$0xff] %v10412_v59  ;;  %v2908_v38 = vsel %vm1495_vm2, %v10412_v59, 0.0  ;;  %v10418_v28 = vpop.eup %8592 }
 0x538   : > { %2870 = vadd.xlane.f32.xlu1 %v2869_v2  ;;  %2909 = vadd.xlane.f32.xlu0 %v2908_v38  ;;  %v2887_v51 = vsel %vm1495_vm2, %v10418_v28, 0.0 }
 0x53a   : > { %v10420_v42 = vpop.eup %8594 }
 0x53b   : > { %v2878_v56 = vsel %vm1495_vm2, %v10420_v42, 0.0  ;;  %v10426_v22 = vpop.eup %8596 }
 0x53c   : > { %2888 = vadd.xlane.f32.xlu1 %v2887_v51  ;;  %2879 = vadd.xlane.f32.xlu0 %v2878_v56  ;;  %v2881_v55 = vsel %vm1495_vm2, %v10426_v22, 0.0  ;;  %v10430_v9 = vpop.eup %8598  ;;  %v2773_v56 = vsub.f32 %v10275_v19, %v2733_v53 }
 0x53d   : > { %12441 = vst [vmem:[#allocation80_spill] sm:$0xff] %v10430_v9  ;;  %v2905_v17 = vsel %vm1495_vm2, %v10430_v9, 0.0 }
 0x53e   : > { %v2832_v49 = vmul.f32 1.442695, %v2773_v56 }
 0x540   : > { %2882 = vadd.xlane.f32.xlu1 %v2881_v55  ;;  %v2745_v55 = vpop.xlane.xlu1 %2744 }
 0x541   : > { %v2777_v19 = vsub.f32 %v10291_v46, %v2745_v55 }
 0x544   : > { %2906 = vadd.xlane.f32.xlu1 %v2905_v17  ;;  %v2739_v25 = vpop.xlane.xlu1 %2738 }
 0x548   : > { %v3215_v7 = vpop.permute.xlu1 %3214 }
 0x560   : > { %v2712_v11 = vpop.xlane.xlu0 %2711 }
 0x561   : > { %v2766_v18 = vsub.f32 %v10231_v39, %v2712_v11 }
 0x563   : > { %v2818_v2 = vmul.f32 1.442695, %v2766_v18 }
 0x564   : > { %v2730_v38 = vpop.xlane.xlu0 %2729 }
 0x565   : > { %8600 = vpow2.f32 %v2818_v2  ;;  %v2772_v51 = vsub.f32 %v10305_v8, %v2730_v38  ;;  %v2828_v8 = vmul.f32 1.442695, %v2771_v15 }
 0x566   : > { %8602 = vpow2.f32 %v2824_v32  ;;  %v2775_v32 = vsub.f32 %v10294_v16, %v2739_v25 }
 0x567   : > { %v2830_v17 = vmul.f32 1.442695, %v2772_v51 }
 0x568   : > { %v2724_v59 = vpop.xlane.xlu0 %2723  ;;  %v2836_v2 = vmul.f32 1.442695, %v2775_v32 }
 0x569   : > { %v2770_v9 = vsub.f32 %v10312_v61, %v2724_v59  ;;  %8604 = vpow2.f32 %v2830_v17 }
 0x56b   : > { %v2826_v26 = vmul.f32 1.442695, %v2770_v9 }
 0x56c   : > { %v2742_v39 = vpop.xlane.xlu0 %2741 }
 0x56d   : > { %8606 = vpow2.f32 %v2826_v26  ;;  %v2776_v11 = vsub.f32 %v10283_v41, %v2742_v39  ;;  %v2840_v41 = vmul.f32 1.442695, %v2777_v19 }
 0x56e   : > { %8608 = vpow2.f32 %v2832_v49 }
 0x56f   : > { %v10444_v18 = vpop.eup %8600  ;;  %v2838_v53 = vmul.f32 1.442695, %v2776_v11 }
 0x570   : > { %v2736_v61 = vpop.xlane.xlu0 %2735  ;;  %v2902_v31 = vsel %vm1495_vm2, %v10444_v18, 0.0  ;;  %v10450_v59 = vpop.eup %8602 }
 0x571   : > { %8610 = vpow2.f32 %v2838_v53  ;;  %v2774_v9 = vsub.f32 %v10288_v37, %v2736_v61  ;;  %2903 = vadd.xlane.f32.xlu0 %v2902_v31  ;;  %v2911_v46 = vsel %vm1495_vm2, %v10450_v59, 0.0 }
 0x572   : > { %8612 = vpow2.f32 %v2828_v8 }
 0x573   : > { %v2834_v49 = vmul.f32 1.442695, %v2774_v9  ;;  %v10455_v38 = vpop.eup %8604 }
 0x574   : > { %v2920_v37 = vsel %vm1495_vm2, %v10455_v38, 0.0 }
 0x575   : > { %8614 = vpow2.f32 %v2834_v49  ;;  %v2850_v16 = vpop.xlane.xlu0 %2849  ;;  %2912 = vadd.xlane.f32.xlu0 %v2911_v46 }
 0x576   : > { %8616 = vpow2.f32 %v2840_v41 }
 0x577   : > { %v10457_v51 = vpop.eup %8606  ;;  %v2853_v56 = vpop.xlane.xlu1 %2852  ;;  %8618 = vpow2.f32 %v2836_v2 }
 0x578   : > { %v2914_v55 = vsel %vm1495_vm2, %v10457_v51, 0.0  ;;  %v10463_v17 = vpop.eup %8608  ;;  %8620 = vrcp.f32 %v2853_v56 }
 0x579   : > { %v2844_v15 = vpop.xlane.xlu0 %2843  ;;  %2921 = vadd.xlane.f32.xlu0 %v2920_v37  ;;  %2915 = vadd.xlane.f32.xlu1 %v2914_v55  ;;  %v2923_v25 = vsel %vm1495_vm2, %v10463_v17, 0.0 }
 0x57a   : > { %8622 = vrcp.f32 %v2844_v15 }
 0x57b   : > { %v10465_v26 = vpop.eup %8610  ;;  %8624 = vrcp.f32 %v2850_v16  ;;  %v2847_v39 = vpop.xlane.xlu1 %2846 }
 0x57c   : > { %8626 = vrcp.f32 %v2847_v39  ;;  %v2932_v11 = vsel %vm1495_vm2, %v10465_v26, 0.0  ;;  %v10471_v8 = vpop.eup %8612 }
 0x57d   : > { %2924 = vadd.xlane.f32.xlu0 %v2923_v25  ;;  %2933 = vadd.xlane.f32.xlu1 %v2932_v11  ;;  %v2917_v53 = vsel %vm1495_vm2, %v10471_v8, 0.0 }
 0x57f   : > { %v10473_v19 = vpop.eup %8614 }
 0x580   : > { %v2926_v32 = vsel %vm1495_vm2, %v10473_v19, 0.0  ;;  %v10479_v61 = vpop.eup %8616 }
 0x581   : > { %2918 = vadd.xlane.f32.xlu0 %v2917_v53  ;;  %2927 = vadd.xlane.f32.xlu1 %v2926_v32  ;;  %v10481_v31 = vpop.eup %8618  ;;  %v2935_v49 = vsel %vm1495_vm2, %v10479_v61, 0.0  ;;  %v12447_v53 = vld [vmem:[#allocation10_spill] sm:$0xff]  ;;  %v12448_v32 = vld [vmem:[#allocation5_spill] sm:$0xff] }
 0x582   : > { %v8621_v9 = vpop.eup %8620  ;;  %v2929_v15 = vsel %vm1495_vm2, %v10481_v31, 0.0 }
 0x583   : > { %v2973_v16 = vmul.f32 %v8621_v9, %v10330_v43  ;;  %v10523_v9 = vld [vmem:[%s12191_s7 + $0x4] sm:$0xf] }
 0x584   : > { %v8623_v41 = vpop.eup %8622 }
 0x585   : > { %v8625_v2 = vpop.eup %8624  ;;  %2936 = vadd.xlane.f32.xlu0 %v2935_v49  ;;  %v2970_v56 = vmul.f32 %v8623_v41, %v10334_v14  ;;  %v12449_v49 = vld [vmem:[#allocation4_spill] sm:$0xff] }
 0x586   : > { %v8627_v46 = vpop.eup %8626  ;;  %v2972_v55 = vmul.f32 %v8625_v2, %v10326_v58  ;;  %v12444_v58 = vld [vmem:[#allocation3_spill] sm:$0xff] }
 0x587   : > { %v2971_v37 = vmul.f32 %v8627_v46, %v10338_v45  ;;  %v12445_v45 = vld [vmem:[#allocation11_spill] sm:$0xff] }
 0x588   : > { %v3003_v25 = vpack.c.bf16 %v2973_v16, %v2972_v55 }
 0x589   : > { %2930 = vadd.xlane.f32.xlu0 %v2929_v15  ;;  %v3002_v39 = vpack.c.bf16 %v2971_v37, %v2970_v56  ;;  %v12450_v56 = vld [vmem:[#allocation15_spill] sm:$0xff] }
 0x58b   : > { %7780 = vmatprep.mubr.msk.bf16.mxu0 %vm1495_vm2, %v3002_v39 }
 0x58c   : > { %7781 = vmatmul.mubr.msk.bf16.vlgmr.msra.gmra.mrb[104].mxu0 %vm1495_vm2, %v3003_v25  ;;  %v12451_v25 = vld [vmem:[#allocation19_spill] sm:$0xff] }
 0x58d   : > { %7805 = vmatpush3.bf16.msra.mxu0 %v10017_v50  ;;  %v12442_v50 = vld [vmem:[#allocation2_spill] sm:$0xff] }
 0x58e   : > { %7806 = vmatprep.subr.bf16.mxu0 %v10309_v24 }
 0x591   : > { %7807 = vmatpush3.bf16.msra.mxu0 %v10309_v24  ;;  %v12443_v24 = vld [vmem:[#allocation6_spill] sm:$0xff] }
 0x592   : > { %7808 = vmatprep.subr.bf16.mxu0 %v10434_v30  ;;  %3303 = vrot.lane.b32.xlu1 %v12395_v52, %s8948_s18 }
 0x595   : > { %7809 = vmatpush3.bf16.msra.mxu0 %v10434_v30  ;;  %v12446_v30 = vld [vmem:[#allocation7_spill] sm:$0xff] }
 0x596   : > { %7810 = vmatprep.subr.bf16.mxu0 %v3215_v7  ;;  %3305 = vrot.lane.b32.xlu1 %v12396_v13, %s8948_s18 }
 0x599   : > { %7811 = vmatpush3.bf16.msra.mxu0 %v3215_v7 }
 0x59a   : > { %3307 = vrot.lane.b32.xlu1 %v12398_v23, %s8948_s18  ;;  %8358 = vmatprep.subr.msk.bf16.mxu0 %vm3455_vm3, %v10523_v9 }
 0x59e   : > { %3851 = vrot.lane.b32.xlu1 %v12442_v50, %s8949_s19 }
 0x59f   : > { %3301 = vrot.lane.b32.xlu0 %v12394_v12, %s8948_s18 }
 0x5a2   : > { %3855 = vrot.lane.b32.xlu1 %v12443_v24, %s8949_s19 }
 0x5a3   : > { %3849 = vrot.lane.b32.xlu0 %v12444_v58, %s8949_s19 }
 0x5a4   : > { %v2862_v43 = vpop.xlane.xlu0 %2861 }
 0x5a6   : > { %v2865_v14 = vpop.xlane.xlu1 %2864  ;;  %3954 = vrot.lane.b32.xlu1 %v12445_v45, %s8949_s19 }
 0x5a7   : > { %3853 = vrot.lane.b32.xlu0 %v12446_v30, %s8949_s19  ;;  %8628 = vrcp.f32 %v2865_v14 }
 0x5a8   : > { %v2856_v7 = vpop.xlane.xlu0 %2855 }
 0x5a9   : > { %8630 = vrcp.f32 %v2856_v7 }
 0x5aa   : > { %8632 = vrcp.f32 %v2862_v43  ;;  %v2859_v11 = vpop.xlane.xlu1 %2858  ;;  %3956 = vrot.lane.b32.xlu1 %v12447_v53, %s8949_s19 }
 0x5ab   : > { %8634 = vrcp.f32 %v2859_v11  ;;  %3841 = vrot.lane.b32.xlu0 %v12448_v32, %s8949_s19 }
 0x5ad   : > { %v2874_v41 = vpop.xlane.xlu0 %2873 }
 0x5ae   : > { %3845 = vrot.lane.b32.xlu1 %v9162_v0, %s8949_s19 }
 0x5af   : > { %3843 = vrot.lane.b32.xlu0 %v12449_v49, %s8949_s19 }
 0x5b1   : > { %v2898_v2 = vpop.xlane.xlu0 %2897  ;;  %v8629_v46 = vpop.eup %8628 }
 0x5b2   : > { %3847 = vrot.lane.b32.xlu1 %v9158_v63, %s8949_s19  ;;  %v2977_v39 = vmul.f32 %v8629_v46, %v10352_v40 }
 0x5b3   : > { %v8631_v16 = vpop.eup %8630  ;;  %3958 = vrot.lane.b32.xlu0 %v12450_v56, %s8949_s19 }
 0x5b4   : > { %v8633_v37 = vpop.eup %8632  ;;  %v2974_v43 = vmul.f32 %v8631_v16, %v10357_v57 }
 0x5b5   : > { %v8635_v55 = vpop.eup %8634  ;;  %v2868_v15 = vpop.xlane.xlu0 %2867  ;;  %v2976_v7 = vmul.f32 %v8633_v37, %v10348_v34 }
 0x5b6   : > { %4059 = vrot.lane.b32.xlu1 %v12451_v25, %s8949_s19  ;;  %v2975_v14 = vmul.f32 %v8635_v55, %v10363_v62  ;;  %v12493_v25 = vld [vmem:[#allocation55_spill] sm:$0xff] }
 0x5b7   : > { %3960 = vrot.lane.b32.xlu0 %v9201_v44, %s8949_s19  ;;  %v3005_v56 = vpack.c.bf16 %v2977_v39, %v2976_v7  ;;  %v12492_v44 = vld [vmem:[#allocation54_spill] sm:$0xff] }
 0x5b8   : > { %v3004_v11 = vpack.c.bf16 %v2975_v14, %v2974_v43 }
 0x5b9   : > { %v2892_v63 = vpop.xlane.xlu1 %2891  ;;  %v2895_v0 = vpop.xlane.xlu0 %2894 }
 0x5ba   : > { %8636 = vrcp.f32 %v2892_v63  ;;  %4061 = vrot.lane.b32.xlu1 %v9223_v5, %s8949_s19  ;;  %7784 = vmatprep.mubr.msk.bf16.mxu0 %vm1495_vm2, %v3004_v11  ;;  %v12453_v11 = vld [vmem:[#allocation25_spill] sm:$0xff] }
 0x5bb   : > { %8638 = vrcp.f32 %v2895_v0  ;;  %3946 = vrot.lane.b32.xlu0 %v9186_v21, %s8949_s19  ;;  %7785 = vmatmul.mubr.msk.bf16.gmra.mrb[108].mxu0 %vm1495_vm2, %v3005_v56 }
 0x5bc   : > { %8640 = vrcp.f32 %v2898_v2 }
 0x5bd   : > { %v2877_v40 = vpop.xlane.xlu1 %2876 }
 0x5be   : > { %3950 = vrot.lane.b32.xlu1 %v9208_v48, %s8949_s19  ;;  %v12481_v48 = vld [vmem:[#allocation52_spill] sm:$0xff] }
 0x5bf   : > { %3948 = vrot.lane.b32.xlu0 %v9182_v20, %s8949_s19 }
 0x5c1   : > { %v2901_v63 = vpop.xlane.xlu1 %2900  ;;  %v2886_v34 = vpop.xlane.xlu0 %2885 }
 0x5c2   : > { %8642 = vrcp.f32 %v2901_v63  ;;  %3952 = vrot.lane.b32.xlu1 %v9206_v47, %s8949_s19  ;;  %v12480_v47 = vld [vmem:[#allocation46_spill] sm:$0xff] }
 0x5c3   : > { %8644 = vrcp.f32 %v2877_v40  ;;  %4063 = vrot.lane.b32.xlu0 %v9260_v35, %s8949_s19  ;;  %v12487_v35 = vld [vmem:[#allocation50_spill] sm:$0xff] }
 0x5c4   : > { %v8637_v0 = vpop.eup %8636  ;;  %8646 = vrcp.f32 %v2868_v15 }
 0x5c5   : > { %v8639_v57 = vpop.eup %8638  ;;  %8648 = vrcp.f32 %v2874_v41  ;;  %v2871_v62 = vpop.xlane.xlu1 %2870  ;;  %v2986_v16 = vmul.f32 %v8637_v0, %v10389_v29  ;;  %v12452_v29 = vld [vmem:[#allocation21_spill] sm:$0xff]  ;;  %v12454_v0 = vld [vmem:[#allocation20_spill] sm:$0xff] }
 0x5c6   : > { %v10557_v46 = vpop.xlane.xlu0 %2909  ;;  %8650 = vrcp.f32 %v2871_v62  ;;  %4164 = vrot.lane.b32.xlu1 %v9290_v10, %s8949_s19  ;;  %v2987_v2 = vmul.f32 %v8639_v57, %v10386_v4  ;;  %v8641_v15 = vpop.eup %8640  ;;  %v12482_v10 = vpack.c.bf16 %v12480_v47, %v12481_v48 }
 0x5c7   : > { %4065 = vrot.lane.b32.xlu0 %v9257_v33, %s8949_s19  ;;  %v2988_v4 = vmul.f32 %v8641_v15, %v10375_v6  ;;  %v12458_v15 = vld [vmem:[#allocation24_spill] sm:$0xff] }
 0x5c8   : > { %v3010_v56 = vpack.c.bf16 %v2987_v2, %v2986_v16  ;;  %v12455_v2 = vld [vmem:[#allocation30_spill] sm:$0xff] }
 0x5c9   : > { %v2889_v37 = vpop.xlane.xlu1 %2888 }
 0x5ca   : > { %v2880_v55 = vpop.xlane.xlu0 %2879  ;;  %7812 = vmatprep.mubr.msk.bf16.mxu0 %vm1495_vm2, %v3010_v56  ;;  %4166 = vrot.lane.b32.xlu1 %v9285_v3, %s8949_s19  ;;  %8652 = vrcp.f32 %v2889_v37  ;;  %v12456_v56 = vld [vmem:[#allocation31_spill] sm:$0xff] }
 0x5cb   : > { %4051 = vrot.lane.b32.xlu0 %v12452_v29, %s8949_s19  ;;  %8654 = vrcp.f32 %v2880_v55 }
 0x5cc   : > { %v8643_v41 = vpop.eup %8642  ;;  %8656 = vrcp.f32 %v2886_v34  ;;  %v10582_v34 = vsel %vm3455_vm3, %v10523_v9, 0 }
 0x5cd   : > { %v8645_v39 = vpop.eup %8644  ;;  %v2989_v43 = vmul.f32 %v8643_v41, %v10402_v27  ;;  %v2883_v14 = vpop.xlane.xlu1 %2882 }
 0x5ce   : > { %v8647_v7 = vpop.eup %8646  ;;  %8658 = vrcp.f32 %v2883_v14  ;;  %4055 = vrot.lane.b32.xlu1 %v12453_v11, %s8949_s19  ;;  %v2981_v62 = vmul.f32 %v8645_v39, %v10396_v1  ;;  %v12459_v14 = vld [vmem:[#allocation32_spill] sm:$0xff] }
 0x5cf   : > { %v8649_v40 = vpop.eup %8648  ;;  %v3011_v63 = vpack.c.bf16 %v2989_v43, %v2988_v4  ;;  %4053 = vrot.lane.b32.xlu0 %v12454_v0, %s8949_s19  ;;  %v2978_v6 = vmul.f32 %v8647_v7, %v10381_v36  ;;  %v12460_v7 = vld [vmem:[#allocation78_spill] sm:$0xff]  ;;  %v12478_v0 = vld [vmem:[#allocation47_spill] sm:$0xff] }
 0x5d0   : > { %v8651_v57 = vpop.eup %8650  ;;  %v2980_v16 = vmul.f32 %v8649_v40, %v10368_v60 }
 0x5d1   : > { %7813 = vmatmul.mubr.msk.bf16.vlgmr.msra.gmra.mrb[112].mxu0 %vm1495_vm2, %v3011_v63  ;;  %v2979_v27 = vmul.f32 %v8651_v57, %v10410_v54  ;;  %v12457_v54 = vld [vmem:[#allocation28_spill] sm:$0xff]  ;;  %v12461_v63 = vld [vmem:[#allocation29_spill] sm:$0xff] }
 0x5d2   : > { %4170 = vrot.lane.b32.xlu1 %v12455_v2, %s8949_s19  ;;  %7837 = vmatpush3.bf16.msra.mxu0 %v10582_v34  ;;  %v3007_v37 = vpack.c.bf16 %v2981_v62, %v2980_v16  ;;  %v12466_v16 = vld [vmem:[#allocation39_spill] sm:$0xff] }
 0x5d3   : > { %4168 = vrot.lane.b32.xlu0 %v12456_v56, %s8949_s19  ;;  %v3006_v1 = vpack.c.bf16 %v2979_v27, %v2978_v6  ;;  %v12462_v6 = vld [vmem:[#allocation34_spill] sm:$0xff]  ;;  %v12477_v56 = vld [vmem:[#allocation49_spill] sm:$0xff] }
 0x5d4   : > { %v8653_v55 = vpop.eup %8652  ;;  %v10617_v27 = vld [vmem:[%s12191_s7] sm:$0xf]  ;;  %v12479_v29 = vpack.c.bf16 %v12477_v56, %v12478_v0 }
 0x5d5   : > { %7796 = vmatprep.mubr.msk.bf16.mxu1 %vm1495_vm2, %v3006_v1  ;;  %v8655_v36 = vpop.eup %8654  ;;  %v2985_v39 = vmul.f32 %v8653_v55, %v10418_v28  ;;  %v12463_v28 = vld [vmem:[#allocation33_spill] sm:$0xff]  ;;  %8360 = vmatprep.subr.msk.bf16.mxu0 %vm3455_vm3, %v10617_v27  ;;  %v12467_v1 = vld [vmem:[#allocation36_spill] sm:$0xff] }
 0x5d6   : > { %4158 = vrot.lane.b32.xlu1 %v12457_v54, %s8949_s19  ;;  %7797 = vmatmul.mubr.msk.bf16.vlgmr.msra.gmra.mrb[88].mxu1 %vm1495_vm2, %v3007_v37  ;;  %v8657_v60 = vpop.eup %8656  ;;  %v2982_v4 = vmul.f32 %v8655_v36, %v10420_v42  ;;  %v12464_v42 = vld [vmem:[#allocation38_spill] sm:$0xff]  ;;  %v12468_v37 = vld [vmem:[#allocation41_spill] sm:$0xff] }
 0x5d7   : > { %4057 = vrot.lane.b32.xlu0 %v12458_v15, %s8949_s19  ;;  %v2984_v40 = vmul.f32 %v8657_v60, %v12460_v7  ;;  %v12469_v55 = vld [vmem:[#allocation37_spill] sm:$0xff]  ;;  %v12470_v36 = vld [vmem:[#allocation42_spill] sm:$0xff]  ;;  %v12471_v60 = vld [vmem:[#allocation40_spill] sm:$0xff] }
 0x5d8   : > { %v8659_v41 = vpop.eup %8658 }
 0x5d9   : > { %v2983_v43 = vmul.f32 %v8659_v41, %v10426_v22  ;;  %v3009_v62 = vpack.c.bf16 %v2985_v39, %v2984_v40  ;;  %v12465_v22 = vld [vmem:[#allocation35_spill] sm:$0xff]  ;;  %v12472_v41 = vld [vmem:[#allocation44_spill] sm:$0xff] }
 0x5da   : > { %4162 = vrot.lane.b32.xlu1 %v12459_v14, %s8949_s19  ;;  %v12473_v39 = vld [vmem:[#allocation43_spill] sm:$0xff] }
 0x5db   : > { %4156 = vrot.lane.b32.xlu0 %v12461_v63, %s8949_s19  ;;  %v3008_v57 = vpack.c.bf16 %v2983_v43, %v2982_v4  ;;  %v12474_v4 = vld [vmem:[#allocation45_spill] sm:$0xff]  ;;  %v2907_v43 = vpop.xlane.xlu1 %2906 }
 0x5dc   : > { %8660 = vrcp.f32 %v2907_v43 }
 0x5dd   : > { %7800 = vmatprep.mubr.msk.bf16.mxu1 %vm1495_vm2, %v3008_v57 }
 0x5de   : > { %4631 = vrot.lane.b32.xlu1 %v12462_v6, %s8949_s19  ;;  %7801 = vmatmul.mubr.msk.bf16.gmra.mrb[92].mxu1 %vm1495_vm2, %v3009_v62 }
 0x5df   : > { %4160 = vrot.lane.b32.xlu0 %v12463_v28, %s8949_s19 }
 0x5e2   : > { %4718 = vrot.lane.b32.xlu1 %v12464_v42, %s8949_s19 }
 0x5e3   : > { %4629 = vrot.lane.b32.xlu0 %v12465_v22, %s8949_s19 }
 0x5e6   : > { %4720 = vrot.lane.b32.xlu1 %v12466_v16, %s8949_s19  ;;  %v12475_v16 = vld [vmem:[#allocation80_spill] sm:$0xff] }
 0x5e7   : > { %4633 = vrot.lane.b32.xlu0 %v12467_v1, %s8949_s19 }
 0x5ea   : > { %4724 = vrot.lane.b32.xlu1 %v12468_v37, %s8949_s19 }
 0x5eb   : > { %4635 = vrot.lane.b32.xlu0 %v12469_v55, %s8949_s19 }
 0x5ee   : > { %4809 = vrot.lane.b32.xlu1 %v12470_v36, %s8949_s19  ;;  %v8661_v36 = vpop.eup %8660 }
 0x5ef   : > { %4722 = vrot.lane.b32.xlu0 %v12471_v60, %s8949_s19 }
 0x5f2   : > { %4813 = vrot.lane.b32.xlu1 %v12472_v41, %s8949_s19 }
 0x5f3   : > { %4807 = vrot.lane.b32.xlu0 %v12473_v39, %s8949_s19  ;;  %v2991_v39 = vmul.f32 %v8661_v36, %v12475_v16 }
 0x5f7   : > { %4811 = vrot.lane.b32.xlu0 %v12474_v4, %s8949_s19 }
 0x5fe   : > { %v2904_v7 = vpop.xlane.xlu0 %2903 }
 0x5ff   : > { %8662 = vrcp.f32 %v2904_v7 }
 0x600   : > { %8664 = vrcp.f32 %v10557_v46  ;;  %v12476_v46 = vld [vmem:[#allocation79_spill] sm:$0xff] }
 0x602   : > { %v2913_v40 = vpop.xlane.xlu0 %2912 }
 0x603   : > { %8666 = vrcp.f32 %v2913_v40 }
 0x606   : > { %v2916_v57 = vpop.xlane.xlu1 %2915  ;;  %v2922_v62 = vpop.xlane.xlu0 %2921 }
 0x607   : > { %8668 = vrcp.f32 %v2916_v57 }
 0x609   : > { %v8663_v37 = vpop.eup %8662 }
 0x60a   : > { %v2925_v60 = vpop.xlane.xlu0 %2924  ;;  %v2990_v41 = vmul.f32 %v8663_v37, %v10444_v18  ;;  %v8665_v55 = vpop.eup %8664 }
 0x60b   : > { %v2934_v42 = vpop.xlane.xlu1 %2933  ;;  %v2992_v7 = vmul.f32 %v8665_v55, %v12476_v46 }
 0x60c   : > { %v3012_v4 = vpack.c.bf16 %v2991_v39, %v2990_v41 }
 0x60d   : > { %v8667_v1 = vpop.eup %8666 }
 0x60e   : > { %7816 = vmatprep.mubr.msk.bf16.mxu0 %vm1495_vm2, %v3012_v4  ;;  %v2919_v43 = vpop.xlane.xlu0 %2918  ;;  %v2993_v40 = vmul.f32 %v8667_v1, %v10450_v59 }
 0x60f   : > { %8670 = vrcp.f32 %v2919_v43  ;;  %v2928_v22 = vpop.xlane.xlu1 %2927 }
 0x610   : > { %v3013_v6 = vpack.c.bf16 %v2993_v40, %v2992_v7  ;;  %8672 = vrcp.f32 %v2925_v60 }
 0x611   : > { %v8669_v16 = vpop.eup %8668 }
 0x612   : > { %7817 = vmatmul.mubr.msk.bf16.gmra.mrb[116].mxu0 %vm1495_vm2, %v3013_v6  ;;  %v2937_v18 = vpop.xlane.xlu0 %2936  ;;  %v2994_v55 = vmul.f32 %v8669_v16, %v10457_v51 }
 0x613   : > { %v3304_v36 = vpop.permute.xlu1 %3303 }
 0x616   : > { %v2931_v37 = vpop.xlane.xlu0 %2930 }
 0x617   : > { %8674 = vrcp.f32 %v2931_v37  ;;  %v3306_v4 = vpop.permute.xlu1 %3305 }
 0x618   : > { %8676 = vrcp.f32 %v2922_v62 }
 0x619   : > { %v8671_v41 = vpop.eup %8670  ;;  %8678 = vrcp.f32 %v2928_v22 }
 0x61a   : > { %v3302_v39 = vpop.permute.xlu0 %3301  ;;  %v2995_v59 = vmul.f32 %v8671_v41, %v10471_v8  ;;  %8680 = vrcp.f32 %v2937_v18  ;;  %v8673_v60 = vpop.eup %8672 }
 0x61b   : > { %7820 = vmatprep.subr.bf16.mxu1 %v3302_v39  ;;  %8682 = vrcp.f32 %v2934_v42  ;;  %v3308_v51 = vpop.permute.xlu1 %3307  ;;  %v2997_v43 = vmul.f32 %v8673_v60, %v10463_v17 }
 0x61c   : > { %7821 = vmatpush3.bf16.msra.mxu1 %v3302_v39  ;;  %v3014_v1 = vpack.c.bf16 %v2995_v59, %v2994_v55 }
 0x61d   : > { %7822 = vmatprep.subr.bf16.mxu1 %v3304_v36 }
 0x61e   : > { %v10648_v6 = vpop.permute.xlu0 %3849  ;;  %7828 = vmatprep.mubr.msk.bf16.mxu1 %vm1495_vm2, %v3014_v1 }
 0x61f   : > { %v10679_v59 = vpop.permute.xlu1 %3851 }
 0x620   : > { %7823 = vmatpush3.bf16.msra.mxu1 %v3304_v36 }
 0x621   : > { %7824 = vmatprep.subr.bf16.mxu1 %v3306_v4  ;;  %v8675_v22 = vpop.eup %8674 }
 0x622   : > { %v10651_v57 = vpop.permute.xlu0 %3853  ;;  %v8677_v62 = vpop.eup %8676  ;;  %v2999_v7 = vmul.f32 %v8675_v22, %v10481_v31 }
 0x623   : > { %v8679_v8 = vpop.eup %8678  ;;  %v2996_v40 = vmul.f32 %v8677_v62, %v10455_v38 }
 0x624   : > { %7825 = vmatpush3.bf16.msra.mxu1 %v3306_v4  ;;  %v2998_v18 = vmul.f32 %v8679_v8, %v10473_v19  ;;  %v8681_v37 = vpop.eup %8680 }
 0x625   : > { %7826 = vmatprep.subr.bf16.mxu1 %v3308_v51  ;;  %v3015_v42 = vpack.c.bf16 %v2997_v43, %v2996_v40  ;;  %v8683_v17 = vpop.eup %8682  ;;  %v3001_v38 = vmul.f32 %v8681_v37, %v10479_v61  ;;  %v10685_v61 = vpop.permute.xlu1 %3855 }
 0x626   : > { %v10654_v46 = vpop.permute.xlu0 %3841  ;;  %v3016_v36 = vpack.c.bf16 %v2999_v7, %v2998_v18  ;;  %v3000_v31 = vmul.f32 %v8683_v17, %v10465_v26 }
 0x628   : > { %7827 = vmatpush3.bf16.msra.mxu1 %v3308_v51 }
 0x629   : > { %8359 = vmatprep.subr.msk.bf16.mxu1 %vm3455_vm3, %v10523_v9  ;;  %v3017_v9 = vpack.c.bf16 %v3001_v38, %v3000_v31  ;;  %v10689_v26 = vpop.permute.xlu1 %3954 }
 0x62a   : > { %v10661_v16 = vpop.permute.xlu0 %3843 }
 0x62b   : > { %7829 = vmatmul.mubr.msk.bf16.vlgmr.msra.gmra.mrb[96].mxu1 %vm1495_vm2, %v3015_v42 }
 0x62c   : > { %7832 = vmatprep.mubr.msk.bf16.mxu1 %vm1495_vm2, %v3016_v36  ;;  %8229 = vmatpush3.bf16.msra.mxu1 %v10582_v34 }
 0x62d   : > { %8361 = vmatprep.subr.msk.bf16.mxu1 %vm1138_vm1, %v10648_v6  ;;  %v10695_v62 = vpop.permute.xlu1 %3956 }
 0x62e   : > { %v10669_v19 = vpop.permute.xlu0 %3958 }
 0x631   : > { %v10699_v8 = vpop.permute.xlu1 %3845 }
 0x632   : > { %v10672_v41 = vpop.permute.xlu0 %3960 }
 0x633   : > { %7833 = vmatmul.mubr.msk.bf16.gmra.mrb[100].mxu1 %vm1495_vm2, %v3017_v9  ;;  %v3669_v9 = vsel %vm3455_vm3, %v10617_v27, 0 }
 0x635   : > { %v10703_v7 = vpop.permute.xlu1 %3847 }
 0x636   : > { %v10675_v39 = vpop.permute.xlu0 %3946 }
 0x639   : > { %v10707_v36 = vpop.permute.xlu1 %4059 }
 0x63a   : > { %v10677_v55 = vpop.permute.xlu0 %3948 }
 0x63d   : > { %v10713_v28 = vpop.permute.xlu1 %4061 }
 0x63e   : > { %v10681_v34 = vpop.permute.xlu0 %4063 }
 0x641   : > { %v10715_v54 = vpop.permute.xlu1 %3950 }
 0x642   : > { %v10683_v1 = vpop.permute.xlu0 %4065 }
 0x645   : > { %v10717_v63 = vpop.permute.xlu1 %3952 }
 0x646   : > { %v10687_v4 = vpop.permute.xlu0 %4051 }
 0x649   : > { %v10719_v2 = vpop.permute.xlu1 %4164 }
 0x64a   : > { %v10691_v60 = vpop.permute.xlu0 %4053 }
 0x64e   : > { %v10693_v22 = vpop.permute.xlu0 %4168 }
 0x652   : > { %v10697_v51 = vpop.permute.xlu0 %4057 }
 0x656   : > { %v10701_v43 = vpop.permute.xlu0 %4156 }
 0x65a   : > { %v10705_v42 = vpop.permute.xlu0 %4160 }
 0x65e   : > { %v4630_v14 = vpop.permute.xlu0 %4629 }
 0x65f   : > { %v7782_v40 = vpop.f32.mrb[104].mxu0 }
 0x660   : > { %v3080_v18 = vpop.f32.mrb[105].mxu0 }
 0x661   : > { %v7783_v37 = vpop.f32.mrb[106].mxu0 }
 0x662   : > { %v3391_v17 = vpack.c.bf16 %v7783_v37, %v7782_v40  ;;  %v3083_v38 = vpop.f32.mrb[107].mxu0  ;;  %v10721_v40 = vpop.permute.xlu1 %4166 }
 0x663   : > { %v3390_v31 = vpack.c.bf16 %v3083_v38, %v3080_v18  ;;  %v4634_v33 = vpop.permute.xlu0 %4633 }
 0x665   : > { %7838 = vmatprep.mubr.msk.bf16.mxu0 %vm1138_vm1, %v3390_v31 }
 0x666   : > { %7839 = vmatmul.mubr.msk.bf16.vlgmr.msra.gmra.mrb[120].mxu0 %vm1138_vm1, %v3391_v17  ;;  %v10723_v18 = vpop.permute.xlu1 %4055 }
 0x667   : > { %7871 = vmatpush3.bf16.msra.mxu0 %v3669_v9 }
 0x668   : > { %7968 = vmatprep.subr.bf16.mxu0 %v4630_v14 }
 0x66a   : > { %v10725_v27 = vpop.permute.xlu1 %4170 }
 0x66e   : > { %v10727_v15 = vpop.permute.xlu1 %4158 }
 0x672   : > { %v10735_v3 = vpop.permute.xlu1 %4162 }
 0x68e   : > { %v7786_v37 = vpop.f32.mrb[108].mxu0 }
 0x68f   : > { %v3096_v38 = vpop.f32.mrb[109].mxu0 }
 0x690   : > { %v7787_v17 = vpop.f32.mrb[110].mxu0 }
 0x691   : > { %v3393_v31 = vpack.c.bf16 %v7787_v17, %v7786_v37  ;;  %v3099_v9 = vpop.f32.mrb[111].mxu0  ;;  %v4632_v37 = vpop.permute.xlu1 %4631 }
 0x692   : > { %v3392_v11 = vpack.c.bf16 %v3099_v9, %v3096_v38  ;;  %v4636_v17 = vpop.permute.xlu0 %4635  ;;  %v12483_v38 = vld [vmem:[#allocation56_spill] sm:$0xff] }
 0x694   : > { %7842 = vmatprep.mubr.msk.bf16.mxu0 %vm1138_vm1, %v3392_v11  ;;  %v12484_v11 = vld [vmem:[#allocation48_spill] sm:$0xff] }
 0x695   : > { %7843 = vmatmul.mubr.msk.bf16.gmra.mrb[124].mxu0 %vm1138_vm1, %v3393_v31  ;;  %v12485_v9 = vpack.c.bf16 %v12483_v38, %v12484_v11  ;;  %v12486_v31 = vld [vmem:[#allocation57_spill] sm:$0xff] }
 0x696   : > { %7872 = vmatprep.mubr.msk.bf16.mxu0 %vm1138_vm1, %v12479_v29  ;;  %v10745_v29 = vpop.permute.xlu0 %4722  ;;  %v12488_v47 = vpack.c.bf16 %v12486_v31, %v12487_v35 }
 0x69a   : > { %v10755_v21 = vpop.permute.xlu0 %4807 }
 0x69d   : > { %7873 = vmatmul.mubr.msk.bf16.vlgmr.msra.gmra.mrb[120].mxu0 %vm1138_vm1, %v12482_v10  ;;  %v12489_v10 = vld [vmem:[#allocation59_spill] sm:$0xff] }
 0x69e   : > { %7969 = vmatpush3.bf16.msra.mxu0 %v4630_v14  ;;  %7876 = vmatprep.mubr.msk.bf16.mxu0 %vm1138_vm1, %v12485_v9  ;;  %v12490_v14 = vld [vmem:[#allocation53_spill] sm:$0xff] }
 0x69f   : > { %7970 = vmatprep.subr.bf16.mxu0 %v4632_v37  ;;  %v12491_v20 = vpack.c.bf16 %v12489_v10, %v12490_v14  ;;  %v12494_v10 = vpack.c.bf16 %v12492_v44, %v12493_v25 }
 0x6a2   : > { %7971 = vmatpush3.bf16.msra.mxu0 %v4632_v37 }
 0x6a3   : > { %7972 = vmatprep.subr.bf16.mxu0 %v4634_v33 }
 0x6a4   : > { %v7814_v0 = vpop.f32.mrb[112].mxu0 }
 0x6a5   : > { %v3266_v56 = vpop.f32.mrb[113].mxu0  ;;  %7877 = vmatmul.mubr.msk.bf16.gmra.mrb[124].mxu0 %vm1138_vm1, %v12488_v47 }
 0x6a6   : > { %7973 = vmatpush3.bf16.msra.mxu0 %v4634_v33  ;;  %v7815_v48 = vpop.f32.mrb[114].mxu0  ;;  %7880 = vmatprep.mubr.msk.bf16.mxu0 %vm1138_vm1, %v12491_v20  ;;  %v12495_v20 = vld [vmem:[#allocation65_spill] sm:$0xff] }
 0x6a7   : > { %v3399_v38 = vpack.c.bf16 %v7815_v48, %v7814_v0  ;;  %7974 = vmatprep.subr.bf16.mxu0 %v4636_v17  ;;  %v3269_v37 = vpop.f32.mrb[115].mxu0  ;;  %v12496_v0 = vld [vmem:[#allocation63_spill] sm:$0xff] }
 0x6a8   : > { %v3398_v11 = vpack.c.bf16 %v3269_v37, %v3266_v56  ;;  %v12497_v48 = vpack.c.bf16 %v12495_v20, %v12496_v0  ;;  %v12504_v20 = vld [vmem:[#allocation60_spill] sm:$0xff]  ;;  %v12505_v0 = vld [vmem:[#allocation51_spill] sm:$0xff] }
 0x6a9   : > { %v7798_v9 = vpop.f32.mrb[88].mxu1 }
 0x6aa   : > { %7975 = vmatpush3.bf16.msra.mxu0 %v4636_v17  ;;  %v3173_v5 = vpop.f32.mrb[89].mxu1  ;;  %v3870_v17 = vsel %vm1138_vm1, %v10648_v6, 0  ;;  %v3873_v6 = vsel %vm1138_vm1, %v10679_v59, 0 }
 0x6ab   : > { %8000 = vmatprep.subr.bf16.mxu0 %v10755_v21  ;;  %v7799_v35 = vpop.f32.mrb[90].mxu1 }
 0x6ac   : > { %v3395_v31 = vpack.c.bf16 %v7799_v35, %v7798_v9  ;;  %v3176_v33 = vpop.f32.mrb[91].mxu1  ;;  %v12498_v9 = vld [vmem:[#allocation64_spill] sm:$0xff]  ;;  %v12499_v35 = vld [vmem:[#allocation62_spill] sm:$0xff] }
 0x6ad   : > { %v3394_v47 = vpack.c.bf16 %v3176_v33, %v3173_v5  ;;  %7881 = vmatmul.mubr.msk.bf16.gmra.mrb[128].mxu0 %vm1138_vm1, %v12494_v10  ;;  %v12500_v33 = vpack.c.bf16 %v12498_v9, %v12499_v35  ;;  %v12517_v35 = vld [vmem:[#allocation70_spill] sm:$0xff] }
 0x6ae   : > { %7884 = vmatprep.mubr.msk.bf16.mxu0 %vm1138_vm1, %v12497_v48  ;;  %v12506_v48 = vpack.c.bf16 %v12504_v20, %v12505_v0  ;;  %v12523_v20 = vld [vmem:[#allocation74_spill] sm:$0xff] }
 0x6af   : > { %7846 = vmatprep.mubr.msk.bf16.mxu1 %vm1138_vm1, %v3394_v47  ;;  %v12501_v47 = vld [vmem:[#allocation61_spill] sm:$0xff] }
 0x6b0   : > { %7847 = vmatmul.mubr.msk.bf16.vlgmr.msra.gmra.mrb[104].mxu1 %vm1138_vm1, %v3395_v31  ;;  %v12502_v31 = vld [vmem:[#allocation58_spill] sm:$0xff] }
 0x6b1   : > { %7905 = vmatpush3.bf16.xpose.msra.mxu1 %v3870_v17  ;;  %v7802_v56 = vpop.f32.mrb[92].mxu1  ;;  %v12503_v10 = vpack.c.bf16 %v12501_v47, %v12502_v31  ;;  %v12507_v17 = vld [vmem:[#allocation69_spill] sm:$0xff]  ;;  %v12520_v31 = vld [vmem:[#allocation75_spill] sm:$0xff] }
 0x6b2   : > { %8362 = vmatprep.subr.msk.bf16.mxu1 %vm1138_vm1, %v10679_v59  ;;  %v3189_v44 = vpop.f32.mrb[93].mxu1  ;;  %v3876_v59 = vsel %vm1138_vm1, %v10651_v57, 0  ;;  %v12519_v47 = vld [vmem:[#allocation77_spill] sm:$0xff] }
 0x6b3   : > { %v7803_v5 = vpop.f32.mrb[94].mxu1 }
 0x6b4   : > { %v3397_v25 = vpack.c.bf16 %v7803_v5, %v7802_v56  ;;  %v3192_v14 = vpop.f32.mrb[95].mxu1  ;;  %v12508_v56 = vld [vmem:[#allocation67_spill] sm:$0xff]  ;;  %v12511_v5 = vld [vmem:[#allocation66_spill] sm:$0xff] }
 0x6b5   : > { %v3396_v37 = vpack.c.bf16 %v3192_v14, %v3189_v44  ;;  %7885 = vmatmul.mubr.msk.bf16.gmra.mrb[132].mxu0 %vm1138_vm1, %v12500_v33  ;;  %v12509_v44 = vpack.c.bf16 %v12507_v17, %v12508_v56  ;;  %v12513_v14 = vld [vmem:[#allocation73_spill] sm:$0xff] }
 0x6b6   : > { %7888 = vmatprep.mubr.msk.bf16.mxu0 %vm1138_vm1, %v12503_v10  ;;  %v12521_v10 = vpack.c.bf16 %v12519_v47, %v12520_v31 }
 0x6b7   : > { %7850 = vmatprep.mubr.msk.bf16.mxu1 %vm1138_vm1, %v3396_v37  ;;  %v12514_v37 = vld [vmem:[#allocation71_spill] sm:$0xff] }
 0x6b8   : > { %7851 = vmatmul.mubr.msk.bf16.gmra.mrb[108].mxu1 %vm1138_vm1, %v3397_v25  ;;  %v12515_v9 = vpack.c.bf16 %v12513_v14, %v12514_v37 }
 0x6b9   : > { %7907 = vmatpush3.bf16.xpose.msra.mxu1 %v3873_v6  ;;  %7854 = vmatprep.mubr.msk.bf16.mxu1 %vm1138_vm1, %v3398_v11  ;;  %v12510_v11 = vld [vmem:[#allocation68_spill] sm:$0xff] }
 0x6ba   : > { %8363 = vmatprep.subr.msk.bf16.mxu1 %vm1138_vm1, %v10651_v57  ;;  %v12512_v25 = vpack.c.bf16 %v12510_v11, %v12511_v5  ;;  %v12516_v57 = vld [vmem:[#allocation72_spill] sm:$0xff] }
 0x6bb   : > { %v12518_v33 = vpack.c.bf16 %v12516_v57, %v12517_v35  ;;  %v12522_v6 = vld [vmem:[#allocation76_spill] sm:$0xff] }
 0x6bc   : > { %v12524_v0 = vpack.c.bf16 %v12522_v6, %v12523_v20  ;;  %v3978_v6 = vsel %vm1138_vm1, %v10695_v62, 0 }
 0x6bd   : > { %7889 = vmatmul.mubr.msk.bf16.gmra.mrb[136].mxu0 %vm1138_vm1, %v12506_v48 }
 0x6be   : > { %7892 = vmatprep.mubr.msk.bf16.mxu0 %vm1138_vm1, %v12509_v44 }
 0x6c0   : > { %7855 = vmatmul.mubr.msk.bf16.gmra.mrb[112].mxu1 %vm1138_vm1, %v3399_v38  ;;  %v3879_v38 = vsel %vm1138_vm1, %v10685_v61, 0 }
 0x6c1   : > { %7909 = vmatpush3.bf16.xpose.msra.mxu1 %v3876_v59 }
 0x6c2   : > { %8364 = vmatprep.subr.msk.bf16.mxu1 %vm1138_vm1, %v10685_v61 }
 0x6c5   : > { %7893 = vmatmul.mubr.msk.bf16.gmra.mrb[140].mxu0 %vm1138_vm1, %v12512_v25 }
 0x6c6   : > { %7896 = vmatprep.mubr.msk.bf16.mxu0 %vm1138_vm1, %v12515_v9 }
 0x6c9   : > { %7911 = vmatpush3.bf16.xpose.msra.mxu1 %v3879_v38 }
 0x6ca   : > { %8365 = vmatprep.subr.msk.bf16.mxu1 %vm1138_vm1, %v10689_v26 }
 0x6cd   : > { %7897 = vmatmul.mubr.msk.bf16.gmra.mrb[144].mxu0 %vm1138_vm1, %v12518_v33 }
 0x6ce   : > { %7900 = vmatprep.mubr.msk.bf16.mxu0 %vm1138_vm1, %v12521_v10  ;;  %v3975_v10 = vsel %vm1138_vm1, %v10689_v26, 0 }
 0x6d5   : > { %7901 = vmatmul.mubr.msk.bf16.gmra.mrb[148].mxu0 %vm1138_vm1, %v12524_v0 }
 0x6e5   : > { %v7818_v61 = vpop.f32.mrb[116].mxu0 }
 0x6e6   : > { %v3282_v48 = vpop.f32.mrb[117].mxu0 }
 0x6e7   : > { %v7819_v17 = vpop.f32.mrb[118].mxu0 }
 0x6e8   : > { %v3401_v56 = vpack.c.bf16 %v7819_v17, %v7818_v61  ;;  %v3285_v44 = vpop.f32.mrb[119].mxu0 }
 0x6e9   : > { %v3400_v59 = vpack.c.bf16 %v3285_v44, %v3282_v48 }
 0x6eb   : > { %7858 = vmatprep.mubr.msk.bf16.mxu1 %vm1138_vm1, %v3400_v59 }
 0x6ec   : > { %7859 = vmatmul.mubr.msk.bf16.gmra.mrb[116].mxu1 %vm1138_vm1, %v3401_v56 }
 0x6fe   : > { %v7830_v11 = vpop.f32.mrb[96].mxu1 }
 0x6ff   : > { %v3359_v5 = vpop.f32.mrb[97].mxu1 }
 0x700   : > { %v7831_v25 = vpop.f32.mrb[98].mxu1 }
 0x701   : > { %v3403_v14 = vpack.c.bf16 %v7831_v25, %v7830_v11  ;;  %v3362_v37 = vpop.f32.mrb[99].mxu1  ;;  %v10961_v11 = vld [vmem:[%s12193_s9 + $0x90] sm:$0xff]  ;;  %v10966_v25 = vld [vmem:[%s12193_s9 + $0x80] sm:$0xff] }
 0x702   : > { %v3402_v9 = vpack.c.bf16 %v3362_v37, %v3359_v5 }
 0x704   : > { %7862 = vmatprep.mubr.msk.bf16.mxu1 %vm1138_vm1, %v3402_v9  ;;  %v10974_v9 = vld [vmem:[%s12193_s9 + $0x88] sm:$0xff] }
 0x705   : > { %7863 = vmatmul.mubr.msk.bf16.gmra.mrb[120].mxu1 %vm1138_vm1, %v3403_v14 }
 0x706   : > { %v7834_v38 = vpop.f32.mrb[100].mxu1 }
 0x707   : > { %v3375_v57 = vpop.f32.mrb[101].mxu1 }
 0x708   : > { %v7835_v35 = vpop.f32.mrb[102].mxu1 }
 0x709   : > { %v3405_v33 = vpack.c.bf16 %v7835_v35, %v7834_v38  ;;  %v3378_v47 = vpop.f32.mrb[103].mxu1 }
 0x70a   : > { %v3404_v31 = vpack.c.bf16 %v3378_v47, %v3375_v57  ;;  %v10984_v47 = vld [vmem:[%s12193_s9 + $0x98] sm:$0xff] }
 0x70c   : > { %7866 = vmatprep.mubr.msk.bf16.mxu1 %vm1138_vm1, %v3404_v31 }
 0x70d   : > { %7867 = vmatmul.mubr.msk.bf16.gmra.mrb[124].mxu1 %vm1138_vm1, %v3405_v33 }
 0x70e   : > { %7912 = vmatprep.mubr.msk.bf16.mxu1 %vm1138_vm1, %v10654_v46  ;;  %v3981_v46 = vsel %vm1138_vm1, %v10669_v19, 0 }
 0x715   : > { %7913 = vmatmul.mubr.msk.bf16.vlgmr.msra.gmra.mrb[128].mxu1 %vm1138_vm1, %v10661_v16  ;;  %v3984_v16 = vsel %vm1138_vm1, %v10672_v41, 0 }
 0x716   : > { %7921 = vmatpush3.bf16.xpose.msra.mxu1 %v3975_v10  ;;  %7916 = vmatprep.mubr.msk.bf16.mxu1 %vm1138_vm1, %v10699_v8 }
 0x717   : > { %8366 = vmatprep.subr.msk.bf16.mxu1 %vm1138_vm1, %v10695_v62 }
 0x71d   : > { %7917 = vmatmul.mubr.msk.bf16.gmra.mrb[132].mxu1 %vm1138_vm1, %v10703_v7 }
 0x71e   : > { %7923 = vmatpush3.bf16.xpose.msra.mxu1 %v3978_v6  ;;  %7928 = vmatprep.mubr.msk.bf16.mxu1 %vm1138_vm1, %v10675_v39  ;;  %v4080_v39 = vsel %vm1138_vm1, %v10707_v36, 0 }
 0x71f   : > { %8367 = vmatprep.subr.msk.bf16.mxu1 %vm1138_vm1, %v10669_v19  ;;  %v4083_v19 = vsel %vm1138_vm1, %v10713_v28, 0 }
 0x726   : > { %7925 = vmatpush3.bf16.xpose.msra.mxu1 %v3981_v46 }
 0x727   : > { %8368 = vmatprep.subr.msk.bf16.mxu1 %vm1138_vm1, %v10672_v41  ;;  %v4188_v41 = vsel %vm1138_vm1, %v10721_v40, 0 }
 0x72e   : > { %7927 = vmatpush3.bf16.xpose.msra.mxu1 %v3984_v16  ;;  %v10999_v16 = vld [vmem:[%s12193_s9 + $0xb0] sm:$0xff] }
 0x72f   : > { %8369 = vmatprep.subr.msk.bf16.mxu1 %vm1138_vm1, %v10707_v36 }
 0x735   : > { %7929 = vmatmul.mubr.msk.bf16.vlgmr.msra.gmra.mrb[136].mxu1 %vm1138_vm1, %v10677_v55  ;;  %v4194_v55 = vsel %vm1138_vm1, %v10725_v27, 0 }
 0x736   : > { %7932 = vmatprep.mubr.msk.bf16.mxu1 %vm1138_vm1, %v10715_v54  ;;  %7937 = vmatpush3.bf16.xpose.msra.mxu1 %v4080_v39  ;;  %v4086_v54 = vsel %vm1138_vm1, %v10681_v34, 0 }
 0x737   : > { %8370 = vmatprep.subr.msk.bf16.mxu1 %vm1138_vm1, %v10713_v28  ;;  %v4185_v28 = vsel %vm1138_vm1, %v10719_v2, 0 }
 0x73d   : > { %7933 = vmatmul.mubr.msk.bf16.gmra.mrb[140].mxu1 %vm1138_vm1, %v10717_v63  ;;  %v4089_v63 = vsel %vm1138_vm1, %v10683_v1, 0 }
 0x73e   : > { %7939 = vmatpush3.bf16.xpose.msra.mxu1 %v4083_v19  ;;  %7944 = vmatprep.mubr.msk.bf16.mxu1 %vm1138_vm1, %v10687_v4  ;;  %v11004_v19 = vld [vmem:[%s12193_s9 + $0xb8] sm:$0xff] }
 0x73f   : > { %8371 = vmatprep.subr.msk.bf16.mxu1 %vm1138_vm1, %v10681_v34  ;;  %v4719_v34 = vpop.permute.xlu1 %4718 }
 0x746   : > { %7941 = vmatpush3.bf16.xpose.msra.mxu1 %v4086_v54 }
 0x747   : > { %8372 = vmatprep.subr.msk.bf16.mxu1 %vm1138_vm1, %v10683_v1  ;;  %v4721_v1 = vpop.permute.xlu1 %4720 }
 0x74b   : > { %v4725_v4 = vpop.permute.xlu1 %4724 }
 0x74e   : > { %7943 = vmatpush3.bf16.xpose.msra.mxu1 %v4089_v63 }
 0x74f   : > { %8373 = vmatprep.subr.msk.bf16.mxu1 %vm1138_vm1, %v10719_v2  ;;  %v4191_v2 = vsel %vm1138_vm1, %v10693_v22, 0 }
 0x755   : > { %7945 = vmatmul.mubr.msk.bf16.vlgmr.msra.gmra.mrb[144].mxu1 %vm1138_vm1, %v10691_v60 }
 0x756   : > { %7948 = vmatprep.mubr.msk.bf16.mxu1 %vm1138_vm1, %v10723_v18  ;;  %7953 = vmatpush3.bf16.xpose.msra.mxu1 %v4185_v28  ;;  %v11009_v28 = vld [vmem:[%s12193_s9 + $0xa8] sm:$0xff] }
 0x757   : > { %8374 = vmatprep.subr.msk.bf16.mxu1 %vm1138_vm1, %v10721_v40 }
 0x75d   : > { %7949 = vmatmul.mubr.msk.bf16.gmra.mrb[148].mxu1 %vm1138_vm1, %v10697_v51 }
 0x75e   : > { %7955 = vmatpush3.bf16.xpose.msra.mxu1 %v4188_v41  ;;  %7960 = vmatprep.mubr.msk.bf16.mxu1 %vm1138_vm1, %v10701_v43 }
 0x75f   : > { %8375 = vmatprep.subr.msk.bf16.mxu1 %vm1138_vm1, %v10693_v22 }
 0x766   : > { %7957 = vmatpush3.bf16.xpose.msra.mxu1 %v4191_v2 }
 0x767   : > { %8376 = vmatprep.subr.msk.bf16.mxu1 %vm1138_vm1, %v10725_v27 }
 0x76e   : > { %7959 = vmatpush3.bf16.xpose.msra.mxu1 %v4194_v55 }
 0x76f   : > { %7984 = vmatprep.subr.bf16.mxu1 %v4719_v34 }
 0x775   : > { %7961 = vmatmul.mubr.msk.bf16.vlgmr.msra.gmra.mrb[152].mxu1 %vm1138_vm1, %v10727_v15 }
 0x776   : > { %7964 = vmatprep.mubr.msk.bf16.mxu1 %vm1138_vm1, %v10705_v42  ;;  %7985 = vmatpush3.bf16.msra.mxu1 %v4719_v34 }
 0x777   : > { %7986 = vmatprep.subr.bf16.mxu1 %v4721_v1 }
 0x77a   : > { %7987 = vmatpush3.bf16.msra.mxu1 %v4721_v1  ;;  %v11022_v1 = vld [vmem:[%s12193_s9 + $0xa0] sm:$0xff] }
 0x77b   : > { %7988 = vmatprep.subr.bf16.mxu1 %v10745_v29 }
 0x77d   : > { %7965 = vmatmul.mubr.msk.bf16.gmra.mrb[156].mxu1 %vm1138_vm1, %v10735_v3 }
 0x77e   : > { %7989 = vmatpush3.bf16.msra.mxu1 %v10745_v29 }
 0x77f   : > { %7990 = vmatprep.subr.bf16.mxu1 %v4725_v4 }
 0x782   : > { %7991 = vmatpush3.bf16.msra.mxu1 %v4725_v4 }
 0x783   : > { %v10910_v26 = vpop.f32.mrb[104].mxu1 }
 0x784   : > { %v10912_v15 = vpop.f32.mrb[105].mxu1 }
 0x785   : > { %12525 = vst [vmem:[#allocation2_spill] sm:$0xff] %v10912_v15  ;;  %v10914_v60 = vpop.f32.mrb[106].mxu1 }
 0x786   : > { %12526 = vst [vmem:[#allocation6_spill] sm:$0xff] %v10914_v60  ;;  %v10916_v22 = vpop.f32.mrb[107].mxu1 }
 0x787   : > { %12527 = vst [vmem:[#allocation3_spill] sm:$0xff] %v10916_v22 }
 0x78b   : > { %v10918_v62 = vpop.f32.mrb[108].mxu1 }
 0x78c   : > { %12528 = vst [vmem:[#allocation11_spill] sm:$0xff] %v10918_v62  ;;  %v10920_v51 = vpop.f32.mrb[109].mxu1 }
 0x78d   : > { %12529 = vst [vmem:[#allocation7_spill] sm:$0xff] %v10920_v51  ;;  %v10922_v8 = vpop.f32.mrb[110].mxu1 }
 0x78e   : > { %12530 = vst [vmem:[#allocation10_spill] sm:$0xff] %v10922_v8  ;;  %v10924_v3 = vpop.f32.mrb[111].mxu1 }
 0x78f   : > { %12531 = vst [vmem:[#allocation5_spill] sm:$0xff] %v10924_v3 }
 0x793   : > { %v10926_v43 = vpop.f32.mrb[112].mxu1 }
 0x794   : > { %12532 = vst [vmem:[#allocation4_spill] sm:$0xff] %v10926_v43  ;;  %v10928_v7 = vpop.f32.mrb[113].mxu1 }
 0x795   : > { %12533 = vst [vmem:[#allocation78_spill] sm:$0xff] %v10928_v7  ;;  %v10930_v42 = vpop.f32.mrb[114].mxu1 }
 0x796   : > { %12534 = vst [vmem:[#allocation80_spill] sm:$0xff] %v10930_v42  ;;  %v10932_v36 = vpop.f32.mrb[115].mxu1 }
 0x797   : > { %12535 = vst [vmem:[#allocation79_spill] sm:$0xff] %v10932_v36 }
 0x7bf   : > { %v10934_v40 = vpop.f32.mrb[116].mxu1 }
 0x7c0   : > { %12536 = vst [vmem:[#allocation49_spill] sm:$0xff] %v10934_v40  ;;  %v10936_v18 = vpop.f32.mrb[117].mxu1 }
 0x7c1   : > { %12537 = vst [vmem:[#allocation47_spill] sm:$0xff] %v10936_v18  ;;  %v10938_v27 = vpop.f32.mrb[118].mxu1 }
 0x7c2   : > { %12538 = vst [vmem:[#allocation46_spill] sm:$0xff] %v10938_v27  ;;  %v10940_v29 = vpop.f32.mrb[119].mxu1 }
 0x7c3   : > { %12539 = vst [vmem:[#allocation52_spill] sm:$0xff] %v10940_v29 }
 0x7d8   : > { %v10942_v20 = vpop.f32.mrb[120].mxu1 }
 0x7d9   : > { %12540 = vst [vmem:[#allocation56_spill] sm:$0xff] %v10942_v20  ;;  %v10944_v0 = vpop.f32.mrb[121].mxu1 }
 0x7da   : > { %12541 = vst [vmem:[#allocation48_spill] sm:$0xff] %v10944_v0  ;;  %v10946_v61 = vpop.f32.mrb[122].mxu1 }
 0x7db   : > { %12542 = vst [vmem:[#allocation57_spill] sm:$0xff] %v10946_v61  ;;  %v10948_v48 = vpop.f32.mrb[123].mxu1 }
 0x7dc   : > { %12543 = vst [vmem:[#allocation50_spill] sm:$0xff] %v10948_v48 }
 0x7e0   : > { %v10950_v17 = vpop.f32.mrb[124].mxu1 }
 0x7e1   : > { %12544 = vst [vmem:[#allocation59_spill] sm:$0xff] %v10950_v17  ;;  %v10952_v56 = vpop.f32.mrb[125].mxu1 }
 0x7e2   : > { %12545 = vst [vmem:[#allocation53_spill] sm:$0xff] %v10952_v56  ;;  %v10954_v44 = vpop.f32.mrb[126].mxu1 }
 0x7e3   : > { %12546 = vst [vmem:[#allocation54_spill] sm:$0xff] %v10954_v44  ;;  %v10956_v59 = vpop.f32.mrb[127].mxu1 }
 0x7e4   : > { %12547 = vst [vmem:[#allocation55_spill] sm:$0xff] %v10956_v59 }
 0x7e8   : > { %v7914_v5 = vpop.f32.mrb[128].mxu1 }
 0x7e9   : > { %v10969_v14 = vadd.f32 %v7914_v5, %v10961_v11  ;;  %v3915_v37 = vpop.f32.mrb[129].mxu1 }
 0x7ea   : > { %v7915_v38 = vpop.f32.mrb[130].mxu1  ;;  %v10977_v57 = vadd.f32 %v10966_v25, %v3915_v37 }
 0x7eb   : > { %v3918_v35 = vpop.f32.mrb[131].mxu1  ;;  %v4267_v33 = vsel %vm1495_vm2, %v10969_v14, -inf  ;;  %v10992_v6 = vadd.f32 %v7915_v38, %v10984_v47 }
 0x7ec   : > { %v10987_v31 = vadd.f32 %v10974_v9, %v3918_v35  ;;  %4268 = vmax.xlane.f32.xlu0 %v4267_v33  ;;  %v4261_v46 = vsel %vm1495_vm2, %v10977_v57, -inf }
 0x7ed   : > { %v4270_v34 = vsel %vm1495_vm2, %v10992_v6, -inf }
 0x7ee   : > { %v4264_v10 = vsel %vm1495_vm2, %v10987_v31, -inf }
 0x7ef   : > { %4265 = vmax.xlane.f32.xlu1 %v4264_v10 }
 0x7f0   : > { %v7918_v39 = vpop.f32.mrb[132].mxu1  ;;  %4262 = vmax.xlane.f32.xlu0 %v4261_v46 }
 0x7f1   : > { %v3931_v54 = vpop.f32.mrb[133].mxu1  ;;  %v11012_v41 = vadd.f32 %v7918_v39, %v10999_v16 }
 0x7f2   : > { %v7919_v63 = vpop.f32.mrb[134].mxu1  ;;  %v11030_v37 = vadd.f32 %v11022_v1, %v3931_v54 }
 0x7f3   : > { %v11015_v2 = vadd.f32 %v7919_v63, %v11004_v19  ;;  %v3934_v55 = vpop.f32.mrb[135].mxu1  ;;  %v4279_v38 = vsel %vm1495_vm2, %v11012_v41, -inf }
 0x7f4   : > { %4271 = vmax.xlane.f32.xlu0 %v4270_v34  ;;  %v11025_v4 = vadd.f32 %v11009_v28, %v3934_v55  ;;  %v4273_v33 = vsel %vm1495_vm2, %v11030_v37, -inf }
 0x7f5   : > { %v4282_v5 = vsel %vm1495_vm2, %v11015_v2, -inf }
 0x7f6   : > { %4283 = vmax.xlane.f32.xlu1 %v4282_v5  ;;  %v4276_v35 = vsel %vm1495_vm2, %v11025_v4, -inf }
 0x7f8   : > { %4280 = vmax.xlane.f32.xlu0 %v4279_v38 }
 0x7fa   : > { %4277 = vmax.xlane.f32.xlu1 %v4276_v35 }
 0x7fc   : > { %4274 = vmax.xlane.f32.xlu0 %v4273_v33 }
 0x808   : > { %v7930_v10 = vpop.f32.mrb[136].mxu1 }
 0x809   : > { %v11039_v46 = vadd.f32 %v7930_v10, %v10961_v11  ;;  %v4020_v39 = vpop.f32.mrb[137].mxu1 }
 0x80a   : > { %v7931_v63 = vpop.f32.mrb[138].mxu1  ;;  %v11042_v54 = vadd.f32 %v10966_v25, %v4020_v39 }
 0x80b   : > { %v11045_v55 = vadd.f32 %v7931_v63, %v10984_v47  ;;  %v4023_v34 = vpop.f32.mrb[139].mxu1  ;;  %v4291_v5 = vsel %vm1495_vm2, %v11039_v46, -inf }
 0x80c   : > { %4292 = vmax.xlane.f32.xlu0 %v4291_v5  ;;  %v11050_v38 = vadd.f32 %v10974_v9, %v4023_v34  ;;  %v4285_v33 = vsel %vm1495_vm2, %v11042_v54, -inf }
 0x80d   : > { %v4294_v35 = vsel %vm1495_vm2, %v11045_v55, -inf }
 0x80e   : > { %4295 = vmax.xlane.f32.xlu1 %v4294_v35  ;;  %v4288_v59 = vsel %vm1495_vm2, %v11050_v38, -inf }
 0x810   : > { %v7934_v10 = vpop.f32.mrb[140].mxu1  ;;  %4286 = vmax.xlane.f32.xlu0 %v4285_v33 }
 0x811   : > { %v11057_v39 = vadd.f32 %v7934_v10, %v10999_v16  ;;  %v4036_v63 = vpop.f32.mrb[141].mxu1 }
 0x812   : > { %v7935_v5 = vpop.f32.mrb[142].mxu1  ;;  %4289 = vmax.xlane.f32.xlu1 %v4288_v59  ;;  %v11062_v34 = vadd.f32 %v11022_v1, %v4036_v63 }
 0x813   : > { %v11065_v44 = vadd.f32 %v7935_v5, %v11004_v19  ;;  %v4039_v35 = vpop.f32.mrb[143].mxu1  ;;  %v4303_v56 = vsel %vm1495_vm2, %v11057_v39, -inf }
 0x814   : > { %4304 = vmax.xlane.f32.xlu0 %v4303_v56  ;;  %v11070_v33 = vadd.f32 %v11009_v28, %v4039_v35  ;;  %v4297_v59 = vsel %vm1495_vm2, %v11062_v34, -inf }
 0x815   : > { %v4306_v10 = vsel %vm1495_vm2, %v11065_v44, -inf }
 0x816   : > { %4307 = vmax.xlane.f32.xlu1 %v4306_v10  ;;  %v4300_v63 = vsel %vm1495_vm2, %v11070_v33, -inf }
 0x818   : > { %4298 = vmax.xlane.f32.xlu0 %v4297_v59 }
 0x81a   : > { %4301 = vmax.xlane.f32.xlu1 %v4300_v63 }
 0x828   : > { %v7946_v5 = vpop.f32.mrb[144].mxu1 }
 0x829   : > { %v11079_v17 = vadd.f32 %v7946_v5, %v10961_v11  ;;  %v4125_v56 = vpop.f32.mrb[145].mxu1 }
 0x82a   : > { %v7947_v48 = vpop.f32.mrb[146].mxu1  ;;  %v11082_v35 = vadd.f32 %v10966_v25, %v4125_v56 }
 0x82b   : > { %v11085_v61 = vadd.f32 %v7947_v48, %v10984_v47  ;;  %v4128_v10 = vpop.f32.mrb[147].mxu1  ;;  %v4315_v59 = vsel %vm1495_vm2, %v11079_v17, -inf }
 0x82c   : > { %4316 = vmax.xlane.f32.xlu0 %v4315_v59  ;;  %v11090_v0 = vadd.f32 %v10974_v9, %v4128_v10  ;;  %v4309_v5 = vsel %vm1495_vm2, %v11082_v35, -inf }
 0x82d   : > { %v4318_v63 = vsel %vm1495_vm2, %v11085_v61, -inf }
 0x82e   : > { %4319 = vmax.xlane.f32.xlu1 %v4318_v63  ;;  %v4312_v29 = vsel %vm1495_vm2, %v11090_v0, -inf }
 0x830   : > { %4310 = vmax.xlane.f32.xlu0 %v4309_v5  ;;  %v7950_v56 = vpop.f32.mrb[148].mxu1 }
 0x831   : > { %v11097_v48 = vadd.f32 %v7950_v56, %v10999_v16  ;;  %v4141_v20 = vpop.f32.mrb[149].mxu1 }
 0x832   : > { %4313 = vmax.xlane.f32.xlu1 %v4312_v29  ;;  %v7951_v59 = vpop.f32.mrb[150].mxu1  ;;  %v11102_v10 = vadd.f32 %v11022_v1, %v4141_v20 }
 0x833   : > { %v11105_v27 = vadd.f32 %v7951_v59, %v11004_v19  ;;  %v4144_v63 = vpop.f32.mrb[151].mxu1  ;;  %v4327_v5 = vsel %vm1495_vm2, %v11097_v48, -inf }
 0x834   : > { %4328 = vmax.xlane.f32.xlu0 %v4327_v5  ;;  %v11110_v56 = vadd.f32 %v11009_v28, %v4144_v63  ;;  %v4321_v29 = vsel %vm1495_vm2, %v11102_v10, -inf }
 0x835   : > { %v4330_v18 = vsel %vm1495_vm2, %v11105_v27, -inf }
 0x836   : > { %4331 = vmax.xlane.f32.xlu1 %v4330_v18  ;;  %v4324_v20 = vsel %vm1495_vm2, %v11110_v56, -inf }
 0x838   : > { %4322 = vmax.xlane.f32.xlu0 %v4321_v29 }
 0x83a   : > { %4325 = vmax.xlane.f32.xlu1 %v4324_v20 }
 0x848   : > { %v7962_v59 = vpop.f32.mrb[152].mxu1 }
 0x849   : > { %v11119_v40 = vadd.f32 %v7962_v59, %v10961_v11  ;;  %v4230_v5 = vpop.f32.mrb[153].mxu1 }
 0x84a   : > { %v7963_v36 = vpop.f32.mrb[154].mxu1  ;;  %v11122_v63 = vadd.f32 %v10966_v25, %v4230_v5 }
 0x84b   : > { %v11125_v42 = vadd.f32 %v7963_v36, %v10984_v47  ;;  %v4233_v18 = vpop.f32.mrb[155].mxu1  ;;  %v4339_v29 = vsel %vm1495_vm2, %v11119_v40, -inf }
 0x84c   : > { %4340 = vmax.xlane.f32.xlu0 %v4339_v29  ;;  %v11130_v7 = vadd.f32 %v10974_v9, %v4233_v18  ;;  %v4333_v20 = vsel %vm1495_vm2, %v11122_v63, -inf }
 0x84d   : > { %v4342_v11 = vsel %vm1495_vm2, %v11125_v42, -inf }
 0x84e   : > { %4343 = vmax.xlane.f32.xlu1 %v4342_v11  ;;  %v4336_v59 = vsel %vm1495_vm2, %v11130_v7, -inf }
 0x850   : > { %4334 = vmax.xlane.f32.xlu0 %v4333_v20  ;;  %v7966_v25 = vpop.f32.mrb[156].mxu1 }
 0x851   : > { %v11137_v36 = vadd.f32 %v7966_v25, %v10999_v16  ;;  %v4246_v47 = vpop.f32.mrb[157].mxu1 }
 0x852   : > { %4337 = vmax.xlane.f32.xlu1 %v4336_v59  ;;  %v7967_v5 = vpop.f32.mrb[158].mxu1  ;;  %v11142_v9 = vadd.f32 %v11022_v1, %v4246_v47  ;;  %v11158_v1 = vpop.permute.xlu1 %4809 }
 0x853   : > { %v11145_v18 = vadd.f32 %v7967_v5, %v11004_v19  ;;  %v4249_v29 = vpop.f32.mrb[159].mxu1  ;;  %v4351_v11 = vsel %vm1495_vm2, %v11137_v36, -inf  ;;  %v11160_v47 = vpop.permute.xlu0 %4811 }
 0x854   : > { %4352 = vmax.xlane.f32.xlu0 %v4351_v11  ;;  %v11150_v16 = vadd.f32 %v11009_v28, %v4249_v29  ;;  %v4345_v25 = vsel %vm1495_vm2, %v11142_v9, -inf }
 0x855   : > { %v4354_v20 = vsel %vm1495_vm2, %v11145_v18, -inf }
 0x856   : > { %4355 = vmax.xlane.f32.xlu1 %v4354_v20  ;;  %v4348_v19 = vsel %vm1495_vm2, %v11150_v16, -inf  ;;  %v11162_v59 = vpop.permute.xlu1 %4813 }
 0x858   : > { %4346 = vmax.xlane.f32.xlu0 %v4345_v25 }
 0x85a   : > { %4349 = vmax.xlane.f32.xlu1 %v4348_v19 }
 0x879   : > { %v4269_v28 = vpop.xlane.xlu0 %4268 }
 0x87a   : > { %v4359_v5 = vsub.f32 %v10969_v14, %v4269_v28 }
 0x87c   : > { %v4393_v29 = vmul.f32 1.442695, %v4359_v5  ;;  %v4266_v11 = vpop.xlane.xlu1 %4265 }
 0x87d   : > { %v4263_v20 = vpop.xlane.xlu0 %4262  ;;  %v4358_v25 = vsub.f32 %v10987_v31, %v4266_v11 }
 0x87e   : > { %8684 = vpow2.f32 %v4393_v29  ;;  %v4357_v43 = vsub.f32 %v10977_v57, %v4263_v20 }
 0x87f   : > { %v4391_v62 = vmul.f32 1.442695, %v4358_v25 }
 0x880   : > { %v4389_v3 = vmul.f32 1.442695, %v4357_v43 }
 0x881   : > { %v4272_v8 = vpop.xlane.xlu0 %4271 }
 0x882   : > { %8686 = vpow2.f32 %v4389_v3  ;;  %v4360_v19 = vsub.f32 %v10992_v6, %v4272_v8 }
 0x883   : > { %v4284_v51 = vpop.xlane.xlu1 %4283 }
 0x884   : > { %v4395_v22 = vmul.f32 1.442695, %v4360_v19  ;;  %v4364_v60 = vsub.f32 %v11015_v2, %v4284_v51 }
 0x885   : > { %v4281_v15 = vpop.xlane.xlu0 %4280 }
 0x886   : > { %8688 = vpow2.f32 %v4395_v22  ;;  %v4363_v14 = vsub.f32 %v11012_v41, %v4281_v15  ;;  %v4403_v57 = vmul.f32 1.442695, %v4364_v60 }
 0x887   : > { %v4278_v28 = vpop.xlane.xlu1 %4277  ;;  %8690 = vpow2.f32 %v4391_v62 }
 0x888   : > { %v11170_v5 = vpop.eup %8684  ;;  %v4401_v31 = vmul.f32 1.442695, %v4363_v14  ;;  %v4362_v43 = vsub.f32 %v11025_v4, %v4278_v28 }
 0x889   : > { %v4275_v3 = vpop.xlane.xlu0 %4274  ;;  %v4459_v8 = vsel %vm1495_vm2, %v11170_v5, 0.0 }
 0x88a   : > { %8692 = vpow2.f32 %v4401_v31  ;;  %v4361_v6 = vsub.f32 %v11030_v37, %v4275_v3  ;;  %4460 = vadd.xlane.f32.xlu0 %v4459_v8  ;;  %v4399_v15 = vmul.f32 1.442695, %v4362_v43 }
 0x88b   : > { %8694 = vpow2.f32 %v4403_v57 }
 0x88c   : > { %v11176_v51 = vpop.eup %8686  ;;  %v4397_v22 = vmul.f32 1.442695, %v4361_v6 }
 0x88d   : > { %v4453_v62 = vsel %vm1495_vm2, %v11176_v51, 0.0 }
 0x88e   : > { %8696 = vpow2.f32 %v4397_v22  ;;  %4454 = vadd.xlane.f32.xlu0 %v4453_v62 }
 0x88f   : > { %8698 = vpow2.f32 %v4399_v15 }
 0x890   : > { %v11180_v60 = vpop.eup %8688 }
 0x891   : > { %v4462_v41 = vsel %vm1495_vm2, %v11180_v60, 0.0  ;;  %v11184_v2 = vpop.eup %8690 }
 0x892   : > { %4463 = vadd.xlane.f32.xlu1 %v4462_v41  ;;  %v4456_v37 = vsel %vm1495_vm2, %v11184_v2, 0.0 }
 0x894   : > { %v11186_v4 = vpop.eup %8692 }
 0x895   : > { %v4471_v29 = vsel %vm1495_vm2, %v11186_v4, 0.0  ;;  %v11192_v11 = vpop.eup %8694 }
 0x896   : > { %4457 = vadd.xlane.f32.xlu1 %v4456_v37  ;;  %4472 = vadd.xlane.f32.xlu0 %v4471_v29  ;;  %v4474_v19 = vsel %vm1495_vm2, %v11192_v11, 0.0 }
 0x898   : > { %v11194_v20 = vpop.eup %8696 }
 0x899   : > { %v4293_v25 = vpop.xlane.xlu0 %4292  ;;  %v4465_v14 = vsel %vm1495_vm2, %v11194_v20, 0.0  ;;  %v11200_v28 = vpop.eup %8698 }
 0x89a   : > { %v4367_v57 = vsub.f32 %v11039_v46, %v4293_v25  ;;  %4475 = vadd.xlane.f32.xlu1 %v4474_v19  ;;  %4466 = vadd.xlane.f32.xlu0 %v4465_v14  ;;  %v4468_v6 = vsel %vm1495_vm2, %v11200_v28, 0.0 }
 0x89b   : > { %v4296_v31 = vpop.xlane.xlu1 %4295 }
 0x89c   : > { %v4409_v43 = vmul.f32 1.442695, %v4367_v57  ;;  %v4368_v3 = vsub.f32 %v11045_v55, %v4296_v31 }
 0x89d   : > { %v4287_v8 = vpop.xlane.xlu0 %4286 }
 0x89e   : > { %8700 = vpow2.f32 %v4409_v43  ;;  %v4365_v15 = vsub.f32 %v11042_v54, %v4287_v8  ;;  %4469 = vadd.xlane.f32.xlu1 %v4468_v6  ;;  %v4411_v62 = vmul.f32 1.442695, %v4368_v3 }
 0x89f   : > { %v4290_v22 = vpop.xlane.xlu1 %4289 }
 0x8a0   : > { %v4405_v41 = vmul.f32 1.442695, %v4365_v15  ;;  %v4366_v37 = vsub.f32 %v11050_v38, %v4290_v22 }
 0x8a1   : > { %v4305_v46 = vpop.xlane.xlu0 %4304 }
 0x8a2   : > { %8702 = vpow2.f32 %v4405_v41  ;;  %v4371_v29 = vsub.f32 %v11057_v39, %v4305_v46  ;;  %v4407_v55 = vmul.f32 1.442695, %v4366_v37 }
 0x8a3   : > { %v4308_v25 = vpop.xlane.xlu1 %4307  ;;  %8704 = vpow2.f32 %v4411_v62 }
 0x8a4   : > { %v4417_v19 = vmul.f32 1.442695, %v4371_v29  ;;  %v4372_v14 = vsub.f32 %v11065_v44, %v4308_v25 }
 0x8a5   : > { %v4299_v57 = vpop.xlane.xlu0 %4298 }
 0x8a6   : > { %8706 = vpow2.f32 %v4417_v19  ;;  %v4369_v54 = vsub.f32 %v11062_v34, %v4299_v57  ;;  %v4419_v31 = vmul.f32 1.442695, %v4372_v14 }
 0x8a7   : > { %v4302_v43 = vpop.xlane.xlu1 %4301  ;;  %8708 = vpow2.f32 %v4407_v55 }
 0x8a8   : > { %v11211_v3 = vpop.eup %8700  ;;  %v4413_v38 = vmul.f32 1.442695, %v4369_v54  ;;  %v4370_v8 = vsub.f32 %v11070_v33, %v4302_v43 }
 0x8a9   : > { %v4483_v39 = vsel %vm1495_vm2, %v11211_v3, 0.0 }
 0x8aa   : > { %8710 = vpow2.f32 %v4413_v38  ;;  %v4415_v6 = vmul.f32 1.442695, %v4370_v8  ;;  %4484 = vadd.xlane.f32.xlu1 %v4483_v39 }
 0x8ab   : > { %8712 = vpow2.f32 %v4419_v31 }
 0x8ac   : > { %v11216_v44 = vpop.eup %8702  ;;  %8714 = vpow2.f32 %v4415_v6 }
 0x8ad   : > { %v4477_v34 = vsel %vm1495_vm2, %v11216_v44, 0.0  ;;  %v11220_v15 = vpop.eup %8704 }
 0x8ae   : > { %4478 = vadd.xlane.f32.xlu1 %v4477_v34  ;;  %v4486_v33 = vsel %vm1495_vm2, %v11220_v15, 0.0 }
 0x8b0   : > { %v11222_v22 = vpop.eup %8706 }
 0x8b1   : > { %v4495_v62 = vsel %vm1495_vm2, %v11222_v22, 0.0  ;;  %v11228_v41 = vpop.eup %8708 }
 0x8b2   : > { %4487 = vadd.xlane.f32.xlu1 %v4486_v33  ;;  %4496 = vadd.xlane.f32.xlu0 %v4495_v62  ;;  %v4480_v29 = vsel %vm1495_vm2, %v11228_v41, 0.0 }
 0x8b4   : > { %v11230_v37 = vpop.eup %8710 }
 0x8b5   : > { %v11232_v46 = vpop.eup %8712  ;;  %v4489_v25 = vsel %vm1495_vm2, %v11230_v37, 0.0 }
 0x8b6   : > { %v11238_v55 = vpop.eup %8714  ;;  %4481 = vadd.xlane.f32.xlu1 %v4480_v29  ;;  %4490 = vadd.xlane.f32.xlu0 %v4489_v25  ;;  %v4498_v57 = vsel %vm1495_vm2, %v11232_v46, 0.0 }
 0x8b7   : > { %v4492_v14 = vsel %vm1495_vm2, %v11238_v55, 0.0 }
 0x8b9   : > { %v4317_v19 = vpop.xlane.xlu0 %4316 }
 0x8ba   : > { %v4375_v54 = vsub.f32 %v11079_v17, %v4317_v19  ;;  %4493 = vadd.xlane.f32.xlu1 %v4492_v14  ;;  %4499 = vadd.xlane.f32.xlu0 %v4498_v57 }
 0x8bb   : > { %v4320_v31 = vpop.xlane.xlu1 %4319 }
 0x8bc   : > { %v4425_v43 = vmul.f32 1.442695, %v4375_v54  ;;  %v4376_v38 = vsub.f32 %v11085_v61, %v4320_v31 }
 0x8bd   : > { %v4311_v8 = vpop.xlane.xlu0 %4310 }
 0x8be   : > { %8716 = vpow2.f32 %v4425_v43  ;;  %v4427_v39 = vmul.f32 1.442695, %v4376_v38  ;;  %v4373_v6 = vsub.f32 %v11082_v35, %v4311_v8 }
 0x8bf   : > { %v4314_v34 = vpop.xlane.xlu1 %4313 }
 0x8c0   : > { %8718 = vpow2.f32 %v4427_v39  ;;  %v4421_v33 = vmul.f32 1.442695, %v4373_v6  ;;  %v4374_v62 = vsub.f32 %v11090_v0, %v4314_v34 }
 0x8c1   : > { %v4329_v29 = vpop.xlane.xlu0 %4328 }
 0x8c2   : > { %8720 = vpow2.f32 %v4421_v33  ;;  %v4423_v25 = vmul.f32 1.442695, %v4374_v62  ;;  %v4379_v17 = vsub.f32 %v11097_v48, %v4329_v29 }
 0x8c3   : > { %v4332_v19 = vpop.xlane.xlu1 %4331 }
 0x8c4   : > { %8722 = vpow2.f32 %v4423_v25  ;;  %v4433_v14 = vmul.f32 1.442695, %v4379_v17  ;;  %v4380_v61 = vsub.f32 %v11105_v27, %v4332_v19 }
 0x8c5   : > { %v4323_v57 = vpop.xlane.xlu0 %4322 }
 0x8c6   : > { %8724 = vpow2.f32 %v4433_v14  ;;  %v4435_v54 = vmul.f32 1.442695, %v4380_v61  ;;  %v4377_v35 = vsub.f32 %v11102_v10, %v4323_v57 }
 0x8c7   : > { %v4326_v31 = vpop.xlane.xlu1 %4325 }
 0x8c8   : > { %v11251_v43 = vpop.eup %8716  ;;  %8726 = vpow2.f32 %v4435_v54  ;;  %v4429_v0 = vmul.f32 1.442695, %v4377_v35  ;;  %v4378_v38 = vsub.f32 %v11110_v56, %v4326_v31 }
 0x8c9   : > { %v4507_v48 = vsel %vm1495_vm2, %v11251_v43, 0.0 }
 0x8ca   : > { %v11256_v8 = vpop.eup %8718  ;;  %8728 = vpow2.f32 %v4429_v0  ;;  %v4431_v39 = vmul.f32 1.442695, %v4378_v38  ;;  %4508 = vadd.xlane.f32.xlu0 %v4507_v48 }
 0x8cb   : > { %v4510_v10 = vsel %vm1495_vm2, %v11256_v8, 0.0 }
 0x8cc   : > { %v11258_v27 = vpop.eup %8720  ;;  %8730 = vpow2.f32 %v4431_v39 }
 0x8cd   : > { %v4501_v6 = vsel %vm1495_vm2, %v11258_v27, 0.0 }
 0x8ce   : > { %v11264_v34 = vpop.eup %8722  ;;  %4511 = vadd.xlane.f32.xlu0 %v4510_v10  ;;  %4502 = vadd.xlane.f32.xlu1 %v4501_v6 }
 0x8cf   : > { %v4504_v33 = vsel %vm1495_vm2, %v11264_v34, 0.0 }
 0x8d0   : > { %v11266_v56 = vpop.eup %8724 }
 0x8d1   : > { %v4519_v62 = vsel %vm1495_vm2, %v11266_v56, 0.0 }
 0x8d2   : > { %v11272_v29 = vpop.eup %8726  ;;  %4505 = vadd.xlane.f32.xlu0 %v4504_v33  ;;  %4520 = vadd.xlane.f32.xlu1 %v4519_v62 }
 0x8d3   : > { %v4522_v17 = vsel %vm1495_vm2, %v11272_v29, 0.0 }
 0x8d4   : > { %v11274_v25 = vpop.eup %8728 }
 0x8d5   : > { %v4513_v19 = vsel %vm1495_vm2, %v11274_v25, 0.0 }
 0x8d6   : > { %v11280_v14 = vpop.eup %8730  ;;  %4523 = vadd.xlane.f32.xlu0 %v4522_v17  ;;  %4514 = vadd.xlane.f32.xlu1 %v4513_v19 }
 0x8d7   : > { %v4516_v57 = vsel %vm1495_vm2, %v11280_v14, 0.0 }
 0x8d9   : > { %v4341_v61 = vpop.xlane.xlu0 %4340 }
 0x8da   : > { %v4383_v54 = vsub.f32 %v11119_v40, %v4341_v61  ;;  %4517 = vadd.xlane.f32.xlu0 %v4516_v57 }
 0x8db   : > { %v4344_v35 = vpop.xlane.xlu1 %4343 }
 0x8dc   : > { %v4441_v31 = vmul.f32 1.442695, %v4383_v54  ;;  %v4384_v0 = vsub.f32 %v11125_v42, %v4344_v35 }
 0x8dd   : > { %v4335_v38 = vpop.xlane.xlu0 %4334 }
 0x8de   : > { %8732 = vpow2.f32 %v4441_v31  ;;  %v4443_v48 = vmul.f32 1.442695, %v4384_v0  ;;  %v4381_v39 = vsub.f32 %v11122_v63, %v4335_v38 }
 0x8df   : > { %v4338_v10 = vpop.xlane.xlu1 %4337 }
 0x8e0   : > { %8734 = vpow2.f32 %v4443_v48  ;;  %v4437_v6 = vmul.f32 1.442695, %v4381_v39  ;;  %v4382_v33 = vsub.f32 %v11130_v7, %v4338_v10 }
 0x8e1   : > { %v4353_v62 = vpop.xlane.xlu0 %4352 }
 0x8e2   : > { %8736 = vpow2.f32 %v4437_v6  ;;  %v4439_v17 = vmul.f32 1.442695, %v4382_v33  ;;  %v4387_v40 = vsub.f32 %v11137_v36, %v4353_v62 }
 0x8e3   : > { %v4356_v19 = vpop.xlane.xlu1 %4355 }
 0x8e4   : > { %8738 = vpow2.f32 %v4439_v17  ;;  %v4449_v61 = vmul.f32 1.442695, %v4387_v40  ;;  %v4388_v42 = vsub.f32 %v11145_v18, %v4356_v19 }
 0x8e5   : > { %v4347_v57 = vpop.xlane.xlu0 %4346 }
 0x8e6   : > { %8740 = vpow2.f32 %v4449_v61  ;;  %v4451_v54 = vmul.f32 1.442695, %v4388_v42  ;;  %v4385_v63 = vsub.f32 %v11142_v9, %v4347_v57 }
 0x8e7   : > { %v4350_v35 = vpop.xlane.xlu1 %4349 }
 0x8e8   : > { %v11291_v31 = vpop.eup %8732  ;;  %8742 = vpow2.f32 %v4451_v54  ;;  %v4445_v7 = vmul.f32 1.442695, %v4385_v63  ;;  %v4386_v0 = vsub.f32 %v11150_v16, %v4350_v35  ;;  %v12552_v35 = vld [vmem:[#allocation14_spill] sm:$0xff] }
 0x8e9   : > { %v4531_v36 = vsel %vm1495_vm2, %v11291_v31, 0.0 }
 0x8ea   : > { %v11296_v38 = vpop.eup %8734  ;;  %8744 = vpow2.f32 %v4445_v7  ;;  %v4447_v48 = vmul.f32 1.442695, %v4386_v0  ;;  %4532 = vadd.xlane.f32.xlu1 %v4531_v36  ;;  %v12553_v0 = vld [vmem:[#allocation18_spill] sm:$0xff] }
 0x8eb   : > { %v4534_v18 = vsel %vm1495_vm2, %v11296_v38, 0.0 }
 0x8ec   : > { %v11300_v39 = vpop.eup %8736  ;;  %8746 = vpow2.f32 %v4447_v48  ;;  %4535 = vadd.xlane.f32.xlu0 %v4534_v18 }
 0x8ed   : > { %v4525_v9 = vsel %vm1495_vm2, %v11300_v39, 0.0 }
 0x8ee   : > { %v11304_v10 = vpop.eup %8738  ;;  %4526 = vadd.xlane.f32.xlu1 %v4525_v9 }
 0x8ef   : > { %v4528_v16 = vsel %vm1495_vm2, %v11304_v10, 0.0 }
 0x8f0   : > { %v11308_v6 = vpop.eup %8740  ;;  %4529 = vadd.xlane.f32.xlu0 %v4528_v16 }
 0x8f1   : > { %v4543_v33 = vsel %vm1495_vm2, %v11308_v6, 0.0 }
 0x8f2   : > { %v11312_v62 = vpop.eup %8742  ;;  %4544 = vadd.xlane.f32.xlu1 %v4543_v33  ;;  %v12554_v33 = vld [vmem:[#allocation13_spill] sm:$0xff] }
 0x8f3   : > { %v4546_v17 = vsel %vm1495_vm2, %v11312_v62, 0.0 }
 0x8f4   : > { %v11316_v40 = vpop.eup %8744  ;;  %4547 = vadd.xlane.f32.xlu0 %v4546_v17  ;;  %v12555_v17 = vld [vmem:[#allocation12_spill] sm:$0xff] }
 0x8f5   : > { %v4537_v19 = vsel %vm1495_vm2, %v11316_v40, 0.0 }
 0x8f6   : > { %v11320_v61 = vpop.eup %8746  ;;  %4538 = vadd.xlane.f32.xlu1 %v4537_v19 }
 0x8f7   : > { %v4540_v42 = vsel %vm1495_vm2, %v11320_v61, 0.0 }
 0x8f8   : > { %4541 = vadd.xlane.f32.xlu0 %v4540_v42 }
 0x907   : > { %4898 = vrot.lane.b32.xlu1 %v12395_v52, %s8949_s19 }
 0x90b   : > { %4900 = vrot.lane.b32.xlu1 %v12396_v13, %s8949_s19 }
 0x90e   : > { %4896 = vrot.lane.b32.xlu0 %v12394_v12, %s8949_s19 }
 0x90f   : > { %4902 = vrot.lane.b32.xlu1 %v12398_v23, %s8949_s19 }
 0x912   : > { %5263 = vrot.lane.b32.xlu0 %v12444_v58, %s8950_s22 }
 0x913   : > { %5265 = vrot.lane.b32.xlu1 %v12442_v50, %s8950_s22 }
 0x916   : > { %5267 = vrot.lane.b32.xlu0 %v12446_v30, %s8950_s22  ;;  %v12548_v30 = vld [vmem:[#allocation15_spill] sm:$0xff] }
 0x917   : > { %5269 = vrot.lane.b32.xlu1 %v12443_v24, %s8950_s22  ;;  %v4461_v57 = vpop.xlane.xlu0 %4460  ;;  %v12549_v24 = vld [vmem:[#allocation19_spill] sm:$0xff] }
 0x91a   : > { %5255 = vrot.lane.b32.xlu0 %v12448_v32, %s8950_s22 }
 0x91b   : > { %5368 = vrot.lane.b32.xlu1 %v12445_v45, %s8950_s22  ;;  %v4455_v58 = vpop.xlane.xlu0 %4454  ;;  %v12550_v45 = vld [vmem:[#allocation9_spill] sm:$0xff] }
 0x91e   : > { %5257 = vrot.lane.b32.xlu0 %v12449_v49, %s8950_s22  ;;  %v12551_v49 = vld [vmem:[#allocation8_spill] sm:$0xff] }
 0x91f   : > { %5370 = vrot.lane.b32.xlu1 %v12447_v53, %s8950_s22  ;;  %v4464_v50 = vpop.xlane.xlu1 %4463 }
 0x920   : > { %8748 = vrcp.f32 %v4464_v50 }
 0x921   : > { %8750 = vrcp.f32 %v4455_v58 }
 0x922   : > { %5372 = vrot.lane.b32.xlu0 %v12548_v30, %s8950_s22  ;;  %8752 = vrcp.f32 %v4461_v57  ;;  %v12556_v30 = vld [vmem:[#allocation23_spill] sm:$0xff] }
 0x923   : > { %5473 = vrot.lane.b32.xlu1 %v12549_v24, %s8950_s22  ;;  %v4458_v32 = vpop.xlane.xlu1 %4457  ;;  %v4473_v54 = vpop.xlane.xlu0 %4472 }
 0x924   : > { %8754 = vrcp.f32 %v4458_v32 }
 0x926   : > { %5259 = vrot.lane.b32.xlu0 %v12550_v45, %s8950_s22 }
 0x927   : > { %5261 = vrot.lane.b32.xlu1 %v12551_v49, %s8950_s22  ;;  %v4476_v53 = vpop.xlane.xlu1 %4475  ;;  %v4467_v63 = vpop.xlane.xlu0 %4466  ;;  %v12559_v49 = vld [vmem:[#allocation16_spill] sm:$0xff] }
 0x928   : > { %8756 = vrcp.f32 %v4476_v53 }
 0x929   : > { %8758 = vrcp.f32 %v4467_v63 }
 0x92a   : > { %5374 = vrot.lane.b32.xlu0 %v12552_v35, %s8950_s22  ;;  %v8749_v7 = vpop.eup %8748  ;;  %8760 = vrcp.f32 %v4473_v54 }
 0x92b   : > { %5475 = vrot.lane.b32.xlu1 %v12553_v0, %s8950_s22  ;;  %v4470_v36 = vpop.xlane.xlu1 %4469  ;;  %v8751_v48 = vpop.eup %8750  ;;  %v4584_v16 = vmul.f32 %v8749_v7, %v11180_v60  ;;  %v12557_v60 = vld [vmem:[#allocation27_spill] sm:$0xff]  ;;  %v12560_v7 = vld [vmem:[#allocation22_spill] sm:$0xff] }
 0x92c   : > { %8762 = vrcp.f32 %v4470_v36  ;;  %v8753_v18 = vpop.eup %8752  ;;  %v4581_v19 = vmul.f32 %v8751_v48, %v11176_v51  ;;  %v12561_v36 = vld [vmem:[#allocation26_spill] sm:$0xff]  ;;  %v11401_v48 = vld [vmem:[%s12191_s7 + $0x8] sm:$0xf] }
 0x92d   : > { %v4583_v57 = vmul.f32 %v8753_v18, %v11170_v5  ;;  %v12558_v5 = vld [vmem:[#allocation17_spill] sm:$0xff] }
 0x92e   : > { %v8755_v9 = vpop.eup %8754  ;;  %5360 = vrot.lane.b32.xlu0 %v12554_v33, %s8950_s22  ;;  %v12566_v33 = vld [vmem:[#allocation24_spill] sm:$0xff] }
 0x92f   : > { %5362 = vrot.lane.b32.xlu1 %v12555_v17, %s8950_s22  ;;  %v4582_v42 = vmul.f32 %v8755_v9, %v11184_v2  ;;  %v4614_v50 = vpack.c.bf16 %v4584_v16, %v4583_v57  ;;  %v12565_v9 = vld [vmem:[#allocation25_spill] sm:$0xff] }
 0x931   : > { %v4613_v58 = vpack.c.bf16 %v4582_v42, %v4581_v19  ;;  %v12568_v42 = vld [vmem:[#allocation29_spill] sm:$0xff] }
 0x932   : > { %5477 = vrot.lane.b32.xlu0 %v12556_v30, %s8950_s22  ;;  %v8757_v24 = vpop.eup %8756 }
 0x933   : > { %5578 = vrot.lane.b32.xlu1 %v12557_v60, %s8950_s22  ;;  %7976 = vmatprep.mubr.msk.bf16.mxu0 %vm1495_vm2, %v4613_v58  ;;  %v8759_v32 = vpop.eup %8758  ;;  %v4588_v2 = vmul.f32 %v8757_v24, %v11192_v11  ;;  %v12569_v58 = vld [vmem:[#allocation28_spill] sm:$0xff] }
 0x934   : > { %7977 = vmatmul.mubr.msk.bf16.vlgmr.msra.gmra.mrb[152].mxu0 %vm1495_vm2, %v4614_v50  ;;  %v8761_v54 = vpop.eup %8760  ;;  %v4585_v53 = vmul.f32 %v8759_v32, %v11194_v20  ;;  %v12563_v20 = vld [vmem:[#allocation20_spill] sm:$0xff]  ;;  %v12570_v32 = vld [vmem:[#allocation33_spill] sm:$0xff] }
 0x935   : > { %8001 = vmatpush3.bf16.msra.mxu0 %v10755_v21  ;;  %v4587_v35 = vmul.f32 %v8761_v54, %v11186_v4  ;;  %v12562_v4 = vld [vmem:[#allocation21_spill] sm:$0xff]  ;;  %v12571_v54 = vld [vmem:[#allocation32_spill] sm:$0xff] }
 0x936   : > { %v8763_v51 = vpop.eup %8762  ;;  %5364 = vrot.lane.b32.xlu0 %v12558_v5, %s8950_s22  ;;  %8002 = vmatprep.subr.bf16.mxu0 %v11158_v1 }
 0x937   : > { %v4485_v45 = vpop.xlane.xlu1 %4484  ;;  %5366 = vrot.lane.b32.xlu1 %v12559_v49, %s8950_s22  ;;  %v4586_v63 = vmul.f32 %v8763_v51, %v11200_v28  ;;  %v4616_v0 = vpack.c.bf16 %v4588_v2, %v4587_v35  ;;  %v12572_v35 = vld [vmem:[#allocation35_spill] sm:$0xff] }
 0x939   : > { %8003 = vmatpush3.bf16.msra.mxu0 %v11158_v1  ;;  %v4615_v21 = vpack.c.bf16 %v4586_v63, %v4585_v53 }
 0x93a   : > { %5479 = vrot.lane.b32.xlu0 %v12560_v7, %s8950_s22  ;;  %8004 = vmatprep.subr.bf16.mxu0 %v11160_v47 }
 0x93b   : > { %v4479_v11 = vpop.xlane.xlu1 %4478  ;;  %5580 = vrot.lane.b32.xlu1 %v12561_v36, %s8950_s22  ;;  %7980 = vmatprep.mubr.msk.bf16.mxu0 %vm1495_vm2, %v4615_v21  ;;  %v12573_v21 = vld [vmem:[#allocation34_spill] sm:$0xff] }
 0x93c   : > { %7981 = vmatmul.mubr.msk.bf16.gmra.mrb[156].mxu0 %vm1495_vm2, %v4616_v0  ;;  %v12574_v0 = vld [vmem:[#allocation36_spill] sm:$0xff]  ;;  %v12575_v36 = vld [vmem:[#allocation38_spill] sm:$0xff] }
 0x93d   : > { %8005 = vmatpush3.bf16.msra.mxu0 %v11160_v47  ;;  %v12564_v47 = vld [vmem:[#allocation31_spill] sm:$0xff] }
 0x93e   : > { %5465 = vrot.lane.b32.xlu0 %v12562_v4, %s8950_s22  ;;  %8006 = vmatprep.subr.bf16.mxu0 %v11162_v59 }
 0x93f   : > { %v4488_v1 = vpop.xlane.xlu1 %4487  ;;  %5467 = vrot.lane.b32.xlu1 %v12563_v20, %s8950_s22  ;;  %v4497_v28 = vpop.xlane.xlu0 %4496 }
 0x940   : > { %8764 = vrcp.f32 %v4488_v1 }
 0x941   : > { %8007 = vmatpush3.bf16.msra.mxu0 %v11162_v59  ;;  %8766 = vrcp.f32 %v4479_v11  ;;  %v12567_v59 = vld [vmem:[#allocation30_spill] sm:$0xff] }
 0x942   : > { %5582 = vrot.lane.b32.xlu0 %v12564_v47, %s8950_s22  ;;  %8377 = vmatprep.subr.msk.bf16.mxu0 %vm3455_vm3, %v11401_v48  ;;  %8768 = vrcp.f32 %v4485_v45 }
 0x943   : > { %v4482_v18 = vpop.xlane.xlu1 %4481  ;;  %5469 = vrot.lane.b32.xlu1 %v12565_v9, %s8950_s22  ;;  %v4491_v16 = vpop.xlane.xlu0 %4490  ;;  %v12579_v9 = vld [vmem:[#allocation41_spill] sm:$0xff] }
 0x944   : > { %8770 = vrcp.f32 %v4482_v18 }
 0x945   : > { %8772 = vrcp.f32 %v4491_v16  ;;  %v12580_v16 = vld [vmem:[#allocation43_spill] sm:$0xff] }
 0x946   : > { %5471 = vrot.lane.b32.xlu0 %v12566_v33, %s8950_s22 }
 0x947   : > { %v4494_v17 = vpop.xlane.xlu1 %4493  ;;  %5584 = vrot.lane.b32.xlu1 %v12567_v59, %s8950_s22  ;;  %v4500_v19 = vpop.xlane.xlu0 %4499 }
 0x948   : > { %8774 = vrcp.f32 %v4494_v17 }
 0x949   : > { %8776 = vrcp.f32 %v4500_v19 }
 0x94a   : > { %5570 = vrot.lane.b32.xlu0 %v12568_v42, %s8950_s22  ;;  %v8765_v57 = vpop.eup %8764  ;;  %8778 = vrcp.f32 %v4497_v28  ;;  %v12577_v28 = vld [vmem:[#allocation39_spill] sm:$0xff] }
 0x94b   : > { %5572 = vrot.lane.b32.xlu1 %v12569_v58, %s8950_s22  ;;  %v8767_v50 = vpop.eup %8766  ;;  %v4592_v60 = vmul.f32 %v8765_v57, %v11220_v15 }
 0x94c   : > { %v8769_v30 = vpop.eup %8768  ;;  %v4589_v51 = vmul.f32 %v8767_v50, %v11216_v44 }
 0x94d   : > { %v4591_v45 = vmul.f32 %v8769_v30, %v11211_v3 }
 0x94e   : > { %v8771_v24 = vpop.eup %8770  ;;  %5574 = vrot.lane.b32.xlu0 %v12570_v32, %s8950_s22 }
 0x94f   : > { %5576 = vrot.lane.b32.xlu1 %v12571_v54, %s8950_s22  ;;  %v4590_v5 = vmul.f32 %v8771_v24, %v11228_v41  ;;  %v8773_v2 = vpop.eup %8772  ;;  %v4618_v63 = vpack.c.bf16 %v4592_v60, %v4591_v45 }
 0x950   : > { %v4593_v7 = vmul.f32 %v8773_v2, %v11230_v37  ;;  %v12576_v37 = vld [vmem:[#allocation37_spill] sm:$0xff] }
 0x951   : > { %v4617_v49 = vpack.c.bf16 %v4590_v5, %v4589_v51  ;;  %v5051_v5 = vsel %vm3455_vm3, %v11401_v48, 0 }
 0x952   : > { %v8775_v53 = vpop.eup %8774  ;;  %6043 = vrot.lane.b32.xlu0 %v12572_v35, %s8950_s22 }
 0x953   : > { %v8777_v15 = vpop.eup %8776  ;;  %7992 = vmatprep.mubr.msk.bf16.mxu1 %vm1495_vm2, %v4617_v49  ;;  %6045 = vrot.lane.b32.xlu1 %v12573_v21, %s8950_s22  ;;  %v4594_v44 = vmul.f32 %v8775_v53, %v11238_v55 }
 0x954   : > { %7993 = vmatmul.mubr.msk.bf16.vlgmr.msra.gmra.mrb[160].mxu1 %vm1495_vm2, %v4618_v63  ;;  %v8779_v41 = vpop.eup %8778  ;;  %v4596_v11 = vmul.f32 %v8777_v15, %v11232_v46  ;;  %v12578_v46 = vld [vmem:[#allocation40_spill] sm:$0xff] }
 0x955   : > { %v4619_v3 = vpack.c.bf16 %v4594_v44, %v4593_v7  ;;  %v4595_v1 = vmul.f32 %v8779_v41, %v11222_v22 }
 0x956   : > { %6047 = vrot.lane.b32.xlu0 %v12574_v0, %s8950_s22 }
 0x957   : > { %6132 = vrot.lane.b32.xlu1 %v12575_v36, %s8950_s22  ;;  %7996 = vmatprep.mubr.msk.bf16.mxu1 %vm1495_vm2, %v4619_v3  ;;  %v4509_v4 = vpop.xlane.xlu0 %4508  ;;  %v4620_v55 = vpack.c.bf16 %v4596_v11, %v4595_v1 }
 0x95a   : > { %6049 = vrot.lane.b32.xlu0 %v12576_v37, %s8950_s22 }
 0x95b   : > { %v4503_v20 = vpop.xlane.xlu1 %4502  ;;  %6134 = vrot.lane.b32.xlu1 %v12577_v28, %s8950_s22  ;;  %v4512_v47 = vpop.xlane.xlu0 %4511 }
 0x95c   : > { %7997 = vmatmul.mubr.msk.bf16.gmra.mrb[164].mxu1 %vm1495_vm2, %v4620_v55  ;;  %8780 = vrcp.f32 %v4512_v47 }
 0x95d   : > { %8782 = vrcp.f32 %v4503_v20 }
 0x95e   : > { %6136 = vrot.lane.b32.xlu0 %v12578_v46, %s8950_s22  ;;  %8784 = vrcp.f32 %v4509_v4 }
 0x95f   : > { %v4521_v18 = vpop.xlane.xlu1 %4520  ;;  %6138 = vrot.lane.b32.xlu1 %v12579_v9, %s8950_s22  ;;  %v4506_v22 = vpop.xlane.xlu0 %4505 }
 0x960   : > { %8786 = vrcp.f32 %v4506_v22 }
 0x962   : > { %6221 = vrot.lane.b32.xlu0 %v12580_v16, %s8950_s22 }
 0x963   : > { %v4515_v33 = vpop.xlane.xlu1 %4514  ;;  %v4524_v17 = vpop.xlane.xlu0 %4523 }
 0x964   : > { %8788 = vrcp.f32 %v4515_v33 }
 0x965   : > { %8790 = vrcp.f32 %v4524_v17 }
 0x966   : > { %8792 = vrcp.f32 %v4521_v18  ;;  %v8781_v19 = vpop.eup %8780 }
 0x967   : > { %v4518_v59 = vpop.xlane.xlu0 %4517  ;;  %v8783_v42 = vpop.eup %8782  ;;  %v4600_v50 = vmul.f32 %v8781_v19, %v11256_v8 }
 0x968   : > { %8794 = vrcp.f32 %v4518_v59  ;;  %v8785_v57 = vpop.eup %8784  ;;  %v4597_v30 = vmul.f32 %v8783_v42, %v11258_v27 }
 0x969   : > { %v4599_v60 = vmul.f32 %v8785_v57, %v11251_v43 }
 0x96a   : > { %v8787_v58 = vpop.eup %8786 }
 0x96b   : > { %v4598_v24 = vmul.f32 %v8787_v58, %v11264_v34  ;;  %v4622_v51 = vpack.c.bf16 %v4600_v50, %v4599_v60 }
 0x96d   : > { %v4621_v32 = vpack.c.bf16 %v4598_v24, %v4597_v30 }
 0x96e   : > { %v8789_v54 = vpop.eup %8788 }
 0x96f   : > { %v8791_v2 = vpop.eup %8790  ;;  %8008 = vmatprep.mubr.msk.bf16.mxu0 %vm1495_vm2, %v4621_v32  ;;  %v4601_v8 = vmul.f32 %v8789_v54, %v11274_v25 }
 0x970   : > { %v8793_v45 = vpop.eup %8792  ;;  %8009 = vmatmul.mubr.msk.bf16.vlgmr.msra.gmra.mrb[160].mxu0 %vm1495_vm2, %v4622_v51  ;;  %v4604_v43 = vmul.f32 %v8791_v2, %v11272_v29 }
 0x971   : > { %8033 = vmatpush3.bf16.msra.mxu0 %v5051_v5  ;;  %v4603_v53 = vmul.f32 %v8793_v45, %v11266_v56 }
 0x972   : > { %v8795_v49 = vpop.eup %8794 }
 0x973   : > { %v4602_v27 = vmul.f32 %v8795_v49, %v11280_v14  ;;  %v4624_v48 = vpack.c.bf16 %v4604_v43, %v4603_v53 }
 0x975   : > { %v4623_v34 = vpack.c.bf16 %v4602_v27, %v4601_v8 }
 0x977   : > { %v4533_v63 = vpop.xlane.xlu1 %4532  ;;  %8012 = vmatprep.mubr.msk.bf16.mxu0 %vm1495_vm2, %v4623_v34 }
 0x978   : > { %8013 = vmatmul.mubr.msk.bf16.gmra.mrb[164].mxu0 %vm1495_vm2, %v4624_v48 }
 0x979   : > { %v4536_v35 = vpop.xlane.xlu0 %4535 }
 0x97b   : > { %v4527_v15 = vpop.xlane.xlu1 %4526 }
 0x97c   : > { %8796 = vrcp.f32 %v4527_v15 }
 0x97d   : > { %v4530_v21 = vpop.xlane.xlu0 %4529 }
 0x97e   : > { %8798 = vrcp.f32 %v4530_v21 }
 0x97f   : > { %v4545_v7 = vpop.xlane.xlu1 %4544  ;;  %8800 = vrcp.f32 %v4536_v35 }
 0x981   : > { %v4548_v25 = vpop.xlane.xlu0 %4547 }
 0x983   : > { %v4539_v44 = vpop.xlane.xlu1 %4538 }
 0x985   : > { %v4542_v14 = vpop.xlane.xlu0 %4541 }
 0x986   : > { %v8797_v41 = vpop.eup %8796  ;;  %8802 = vrcp.f32 %v4542_v14 }
 0x987   : > { %v4899_v29 = vpop.permute.xlu1 %4898  ;;  %8804 = vrcp.f32 %v4533_v63  ;;  %v4605_v0 = vmul.f32 %v8797_v41, %v11300_v39 }
 0x988   : > { %v8799_v3 = vpop.eup %8798  ;;  %8806 = vrcp.f32 %v4539_v44 }
 0x989   : > { %v4897_v56 = vpop.permute.xlu0 %4896  ;;  %v4606_v11 = vmul.f32 %v8799_v3, %v11304_v10  ;;  %8808 = vrcp.f32 %v4548_v25  ;;  %v8801_v55 = vpop.eup %8800 }
 0x98a   : > { %8016 = vmatprep.subr.bf16.mxu1 %v4897_v56  ;;  %8810 = vrcp.f32 %v4545_v7  ;;  %v4608_v46 = vmul.f32 %v8801_v55, %v11296_v38 }
 0x98b   : > { %v4901_v36 = vpop.permute.xlu1 %4900  ;;  %8017 = vmatpush3.bf16.msra.mxu1 %v4897_v56  ;;  %v4625_v4 = vpack.c.bf16 %v4606_v11, %v4605_v0 }
 0x98c   : > { %8018 = vmatprep.subr.bf16.mxu1 %v4899_v29 }
 0x98d   : > { %8024 = vmatprep.mubr.msk.bf16.mxu1 %vm1495_vm2, %v4625_v4  ;;  %v5264_v1 = vpop.permute.xlu0 %5263 }
 0x98f   : > { %v4903_v37 = vpop.permute.xlu1 %4902  ;;  %8019 = vmatpush3.bf16.msra.mxu1 %v4899_v29 }
 0x990   : > { %8020 = vmatprep.subr.bf16.mxu1 %v4901_v36  ;;  %v8803_v28 = vpop.eup %8802 }
 0x991   : > { %v5268_v20 = vpop.permute.xlu0 %5267  ;;  %v8805_v39 = vpop.eup %8804  ;;  %v4610_v9 = vmul.f32 %v8803_v28, %v11320_v61 }
 0x992   : > { %v8807_v10 = vpop.eup %8806  ;;  %v4607_v22 = vmul.f32 %v8805_v39, %v11291_v31  ;;  %v5290_v54 = vsel %vm1138_vm1, %v5268_v20, 0 }
 0x993   : > { %v5266_v47 = vpop.permute.xlu1 %5265  ;;  %8021 = vmatpush3.bf16.msra.mxu1 %v4901_v36  ;;  %v4609_v33 = vmul.f32 %v8807_v10, %v11316_v40  ;;  %v8809_v59 = vpop.eup %8808  ;;  %v5284_v40 = vsel %vm1138_vm1, %v5264_v1, 0 }
 0x994   : > { %8022 = vmatprep.subr.bf16.mxu1 %v4903_v37  ;;  %v4626_v17 = vpack.c.bf16 %v4608_v46, %v4607_v22  ;;  %v8811_v57 = vpop.eup %8810  ;;  %v4612_v61 = vmul.f32 %v8809_v59, %v11312_v62 }
 0x995   : > { %v5256_v18 = vpop.permute.xlu0 %5255  ;;  %v4627_v42 = vpack.c.bf16 %v4610_v9, %v4609_v33  ;;  %v4611_v31 = vmul.f32 %v8811_v57, %v11308_v6  ;;  %v5287_v6 = vsel %vm1138_vm1, %v5266_v47, 0 }
 0x997   : > { %v5270_v16 = vpop.permute.xlu1 %5269  ;;  %8023 = vmatpush3.bf16.msra.mxu1 %v4903_v37  ;;  %v4628_v30 = vpack.c.bf16 %v4612_v61, %v4611_v31 }
 0x998   : > { %8378 = vmatprep.subr.msk.bf16.mxu1 %vm1138_vm1, %v5264_v1  ;;  %v5293_v2 = vsel %vm1138_vm1, %v5270_v16, 0 }
 0x999   : > { %v5258_v19 = vpop.permute.xlu0 %5257 }
 0x99a   : > { %8025 = vmatmul.mubr.msk.bf16.vlgmr.msra.gmra.mrb[168].mxu1 %vm1495_vm2, %v4626_v17 }
 0x99b   : > { %v5369_v38 = vpop.permute.xlu1 %5368  ;;  %8028 = vmatprep.mubr.msk.bf16.mxu1 %vm1495_vm2, %v4627_v42 }
 0x99c   : > { %v5389_v49 = vsel %vm1138_vm1, %v5369_v38, 0 }
 0x99d   : > { %v5373_v58 = vpop.permute.xlu0 %5372 }
 0x99e   : > { %v5395_v35 = vsel %vm1138_vm1, %v5373_v58, 0 }
 0x99f   : > { %v5371_v50 = vpop.permute.xlu1 %5370 }
 0x9a0   : > { %8067 = vmatpush3.bf16.xpose.msra.mxu1 %v5284_v40  ;;  %v5392_v34 = vsel %vm1138_vm1, %v5371_v50, 0 }
 0x9a1   : > { %8379 = vmatprep.subr.msk.bf16.mxu1 %vm1138_vm1, %v5266_v47  ;;  %v5260_v24 = vpop.permute.xlu0 %5259 }
 0x9a2   : > { %8029 = vmatmul.mubr.msk.bf16.gmra.mrb[172].mxu1 %vm1495_vm2, %v4628_v30 }
 0x9a3   : > { %v11481_v60 = vpop.permute.xlu1 %5473  ;;  %8074 = vmatprep.mubr.msk.bf16.mxu1 %vm1138_vm1, %v5256_v18 }
 0x9a4   : > { %8386 = vmatprep.subr.msk.bf16.mxu0 %vm1138_vm1, %v11481_v60 }
 0x9a5   : > { %v5375_v62 = vpop.permute.xlu0 %5374 }
 0x9a6   : > { %v5398_v7 = vsel %vm1138_vm1, %v5375_v62, 0 }
 0x9a7   : > { %v5262_v8 = vpop.permute.xlu1 %5261 }
 0x9a8   : > { %8069 = vmatpush3.bf16.xpose.msra.mxu1 %v5287_v6 }
 0x9a9   : > { %8380 = vmatprep.subr.msk.bf16.mxu1 %vm1138_vm1, %v5268_v20  ;;  %v5361_v32 = vpop.permute.xlu0 %5360 }
 0x9ab   : > { %v11502_v43 = vpop.permute.xlu1 %5475 }
 0x9ad   : > { %v11489_v51 = vpop.permute.xlu0 %5477 }
 0x9ae   : > { %v5500_v61 = vsel %vm1138_vm1, %v11489_v51, 0 }
 0x9af   : > { %v5363_v63 = vpop.permute.xlu1 %5362 }
 0x9b0   : > { %8071 = vmatpush3.bf16.xpose.msra.mxu1 %v5290_v54 }
 0x9b1   : > { %8381 = vmatprep.subr.msk.bf16.mxu1 %vm1138_vm1, %v5270_v16  ;;  %v5365_v5 = vpop.permute.xlu0 %5364  ;;  %v5494_v16 = vsel %vm1138_vm1, %v11481_v60, 0 }
 0x9b3   : > { %v5579_v15 = vpop.permute.xlu1 %5578 }
 0x9b4   : > { %v5599_v41 = vsel %vm1138_vm1, %v5579_v15, 0 }
 0x9b5   : > { %v11494_v45 = vpop.permute.xlu0 %5479 }
 0x9b7   : > { %v5367_v25 = vpop.permute.xlu1 %5366 }
 0x9b8   : > { %8073 = vmatpush3.bf16.xpose.msra.mxu1 %v5293_v2 }
 0x9b9   : > { %8382 = vmatprep.subr.msk.bf16.mxu1 %vm1138_vm1, %v5369_v38  ;;  %v11500_v27 = vpop.permute.xlu0 %5465  ;;  %v5497_v38 = vsel %vm1138_vm1, %v11502_v43, 0 }
 0x9bb   : > { %v5581_v14 = vpop.permute.xlu1 %5580 }
 0x9bc   : > { %v5602_v0 = vsel %vm1138_vm1, %v5581_v14, 0 }
 0x9bd   : > { %v5583_v53 = vpop.permute.xlu0 %5582 }
 0x9be   : > { %v5605_v4 = vsel %vm1138_vm1, %v5583_v53, 0 }
 0x9bf   : > { %8075 = vmatmul.mubr.msk.bf16.vlgmr.msra.gmra.mrb[176].mxu1 %vm1138_vm1, %v5258_v19  ;;  %v11520_v3 = vpop.permute.xlu1 %5467 }
 0x9c0   : > { %8078 = vmatprep.mubr.msk.bf16.mxu1 %vm1138_vm1, %v5260_v24  ;;  %8083 = vmatpush3.bf16.xpose.msra.mxu1 %v5389_v49 }
 0x9c1   : > { %8383 = vmatprep.subr.msk.bf16.mxu1 %vm1138_vm1, %v5371_v50  ;;  %v11508_v48 = vpop.permute.xlu0 %5471 }
 0x9c3   : > { %v11528_v11 = vpop.permute.xlu1 %5469 }
 0x9c5   : > { %v5571_v21 = vpop.permute.xlu0 %5570 }
 0x9c7   : > { %8079 = vmatmul.mubr.msk.bf16.gmra.mrb[180].mxu1 %vm1138_vm1, %v5262_v8  ;;  %v5585_v1 = vpop.permute.xlu1 %5584 }
 0x9c8   : > { %8085 = vmatpush3.bf16.xpose.msra.mxu1 %v5392_v34  ;;  %8090 = vmatprep.mubr.msk.bf16.mxu1 %vm1138_vm1, %v5361_v32  ;;  %v5608_v55 = vsel %vm1138_vm1, %v5585_v1, 0 }
 0x9c9   : > { %8384 = vmatprep.subr.msk.bf16.mxu1 %vm1138_vm1, %v5373_v58  ;;  %v5575_v44 = vpop.permute.xlu0 %5574  ;;  %v5503_v58 = vsel %vm1138_vm1, %v11494_v45, 0 }
 0x9cb   : > { %v5573_v28 = vpop.permute.xlu1 %5572 }
 0x9cd   : > { %v11516_v29 = vpop.permute.xlu0 %6043 }
 0x9cf   : > { %v5577_v39 = vpop.permute.xlu1 %5576 }
 0x9d0   : > { %8087 = vmatpush3.bf16.xpose.msra.mxu1 %v5395_v35 }
 0x9d1   : > { %8385 = vmatprep.subr.msk.bf16.mxu1 %vm1138_vm1, %v5375_v62  ;;  %v11522_v56 = vpop.permute.xlu0 %6047 }
 0x9d5   : > { %v11530_v36 = vpop.permute.xlu0 %6049 }
 0x9d8   : > { %8089 = vmatpush3.bf16.xpose.msra.mxu1 %v5398_v7 }
 0x9d9   : > { %8390 = vmatprep.subr.msk.bf16.mxu1 %vm1138_vm1, %v5579_v15  ;;  %v11534_v37 = vpop.permute.xlu0 %6136 }
 0x9dd   : > { %v6222_v20 = vpop.permute.xlu0 %6221 }
 0x9df   : > { %8091 = vmatmul.mubr.msk.bf16.vlgmr.msra.gmra.mrb[184].mxu1 %vm1138_vm1, %v5363_v63 }
 0x9e0   : > { %8094 = vmatprep.mubr.msk.bf16.mxu1 %vm1138_vm1, %v5365_v5  ;;  %8115 = vmatpush3.bf16.xpose.msra.mxu1 %v5599_v41 }
 0x9e1   : > { %8391 = vmatprep.subr.msk.bf16.mxu1 %vm1138_vm1, %v5581_v14 }
 0x9e7   : > { %8095 = vmatmul.mubr.msk.bf16.gmra.mrb[188].mxu1 %vm1138_vm1, %v5367_v25 }
 0x9e8   : > { %8117 = vmatpush3.bf16.xpose.msra.mxu1 %v5602_v0  ;;  %8122 = vmatprep.mubr.msk.bf16.mxu1 %vm1138_vm1, %v5571_v21 }
 0x9e9   : > { %8392 = vmatprep.subr.msk.bf16.mxu1 %vm1138_vm1, %v5583_v53 }
 0x9f0   : > { %8119 = vmatpush3.bf16.xpose.msra.mxu1 %v5605_v4 }
 0x9f1   : > { %8393 = vmatprep.subr.msk.bf16.mxu1 %vm1138_vm1, %v5585_v1 }
 0x9f8   : > { %8121 = vmatpush3.bf16.xpose.msra.mxu1 %v5608_v55 }
 0x9f9   : > { %8162 = vmatprep.subr.bf16.mxu1 %v6222_v20 }
 0x9ff   : > { %8123 = vmatmul.mubr.msk.bf16.vlgmr.msra.gmra.mrb[192].mxu1 %vm1138_vm1, %v5573_v28 }
 0xa00   : > { %8126 = vmatprep.mubr.msk.bf16.mxu1 %vm1138_vm1, %v5575_v44  ;;  %8163 = vmatpush3.bf16.msra.mxu1 %v6222_v20 }
 0xa07   : > { %8127 = vmatmul.mubr.msk.bf16.gmra.mrb[196].mxu1 %vm1138_vm1, %v5577_v39  ;;  %v7978_v47 = vpop.f32.mrb[152].mxu0 }
 0xa08   : > { %v4687_v10 = vpop.f32.mrb[153].mxu0 }
 0xa09   : > { %v7979_v46 = vpop.f32.mrb[154].mxu0 }
 0xa0a   : > { %v4986_v18 = vpack.c.bf16 %v7979_v46, %v7978_v47  ;;  %v4690_v9 = vpop.f32.mrb[155].mxu0  ;;  %v11603_v46 = vld [vmem:[%s12193_s9 + $0xc8] sm:$0xff] }
 0xa0b   : > { %v4985_v22 = vpack.c.bf16 %v4690_v9, %v4687_v10  ;;  %v6046_v10 = vpop.permute.xlu1 %6045 }
 0xa0d   : > { %8034 = vmatprep.mubr.msk.bf16.mxu0 %vm1138_vm1, %v4985_v22 }
 0xa0e   : > { %8035 = vmatmul.mubr.msk.bf16.vlgmr.msra.gmra.mrb[120].mxu0 %vm1138_vm1, %v4986_v18 }
 0xa0f   : > { %8099 = vmatpush3.bf16.xpose.msra.mxu0 %v5494_v16  ;;  %v7982_v33 = vpop.f32.mrb[156].mxu0  ;;  %v11613_v16 = vld [vmem:[%s12193_s9 + $0xd8] sm:$0xff] }
 0xa10   : > { %8387 = vmatprep.subr.msk.bf16.mxu0 %vm1138_vm1, %v11502_v43  ;;  %v4703_v17 = vpop.f32.mrb[157].mxu0 }
 0xa11   : > { %v7983_v59 = vpop.f32.mrb[158].mxu0 }
 0xa12   : > { %v4988_v19 = vpack.c.bf16 %v7983_v59, %v7982_v33  ;;  %v4706_v42 = vpop.f32.mrb[159].mxu0 }
 0xa13   : > { %v4987_v57 = vpack.c.bf16 %v4706_v42, %v4703_v17  ;;  %v11628_v42 = vld [vmem:[%s12193_s9 + $0xf0] sm:$0xff] }
 0xa15   : > { %8038 = vmatprep.mubr.msk.bf16.mxu0 %vm1138_vm1, %v4987_v57 }
 0xa16   : > { %8039 = vmatmul.mubr.msk.bf16.gmra.mrb[124].mxu0 %vm1138_vm1, %v4988_v19 }
 0xa17   : > { %8101 = vmatpush3.bf16.xpose.msra.mxu0 %v5497_v38  ;;  %v11633_v38 = vld [vmem:[%s12193_s9 + $0xf8] sm:$0xff] }
 0xa18   : > { %8388 = vmatprep.subr.msk.bf16.mxu0 %vm1138_vm1, %v11489_v51 }
 0xa1f   : > { %8103 = vmatpush3.bf16.xpose.msra.mxu0 %v5500_v61 }
 0xa20   : > { %8389 = vmatprep.subr.msk.bf16.mxu0 %vm1138_vm1, %v11494_v45 }
 0xa27   : > { %v7994_v31 = vpop.f32.mrb[160].mxu1  ;;  %8105 = vmatpush3.bf16.xpose.msra.mxu0 %v5503_v58 }
 0xa28   : > { %v4776_v50 = vpop.f32.mrb[161].mxu1  ;;  %8130 = vmatprep.subr.bf16.mxu0 %v11516_v29 }
 0xa29   : > { %v7995_v40 = vpop.f32.mrb[162].mxu1 }
 0xa2a   : > { %v4990_v30 = vpack.c.bf16 %v7995_v40, %v7994_v31  ;;  %v4779_v24 = vpop.f32.mrb[163].mxu1  ;;  %v11638_v31 = vld [vmem:[%s12193_s9 + $0xe8] sm:$0xff] }
 0xa2b   : > { %v4989_v60 = vpack.c.bf16 %v4779_v24, %v4776_v50 }
 0xa2d   : > { %8042 = vmatprep.mubr.msk.bf16.mxu0 %vm1138_vm1, %v4989_v60  ;;  %v11651_v60 = vld [vmem:[%s12193_s9 + $0xe0] sm:$0xff] }
 0xa2e   : > { %8043 = vmatmul.mubr.msk.bf16.gmra.mrb[128].mxu0 %vm1138_vm1, %v4990_v30 }
 0xa2f   : > { %v7998_v62 = vpop.f32.mrb[164].mxu1 }
 0xa30   : > { %v4792_v6 = vpop.f32.mrb[165].mxu1 }
 0xa31   : > { %v7999_v32 = vpop.f32.mrb[166].mxu1 }
 0xa32   : > { %v4992_v54 = vpack.c.bf16 %v7999_v32, %v7998_v62  ;;  %v4795_v51 = vpop.f32.mrb[167].mxu1 }
 0xa33   : > { %v4991_v5 = vpack.c.bf16 %v4795_v51, %v4792_v6 }
 0xa35   : > { %8046 = vmatprep.mubr.msk.bf16.mxu0 %vm1138_vm1, %v4991_v5 }
 0xa36   : > { %8047 = vmatmul.mubr.msk.bf16.gmra.mrb[132].mxu0 %vm1138_vm1, %v4992_v54 }
 0xa43   : > { %v8010_v2 = vpop.f32.mrb[160].mxu0 }
 0xa44   : > { %v4865_v45 = vpop.f32.mrb[161].mxu0 }
 0xa45   : > { %v8011_v49 = vpop.f32.mrb[162].mxu0 }
 0xa46   : > { %v4994_v8 = vpack.c.bf16 %v8011_v49, %v8010_v2  ;;  %v4868_v43 = vpop.f32.mrb[163].mxu0 }
 0xa47   : > { %v4993_v34 = vpack.c.bf16 %v4868_v43, %v4865_v45 }
 0xa49   : > { %8050 = vmatprep.mubr.msk.bf16.mxu0 %vm1138_vm1, %v4993_v34 }
 0xa4a   : > { %8051 = vmatmul.mubr.msk.bf16.gmra.mrb[136].mxu0 %vm1138_vm1, %v4994_v8 }
 0xa4b   : > { %v8014_v53 = vpop.f32.mrb[164].mxu0 }
 0xa4c   : > { %v4881_v63 = vpop.f32.mrb[165].mxu0 }
 0xa4d   : > { %v8015_v35 = vpop.f32.mrb[166].mxu0 }
 0xa4e   : > { %v4996_v15 = vpack.c.bf16 %v8015_v35, %v8014_v53  ;;  %v4884_v21 = vpop.f32.mrb[167].mxu0 }
 0xa4f   : > { %v4995_v7 = vpack.c.bf16 %v4884_v21, %v4881_v63 }
 0xa51   : > { %8054 = vmatprep.mubr.msk.bf16.mxu0 %vm1138_vm1, %v4995_v7 }
 0xa52   : > { %8055 = vmatmul.mubr.msk.bf16.gmra.mrb[140].mxu0 %vm1138_vm1, %v4996_v15 }
 0xa6d   : > { %v8026_v25 = vpop.f32.mrb[168].mxu1 }
 0xa6e   : > { %v4954_v44 = vpop.f32.mrb[169].mxu1 }
 0xa6f   : > { %v8027_v14 = vpop.f32.mrb[170].mxu1 }
 0xa70   : > { %v4998_v41 = vpack.c.bf16 %v8027_v14, %v8026_v25  ;;  %v4957_v0 = vpop.f32.mrb[171].mxu1 }
 0xa71   : > { %v4997_v4 = vpack.c.bf16 %v4957_v0, %v4954_v44 }
 0xa73   : > { %8058 = vmatprep.mubr.msk.bf16.mxu0 %vm1138_vm1, %v4997_v4 }
 0xa74   : > { %8059 = vmatmul.mubr.msk.bf16.gmra.mrb[144].mxu0 %vm1138_vm1, %v4998_v41 }
 0xa75   : > { %v8030_v1 = vpop.f32.mrb[172].mxu1 }
 0xa76   : > { %v4970_v55 = vpop.f32.mrb[173].mxu1 }
 0xa77   : > { %v8031_v20 = vpop.f32.mrb[174].mxu1 }
 0xa78   : > { %v5000_v28 = vpack.c.bf16 %v8031_v20, %v8030_v1  ;;  %v4973_v39 = vpop.f32.mrb[175].mxu1 }
 0xa79   : > { %v4999_v47 = vpack.c.bf16 %v4973_v39, %v4970_v55 }
 0xa7b   : > { %8062 = vmatprep.mubr.msk.bf16.mxu0 %vm1138_vm1, %v4999_v47 }
 0xa7c   : > { %8063 = vmatmul.mubr.msk.bf16.gmra.mrb[148].mxu0 %vm1138_vm1, %v5000_v28 }
 0xa7d   : > { %8106 = vmatprep.mubr.msk.bf16.mxu0 %vm1138_vm1, %v11500_v27  ;;  %v11586_v27 = vld [vmem:[%s12193_s9 + $0xd0] sm:$0xff] }
 0xa84   : > { %8107 = vmatmul.mubr.msk.bf16.vlgmr.msra.gmra.mrb[168].mxu0 %vm1138_vm1, %v11520_v3 }
 0xa85   : > { %8131 = vmatpush3.bf16.msra.mxu0 %v11516_v29  ;;  %8110 = vmatprep.mubr.msk.bf16.mxu0 %vm1138_vm1, %v11528_v11  ;;  %v11588_v29 = vpop.permute.xlu1 %6132 }
 0xa86   : > { %8132 = vmatprep.subr.bf16.mxu0 %v6046_v10 }
 0xa89   : > { %8133 = vmatpush3.bf16.msra.mxu0 %v6046_v10 }
 0xa8a   : > { %8134 = vmatprep.subr.bf16.mxu0 %v11522_v56 }
 0xa8c   : > { %8111 = vmatmul.mubr.msk.bf16.gmra.mrb[172].mxu0 %vm1138_vm1, %v11508_v48  ;;  %v11595_v48 = vld [vmem:[%s12193_s9 + $0xc0] sm:$0xff] }
 0xa8d   : > { %8135 = vmatpush3.bf16.msra.mxu0 %v11522_v56 }
 0xa8e   : > { %8136 = vmatprep.subr.bf16.mxu0 %v11530_v36 }
 0xa91   : > { %8137 = vmatpush3.bf16.msra.mxu0 %v11530_v36 }
 0xa92   : > { %8146 = vmatprep.subr.bf16.mxu0 %v11588_v29  ;;  %v8076_v3 = vpop.f32.mrb[176].mxu1 }
 0xa93   : > { %v11598_v56 = vadd.f32 %v8076_v3, %v11586_v27  ;;  %v5329_v11 = vpop.f32.mrb[177].mxu1 }
 0xa94   : > { %v8077_v18 = vpop.f32.mrb[178].mxu1  ;;  %v11606_v36 = vadd.f32 %v11595_v48, %v5329_v11 }
 0xa95   : > { %v5332_v9 = vpop.f32.mrb[179].mxu1  ;;  %v5681_v22 = vsel %vm1495_vm2, %v11598_v56, -inf  ;;  %v11621_v59 = vadd.f32 %v8077_v18, %v11613_v16 }
 0xa96   : > { %v11616_v33 = vadd.f32 %v11603_v46, %v5332_v9  ;;  %5682 = vmax.xlane.f32.xlu0 %v5681_v22  ;;  %v5675_v19 = vsel %vm1495_vm2, %v11606_v36, -inf }
 0xa97   : > { %v5684_v24 = vsel %vm1495_vm2, %v11621_v59, -inf }
 0xa98   : > { %v5678_v17 = vsel %vm1495_vm2, %v11616_v33, -inf }
 0xa99   : > { %5679 = vmax.xlane.f32.xlu1 %v5678_v17 }
 0xa9a   : > { %5676 = vmax.xlane.f32.xlu0 %v5675_v19  ;;  %v8080_v57 = vpop.f32.mrb[180].mxu1 }
 0xa9b   : > { %v5345_v61 = vpop.f32.mrb[181].mxu1  ;;  %v11641_v50 = vadd.f32 %v8080_v57, %v11628_v42 }
 0xa9c   : > { %v8081_v58 = vpop.f32.mrb[182].mxu1  ;;  %v11659_v32 = vadd.f32 %v11651_v60, %v5345_v61 }
 0xa9d   : > { %v11644_v40 = vadd.f32 %v8081_v58, %v11633_v38  ;;  %v5348_v30 = vpop.f32.mrb[183].mxu1  ;;  %v5693_v54 = vsel %vm1495_vm2, %v11641_v50, -inf }
 0xa9e   : > { %5685 = vmax.xlane.f32.xlu0 %v5684_v24  ;;  %v11654_v62 = vadd.f32 %v11638_v31, %v5348_v30  ;;  %v5687_v5 = vsel %vm1495_vm2, %v11659_v32, -inf }
 0xa9f   : > { %v5696_v6 = vsel %vm1495_vm2, %v11644_v40, -inf }
 0xaa0   : > { %5697 = vmax.xlane.f32.xlu1 %v5696_v6  ;;  %v5690_v51 = vsel %vm1495_vm2, %v11654_v62, -inf }
 0xaa2   : > { %5694 = vmax.xlane.f32.xlu0 %v5693_v54 }
 0xaa4   : > { %5691 = vmax.xlane.f32.xlu1 %v5690_v51 }
 0xaa6   : > { %5688 = vmax.xlane.f32.xlu0 %v5687_v5 }
 0xab2   : > { %v8092_v2 = vpop.f32.mrb[184].mxu1 }
 0xab3   : > { %v11668_v45 = vadd.f32 %v8092_v2, %v11586_v27  ;;  %v5434_v49 = vpop.f32.mrb[185].mxu1 }
 0xab4   : > { %v8093_v8 = vpop.f32.mrb[186].mxu1  ;;  %v11671_v43 = vadd.f32 %v11595_v48, %v5434_v49 }
 0xab5   : > { %v11674_v34 = vadd.f32 %v8093_v8, %v11613_v16  ;;  %v5437_v53 = vpop.f32.mrb[187].mxu1  ;;  %v5705_v63 = vsel %vm1495_vm2, %v11668_v45, -inf }
 0xab6   : > { %5706 = vmax.xlane.f32.xlu0 %v5705_v63  ;;  %v11679_v35 = vadd.f32 %v11603_v46, %v5437_v53  ;;  %v5699_v21 = vsel %vm1495_vm2, %v11671_v43, -inf }
 0xab7   : > { %v5708_v15 = vsel %vm1495_vm2, %v11674_v34, -inf }
 0xab8   : > { %5709 = vmax.xlane.f32.xlu1 %v5708_v15  ;;  %v5702_v14 = vsel %vm1495_vm2, %v11679_v35, -inf }
 0xaba   : > { %5700 = vmax.xlane.f32.xlu0 %v5699_v21  ;;  %v8096_v7 = vpop.f32.mrb[188].mxu1 }
 0xabb   : > { %v11686_v25 = vadd.f32 %v8096_v7, %v11628_v42  ;;  %v5450_v44 = vpop.f32.mrb[189].mxu1  ;;  %v11747_v7 = vpop.permute.xlu1 %6134 }
 0xabc   : > { %5703 = vmax.xlane.f32.xlu1 %v5702_v14  ;;  %v8097_v41 = vpop.f32.mrb[190].mxu1  ;;  %v11691_v0 = vadd.f32 %v11651_v60, %v5450_v44 }
 0xabd   : > { %v11694_v4 = vadd.f32 %v8097_v41, %v11633_v38  ;;  %v5453_v1 = vpop.f32.mrb[191].mxu1  ;;  %v5717_v55 = vsel %vm1495_vm2, %v11686_v25, -inf }
 0xabe   : > { %5718 = vmax.xlane.f32.xlu0 %v5717_v55  ;;  %v11699_v20 = vadd.f32 %v11638_v31, %v5453_v1  ;;  %v5711_v39 = vsel %vm1495_vm2, %v11691_v0, -inf }
 0xabf   : > { %v5720_v28 = vsel %vm1495_vm2, %v11694_v4, -inf  ;;  %v11749_v44 = vpop.permute.xlu1 %6138 }
 0xac0   : > { %5721 = vmax.xlane.f32.xlu1 %v5720_v28  ;;  %v5714_v47 = vsel %vm1495_vm2, %v11699_v20, -inf }
 0xac2   : > { %5712 = vmax.xlane.f32.xlu0 %v5711_v39 }
 0xac4   : > { %5715 = vmax.xlane.f32.xlu1 %v5714_v47 }
 0xad2   : > { %v8124_v10 = vpop.f32.mrb[192].mxu1 }
 0xad3   : > { %v11708_v3 = vadd.f32 %v8124_v10, %v11586_v27  ;;  %v5644_v11 = vpop.f32.mrb[193].mxu1 }
 0xad4   : > { %v8125_v18 = vpop.f32.mrb[194].mxu1  ;;  %v11711_v9 = vadd.f32 %v11595_v48, %v5644_v11 }
 0xad5   : > { %v11714_v22 = vadd.f32 %v8125_v18, %v11613_v16  ;;  %v5647_v17 = vpop.f32.mrb[195].mxu1  ;;  %v5753_v19 = vsel %vm1495_vm2, %v11708_v3, -inf }
 0xad6   : > { %5754 = vmax.xlane.f32.xlu0 %v5753_v19  ;;  %v11719_v57 = vadd.f32 %v11603_v46, %v5647_v17  ;;  %v5747_v58 = vsel %vm1495_vm2, %v11711_v9, -inf }
 0xad7   : > { %v5756_v61 = vsel %vm1495_vm2, %v11714_v22, -inf }
 0xad8   : > { %5757 = vmax.xlane.f32.xlu1 %v5756_v61  ;;  %v5750_v54 = vsel %vm1495_vm2, %v11719_v57, -inf }
 0xada   : > { %5748 = vmax.xlane.f32.xlu0 %v5747_v58  ;;  %v8128_v30 = vpop.f32.mrb[196].mxu1 }
 0xadb   : > { %v11726_v24 = vadd.f32 %v8128_v30, %v11628_v42  ;;  %v5660_v6 = vpop.f32.mrb[197].mxu1 }
 0xadc   : > { %5751 = vmax.xlane.f32.xlu1 %v5750_v54  ;;  %v8129_v51 = vpop.f32.mrb[198].mxu1  ;;  %v11731_v5 = vadd.f32 %v11651_v60, %v5660_v6 }
 0xadd   : > { %v11734_v2 = vadd.f32 %v8129_v51, %v11633_v38  ;;  %v5663_v49 = vpop.f32.mrb[199].mxu1  ;;  %v5765_v8 = vsel %vm1495_vm2, %v11726_v24, -inf }
 0xade   : > { %5766 = vmax.xlane.f32.xlu0 %v5765_v8  ;;  %v11739_v53 = vadd.f32 %v11638_v31, %v5663_v49  ;;  %v5759_v15 = vsel %vm1495_vm2, %v11731_v5, -inf }
 0xadf   : > { %v5768_v63 = vsel %vm1495_vm2, %v11734_v2, -inf }
 0xae0   : > { %5769 = vmax.xlane.f32.xlu1 %v5768_v63  ;;  %v5762_v21 = vsel %vm1495_vm2, %v11739_v53, -inf }
 0xae2   : > { %5760 = vmax.xlane.f32.xlu0 %v5759_v15 }
 0xae4   : > { %5763 = vmax.xlane.f32.xlu1 %v5762_v21 }
 0xb23   : > { %v5683_v14 = vpop.xlane.xlu0 %5682 }
 0xb24   : > { %v5773_v41 = vsub.f32 %v11598_v56, %v5683_v14 }
 0xb26   : > { %v5807_v1 = vmul.f32 1.442695, %v5773_v41  ;;  %v5680_v55 = vpop.xlane.xlu1 %5679 }
 0xb27   : > { %v5677_v28 = vpop.xlane.xlu0 %5676  ;;  %v5772_v47 = vsub.f32 %v11616_v33, %v5680_v55 }
 0xb28   : > { %8812 = vpow2.f32 %v5807_v1  ;;  %v5771_v39 = vsub.f32 %v11606_v36, %v5677_v28 }
 0xb29   : > { %v5805_v19 = vmul.f32 1.442695, %v5772_v47 }
 0xb2a   : > { %v5803_v10 = vmul.f32 1.442695, %v5771_v39 }
 0xb2b   : > { %v5686_v11 = vpop.xlane.xlu0 %5685 }
 0xb2c   : > { %8814 = vpow2.f32 %v5803_v10  ;;  %v5774_v18 = vsub.f32 %v11621_v59, %v5686_v11 }
 0xb2d   : > { %v5698_v17 = vpop.xlane.xlu1 %5697 }
 0xb2e   : > { %v5809_v61 = vmul.f32 1.442695, %v5774_v18  ;;  %v5778_v58 = vsub.f32 %v11644_v40, %v5698_v17 }
 0xb2f   : > { %v5695_v30 = vpop.xlane.xlu0 %5694 }
 0xb30   : > { %8816 = vpow2.f32 %v5809_v61  ;;  %v5777_v56 = vsub.f32 %v11641_v50, %v5695_v30  ;;  %v5817_v36 = vmul.f32 1.442695, %v5778_v58 }
 0xb31   : > { %v5692_v6 = vpop.xlane.xlu1 %5691  ;;  %8818 = vpow2.f32 %v5805_v19 }
 0xb32   : > { %v11757_v54 = vpop.eup %8812  ;;  %v5815_v33 = vmul.f32 1.442695, %v5777_v56  ;;  %v5776_v51 = vsub.f32 %v11654_v62, %v5692_v6 }
 0xb33   : > { %v5689_v49 = vpop.xlane.xlu0 %5688  ;;  %v5873_v59 = vsel %vm1495_vm2, %v11757_v54, 0.0 }
 0xb34   : > { %8820 = vpow2.f32 %v5815_v33  ;;  %v5775_v8 = vsub.f32 %v11659_v32, %v5689_v49  ;;  %5874 = vadd.xlane.f32.xlu0 %v5873_v59  ;;  %v5813_v50 = vmul.f32 1.442695, %v5776_v51 }
 0xb35   : > { %8822 = vpow2.f32 %v5817_v36 }
 0xb36   : > { %v11763_v40 = vpop.eup %8814  ;;  %v5811_v63 = vmul.f32 1.442695, %v5775_v8 }
 0xb37   : > { %v5867_v15 = vsel %vm1495_vm2, %v11763_v40, 0.0 }
 0xb38   : > { %8824 = vpow2.f32 %v5811_v63  ;;  %5868 = vadd.xlane.f32.xlu0 %v5867_v15 }
 0xb39   : > { %8826 = vpow2.f32 %v5813_v50 }
 0xb3a   : > { %v11767_v21 = vpop.eup %8816 }
 0xb3b   : > { %v5876_v62 = vsel %vm1495_vm2, %v11767_v21, 0.0  ;;  %v11771_v14 = vpop.eup %8818 }
 0xb3c   : > { %5877 = vadd.xlane.f32.xlu1 %v5876_v62  ;;  %v5870_v41 = vsel %vm1495_vm2, %v11771_v14, 0.0 }
 0xb3e   : > { %v11773_v32 = vpop.eup %8820 }
 0xb3f   : > { %v5885_v1 = vsel %vm1495_vm2, %v11773_v32, 0.0  ;;  %v11779_v55 = vpop.eup %8822 }
 0xb40   : > { %5871 = vadd.xlane.f32.xlu1 %v5870_v41  ;;  %5886 = vadd.xlane.f32.xlu0 %v5885_v1  ;;  %v5888_v47 = vsel %vm1495_vm2, %v11779_v55, 0.0 }
 0xb42   : > { %v11781_v28 = vpop.eup %8824 }
 0xb43   : > { %v5707_v39 = vpop.xlane.xlu0 %5706  ;;  %v5879_v10 = vsel %vm1495_vm2, %v11781_v28, 0.0  ;;  %v11787_v11 = vpop.eup %8826 }
 0xb44   : > { %v5781_v18 = vsub.f32 %v11668_v45, %v5707_v39  ;;  %5889 = vadd.xlane.f32.xlu1 %v5888_v47  ;;  %5880 = vadd.xlane.f32.xlu0 %v5879_v10  ;;  %v5882_v30 = vsel %vm1495_vm2, %v11787_v11, 0.0 }
 0xb45   : > { %v5710_v17 = vpop.xlane.xlu1 %5709 }
 0xb46   : > { %v5823_v19 = vmul.f32 1.442695, %v5781_v18  ;;  %v5782_v61 = vsub.f32 %v11674_v34, %v5710_v17 }
 0xb47   : > { %v5701_v58 = vpop.xlane.xlu0 %5700 }
 0xb48   : > { %8828 = vpow2.f32 %v5823_v19  ;;  %v5779_v56 = vsub.f32 %v11671_v43, %v5701_v58  ;;  %5883 = vadd.xlane.f32.xlu1 %v5882_v30  ;;  %v5825_v36 = vmul.f32 1.442695, %v5782_v61 }
 0xb49   : > { %v5704_v6 = vpop.xlane.xlu1 %5703 }
 0xb4a   : > { %v5819_v33 = vmul.f32 1.442695, %v5779_v56  ;;  %v5780_v51 = vsub.f32 %v11679_v35, %v5704_v6 }
 0xb4b   : > { %v5719_v45 = vpop.xlane.xlu0 %5718 }
 0xb4c   : > { %8830 = vpow2.f32 %v5819_v33  ;;  %v5785_v49 = vsub.f32 %v11686_v25, %v5719_v45  ;;  %v5821_v34 = vmul.f32 1.442695, %v5780_v51 }
 0xb4d   : > { %v5722_v59 = vpop.xlane.xlu1 %5721  ;;  %8832 = vpow2.f32 %v5825_v36 }
 0xb4e   : > { %v5831_v8 = vmul.f32 1.442695, %v5785_v49  ;;  %v5786_v50 = vsub.f32 %v11694_v4, %v5722_v59 }
 0xb4f   : > { %v5713_v63 = vpop.xlane.xlu0 %5712 }
 0xb50   : > { %8834 = vpow2.f32 %v5831_v8  ;;  %v5783_v43 = vsub.f32 %v11691_v0, %v5713_v63  ;;  %v5833_v15 = vmul.f32 1.442695, %v5786_v50 }
 0xb51   : > { %v5716_v62 = vpop.xlane.xlu1 %5715  ;;  %8836 = vpow2.f32 %v5821_v34 }
 0xb52   : > { %v11798_v41 = vpop.eup %8828  ;;  %v5827_v35 = vmul.f32 1.442695, %v5783_v43  ;;  %v5784_v1 = vsub.f32 %v11699_v20, %v5716_v62 }
 0xb53   : > { %v5897_v25 = vsel %vm1495_vm2, %v11798_v41, 0.0 }
 0xb54   : > { %8838 = vpow2.f32 %v5827_v35  ;;  %v5829_v39 = vmul.f32 1.442695, %v5784_v1  ;;  %5898 = vadd.xlane.f32.xlu1 %v5897_v25 }
 0xb55   : > { %8840 = vpow2.f32 %v5833_v15 }
 0xb56   : > { %v11803_v4 = vpop.eup %8830  ;;  %8842 = vpow2.f32 %v5829_v39 }
 0xb57   : > { %v8108_v47 = vpop.f32.mrb[168].mxu0  ;;  %v5891_v0 = vsel %vm1495_vm2, %v11803_v4, 0.0  ;;  %v11807_v10 = vpop.eup %8832 }
 0xb58   : > { %v5539_v18 = vpop.f32.mrb[169].mxu0  ;;  %5892 = vadd.xlane.f32.xlu1 %v5891_v0  ;;  %v5900_v61 = vsel %vm1495_vm2, %v11807_v10, 0.0  ;;  %v11828_v8 = vadd.f32 %v8108_v47, %v11586_v27 }
 0xb59   : > { %v8109_v17 = vpop.f32.mrb[170].mxu0  ;;  %v11838_v15 = vadd.f32 %v11595_v48, %v5539_v18 }
 0xb5a   : > { %v11809_v20 = vpop.eup %8834  ;;  %v5542_v19 = vpop.f32.mrb[171].mxu0  ;;  %v11831_v50 = vadd.f32 %v8109_v17, %v11613_v16  ;;  %v5729_v16 = vsel %vm1495_vm2, %v11828_v8, -inf  ;;  %v12583_v17 = vld [vmem:[#allocation45_spill] sm:$0xff] }
 0xb5b   : > { %v5909_v58 = vsel %vm1495_vm2, %v11809_v20, 0.0  ;;  %v11815_v30 = vpop.eup %8836  ;;  %v11841_v62 = vadd.f32 %v11603_v46, %v5542_v19  ;;  %v5723_v46 = vsel %vm1495_vm2, %v11838_v15, -inf }
 0xb5c   : > { %5901 = vadd.xlane.f32.xlu1 %v5900_v61  ;;  %5910 = vadd.xlane.f32.xlu0 %v5909_v58  ;;  %v5894_v33 = vsel %vm1495_vm2, %v11815_v30, 0.0  ;;  %v5732_v27 = vsel %vm1495_vm2, %v11831_v50, -inf }
 0xb5d   : > { %v5726_v48 = vsel %vm1495_vm2, %v11841_v62, -inf }
 0xb5e   : > { %v11817_v56 = vpop.eup %8838 }
 0xb5f   : > { %v11819_v6 = vpop.eup %8840  ;;  %v8112_v36 = vpop.f32.mrb[172].mxu0  ;;  %v5903_v51 = vsel %vm1495_vm2, %v11817_v56, 0.0 }
 0xb60   : > { %v11825_v45 = vpop.eup %8842  ;;  %v5555_v49 = vpop.f32.mrb[173].mxu0  ;;  %5895 = vadd.xlane.f32.xlu1 %v5894_v33  ;;  %5904 = vadd.xlane.f32.xlu0 %v5903_v51  ;;  %v5912_v43 = vsel %vm1495_vm2, %v11819_v6, 0.0  ;;  %v11848_v35 = vadd.f32 %v8112_v36, %v11628_v42 }
 0xb61   : > { %v8113_v59 = vpop.f32.mrb[174].mxu0  ;;  %v5906_v63 = vsel %vm1495_vm2, %v11825_v45, 0.0  ;;  %v11858_v25 = vadd.f32 %v11651_v60, %v5555_v49  ;;  %v12581_v60 = vld [vmem:[#allocation42_spill] sm:$0xff] }
 0xb62   : > { %v5558_v34 = vpop.f32.mrb[175].mxu0  ;;  %v11851_v1 = vadd.f32 %v8113_v59, %v11633_v38  ;;  %v5741_v38 = vsel %vm1495_vm2, %v11848_v35, -inf }
 0xb63   : > { %v11861_v39 = vadd.f32 %v11638_v31, %v5558_v34  ;;  %v5735_v0 = vsel %vm1495_vm2, %v11858_v25, -inf  ;;  %v12582_v31 = vld [vmem:[#allocation44_spill] sm:$0xff]  ;;  %v5755_v19 = vpop.xlane.xlu0 %5754 }
 0xb64   : > { %5907 = vadd.xlane.f32.xlu1 %v5906_v63  ;;  %5913 = vadd.xlane.f32.xlu0 %v5912_v43  ;;  %v5744_v42 = vsel %vm1495_vm2, %v11851_v1, -inf  ;;  %v5797_v33 = vsub.f32 %v11708_v3, %v5755_v19 }
 0xb65   : > { %v5738_v47 = vsel %vm1495_vm2, %v11861_v39, -inf  ;;  %v5758_v18 = vpop.xlane.xlu1 %5757 }
 0xb66   : > { %v5798_v58 = vsub.f32 %v11714_v22, %v5758_v18  ;;  %v5855_v34 = vmul.f32 1.442695, %v5797_v33 }
 0xb67   : > { %v5749_v36 = vpop.xlane.xlu0 %5748 }
 0xb68   : > { %5733 = vmax.xlane.f32.xlu1 %v5732_v27  ;;  %5730 = vmax.xlane.f32.xlu0 %v5729_v16  ;;  %v5857_v49 = vmul.f32 1.442695, %v5798_v58  ;;  %v5795_v63 = vsub.f32 %v11711_v9, %v5749_v36 }
 0xb69   : > { %v5752_v61 = vpop.xlane.xlu1 %5751 }
 0xb6a   : > { %v5796_v59 = vsub.f32 %v11719_v57, %v5752_v61  ;;  %8844 = vpow2.f32 %v5857_v49 }
 0xb6b   : > { %v5767_v43 = vpop.xlane.xlu0 %5766  ;;  %8846 = vpow2.f32 %v5855_v34 }
 0xb6c   : > { %5727 = vmax.xlane.f32.xlu1 %v5726_v48  ;;  %5724 = vmax.xlane.f32.xlu0 %v5723_v46  ;;  %v5853_v27 = vmul.f32 1.442695, %v5796_v59  ;;  %v5851_v46 = vmul.f32 1.442695, %v5795_v63  ;;  %v5801_v22 = vsub.f32 %v11726_v24, %v5767_v43 }
 0xb6d   : > { %v5770_v51 = vpop.xlane.xlu1 %5769 }
 0xb6e   : > { %v5802_v16 = vsub.f32 %v11734_v2, %v5770_v51  ;;  %8848 = vpow2.f32 %v5853_v27  ;;  %v5863_v57 = vmul.f32 1.442695, %v5801_v22 }
 0xb6f   : > { %8850 = vpow2.f32 %v5851_v46 }
 0xb70   : > { %5745 = vmax.xlane.f32.xlu1 %v5744_v42  ;;  %5742 = vmax.xlane.f32.xlu0 %v5741_v38  ;;  %v5865_v42 = vmul.f32 1.442695, %v5802_v16  ;;  %v5761_v38 = vpop.xlane.xlu0 %5760 }
 0xb71   : > { %v5764_v48 = vpop.xlane.xlu1 %5763  ;;  %v5799_v9 = vsub.f32 %v11731_v5, %v5761_v38 }
 0xb72   : > { %v5800_v3 = vsub.f32 %v11739_v53, %v5764_v48  ;;  %8852 = vpow2.f32 %v5865_v42 }
 0xb73   : > { %8854 = vpow2.f32 %v5863_v57  ;;  %v5859_v2 = vmul.f32 1.442695, %v5799_v9 }
 0xb74   : > { %5739 = vmax.xlane.f32.xlu1 %v5738_v47  ;;  %5736 = vmax.xlane.f32.xlu0 %v5735_v0  ;;  %v5861_v47 = vmul.f32 1.442695, %v5800_v3  ;;  %v11885_v0 = vpop.eup %8844 }
 0xb75   : > { %v5948_v24 = vsel %vm1495_vm2, %v11885_v0, 0.0 }
 0xb76   : > { %8856 = vpow2.f32 %v5861_v47 }
 0xb77   : > { %8858 = vpow2.f32 %v5859_v2 }
 0xb85   : > { %6223 = vrot.lane.b32.xlu1 %v12581_v60, %s8950_s22  ;;  %v11887_v60 = vpop.eup %8846 }
 0xb86   : > { %v5945_v18 = vsel %vm1495_vm2, %v11887_v60, 0.0 }
 0xb89   : > { %6227 = vrot.lane.b32.xlu1 %v12582_v31, %s8950_s22  ;;  %v11891_v31 = vpop.eup %8848 }
 0xb8a   : > { %6225 = vrot.lane.b32.xlu0 %v12583_v17, %s8950_s22  ;;  %v11893_v53 = vpop.eup %8850  ;;  %v5942_v5 = vsel %vm1495_vm2, %v11891_v31, 0.0 }
 0xb8b   : > { %v11899_v17 = vpop.eup %8852  ;;  %v5939_v58 = vsel %vm1495_vm2, %v11893_v53, 0.0 }
 0xb8c   : > { %v11901_v19 = vpop.eup %8854  ;;  %v5960_v61 = vsel %vm1495_vm2, %v11899_v17, 0.0 }
 0xb8d   : > { %v11907_v36 = vpop.eup %8856  ;;  %v5957_v51 = vsel %vm1495_vm2, %v11901_v19, 0.0 }
 0xb8e   : > { %v5954_v33 = vsel %vm1495_vm2, %v11907_v36, 0.0  ;;  %v11913_v49 = vpop.eup %8858 }
 0xb8f   : > { %v5951_v59 = vsel %vm1495_vm2, %v11913_v49, 0.0 }
 0xba9   : > { %5949 = vadd.xlane.f32.xlu0 %v5948_v24 }
 0xbad   : > { %5943 = vadd.xlane.f32.xlu0 %v5942_v5  ;;  %5946 = vadd.xlane.f32.xlu1 %v5945_v18 }
 0xbb1   : > { %5961 = vadd.xlane.f32.xlu0 %v5960_v61  ;;  %5940 = vadd.xlane.f32.xlu1 %v5939_v58 }
 0xbb5   : > { %5955 = vadd.xlane.f32.xlu0 %v5954_v33  ;;  %5958 = vadd.xlane.f32.xlu1 %v5957_v51 }
 0xbb9   : > { %5952 = vadd.xlane.f32.xlu1 %v5951_v59 }
 0xbc1   : > { %v5875_v34 = vpop.xlane.xlu0 %5874 }
 0xbc5   : > { %v5869_v63 = vpop.xlane.xlu0 %5868 }
 0xbc9   : > { %v5878_v43 = vpop.xlane.xlu1 %5877 }
 0xbca   : > { %8860 = vrcp.f32 %v5878_v43 }
 0xbcb   : > { %8862 = vrcp.f32 %v5869_v63 }
 0xbcc   : > { %8864 = vrcp.f32 %v5875_v34 }
 0xbcd   : > { %v5872_v27 = vpop.xlane.xlu1 %5871  ;;  %v5887_v16 = vpop.xlane.xlu0 %5886 }
 0xbce   : > { %8866 = vrcp.f32 %v5872_v27 }
 0xbd1   : > { %v5890_v48 = vpop.xlane.xlu1 %5889  ;;  %v5881_v46 = vpop.xlane.xlu0 %5880 }
 0xbd2   : > { %8868 = vrcp.f32 %v5890_v48 }
 0xbd3   : > { %8870 = vrcp.f32 %v5881_v46 }
 0xbd4   : > { %v8861_v22 = vpop.eup %8860  ;;  %8872 = vrcp.f32 %v5887_v16 }
 0xbd5   : > { %v5884_v42 = vpop.xlane.xlu1 %5883  ;;  %v8863_v3 = vpop.eup %8862  ;;  %v5998_v9 = vmul.f32 %v8861_v22, %v11767_v21 }
 0xbd6   : > { %8874 = vrcp.f32 %v5884_v42  ;;  %v8865_v38 = vpop.eup %8864  ;;  %v5995_v47 = vmul.f32 %v8863_v3, %v11763_v40 }
 0xbd7   : > { %v5997_v24 = vmul.f32 %v8865_v38, %v11757_v54 }
 0xbd8   : > { %v8867_v57 = vpop.eup %8866 }
 0xbd9   : > { %v5996_v2 = vmul.f32 %v8867_v57, %v11771_v14  ;;  %v6028_v18 = vpack.c.bf16 %v5998_v9, %v5997_v24 }
 0xbdb   : > { %v6027_v5 = vpack.c.bf16 %v5996_v2, %v5995_v47 }
 0xbdc   : > { %v8869_v61 = vpop.eup %8868 }
 0xbdd   : > { %8138 = vmatprep.mubr.msk.bf16.mxu0 %vm1495_vm2, %v6027_v5  ;;  %v8871_v58 = vpop.eup %8870  ;;  %v6002_v40 = vmul.f32 %v8869_v61, %v11779_v55 }
 0xbde   : > { %8139 = vmatmul.mubr.msk.bf16.vlgmr.msra.gmra.mrb[176].mxu0 %vm1495_vm2, %v6028_v18  ;;  %v8873_v33 = vpop.eup %8872  ;;  %v5999_v14 = vmul.f32 %v8871_v58, %v11781_v28 }
 0xbdf   : > { %8147 = vmatpush3.bf16.msra.mxu0 %v11588_v29  ;;  %v6001_v59 = vmul.f32 %v8873_v33, %v11773_v32 }
 0xbe0   : > { %v8875_v51 = vpop.eup %8874  ;;  %8148 = vmatprep.subr.bf16.mxu0 %v11747_v7 }
 0xbe1   : > { %v5899_v21 = vpop.xlane.xlu1 %5898  ;;  %v6000_v54 = vmul.f32 %v8875_v51, %v11787_v11  ;;  %v6030_v63 = vpack.c.bf16 %v6002_v40, %v6001_v59 }
 0xbe3   : > { %8149 = vmatpush3.bf16.msra.mxu0 %v11747_v7  ;;  %v6029_v34 = vpack.c.bf16 %v6000_v54, %v5999_v14 }
 0xbe4   : > { %8150 = vmatprep.subr.bf16.mxu0 %v11534_v37 }
 0xbe5   : > { %v5893_v43 = vpop.xlane.xlu1 %5892  ;;  %8142 = vmatprep.mubr.msk.bf16.mxu0 %vm1495_vm2, %v6029_v34 }
 0xbe6   : > { %8143 = vmatmul.mubr.msk.bf16.gmra.mrb[180].mxu0 %vm1495_vm2, %v6030_v63 }
 0xbe7   : > { %8151 = vmatpush3.bf16.msra.mxu0 %v11534_v37 }
 0xbe8   : > { %8152 = vmatprep.subr.bf16.mxu0 %v11749_v44 }
 0xbe9   : > { %v5902_v29 = vpop.xlane.xlu1 %5901  ;;  %v5911_v55 = vpop.xlane.xlu0 %5910 }
 0xbea   : > { %8876 = vrcp.f32 %v5902_v29 }
 0xbeb   : > { %8153 = vmatpush3.bf16.msra.mxu0 %v11749_v44  ;;  %8878 = vrcp.f32 %v5893_v43 }
 0xbec   : > { %8880 = vrcp.f32 %v5899_v21 }
 0xbed   : > { %v5896_v7 = vpop.xlane.xlu1 %5895  ;;  %v5905_v32 = vpop.xlane.xlu0 %5904 }
 0xbee   : > { %8882 = vrcp.f32 %v5896_v7 }
 0xbef   : > { %8884 = vrcp.f32 %v5905_v32 }
 0xbf1   : > { %v5908_v28 = vpop.xlane.xlu1 %5907  ;;  %v5914_v11 = vpop.xlane.xlu0 %5913 }
 0xbf2   : > { %8886 = vrcp.f32 %v5908_v28 }
 0xbf3   : > { %8888 = vrcp.f32 %v5914_v11 }
 0xbf4   : > { %v8877_v27 = vpop.eup %8876  ;;  %8890 = vrcp.f32 %v5911_v55 }
 0xbf5   : > { %v5734_v37 = vpop.xlane.xlu1 %5733  ;;  %v5731_v16 = vpop.xlane.xlu0 %5730  ;;  %v6006_v3 = vmul.f32 %v8877_v27, %v11807_v10 }
 0xbf6   : > { %v8879_v48 = vpop.eup %8878  ;;  %v5790_v46 = vsub.f32 %v11831_v50, %v5734_v37  ;;  %v5789_v22 = vsub.f32 %v11828_v8, %v5731_v16 }
 0xbf7   : > { %v8881_v44 = vpop.eup %8880  ;;  %v6003_v2 = vmul.f32 %v8879_v48, %v11803_v4 }
 0xbf8   : > { %v8883_v42 = vpop.eup %8882  ;;  %v5839_v38 = vmul.f32 1.442695, %v5789_v22  ;;  %v5841_v57 = vmul.f32 1.442695, %v5790_v46  ;;  %v6005_v18 = vmul.f32 %v8881_v44, %v11798_v41 }
 0xbf9   : > { %v5728_v9 = vpop.xlane.xlu1 %5727  ;;  %v5725_v47 = vpop.xlane.xlu0 %5724  ;;  %v6004_v24 = vmul.f32 %v8883_v42, %v11815_v30 }
 0xbfa   : > { %v8885_v5 = vpop.eup %8884  ;;  %v5788_v61 = vsub.f32 %v11841_v62, %v5728_v9  ;;  %v5787_v50 = vsub.f32 %v11838_v15, %v5725_v47  ;;  %8892 = vpow2.f32 %v5839_v38  ;;  %v6032_v33 = vpack.c.bf16 %v6006_v3, %v6005_v18 }
 0xbfb   : > { %v6031_v8 = vpack.c.bf16 %v6004_v24, %v6003_v2  ;;  %8894 = vpow2.f32 %v5841_v57  ;;  %v6007_v30 = vmul.f32 %v8885_v5, %v11817_v56 }
 0xbfc   : > { %v8887_v58 = vpop.eup %8886  ;;  %v5835_v10 = vmul.f32 1.442695, %v5787_v50  ;;  %v5837_v40 = vmul.f32 1.442695, %v5788_v61 }
 0xbfd   : > { %v8889_v51 = vpop.eup %8888  ;;  %v5746_v21 = vpop.xlane.xlu1 %5745  ;;  %8154 = vmatprep.mubr.msk.bf16.mxu0 %vm1495_vm2, %v6031_v8  ;;  %v6008_v41 = vmul.f32 %v8887_v58, %v11825_v45 }
 0xbfe   : > { %v5743_v4 = vpop.xlane.xlu0 %5742  ;;  %v5794_v62 = vsub.f32 %v11851_v1, %v5746_v21  ;;  %8155 = vmatmul.mubr.msk.bf16.vlgmr.msra.gmra.mrb[184].mxu0 %vm1495_vm2, %v6032_v33  ;;  %v8891_v14 = vpop.eup %8890  ;;  %8896 = vpow2.f32 %v5835_v10  ;;  %v6010_v34 = vmul.f32 %v8889_v51, %v11819_v6 }
 0xbff   : > { %v5793_v15 = vsub.f32 %v11848_v35, %v5743_v4  ;;  %v6033_v54 = vpack.c.bf16 %v6008_v41, %v6007_v30  ;;  %8898 = vpow2.f32 %v5837_v40  ;;  %v6009_v35 = vmul.f32 %v8891_v14, %v11809_v20 }
 0xc00   : > { %v5849_v63 = vmul.f32 1.442695, %v5794_v62 }
 0xc01   : > { %v5847_v59 = vmul.f32 1.442695, %v5793_v15  ;;  %v5740_v43 = vpop.xlane.xlu1 %5739  ;;  %8158 = vmatprep.mubr.msk.bf16.mxu0 %vm1495_vm2, %v6033_v54  ;;  %v6034_v55 = vpack.c.bf16 %v6010_v34, %v6009_v35 }
 0xc02   : > { %v5737_v56 = vpop.xlane.xlu0 %5736  ;;  %v5792_v45 = vsub.f32 %v11861_v39, %v5740_v43 }
 0xc03   : > { %v5791_v1 = vsub.f32 %v11858_v25, %v5737_v56  ;;  %8900 = vpow2.f32 %v5847_v59 }
 0xc04   : > { %v11955_v7 = vpop.eup %8892  ;;  %8902 = vpow2.f32 %v5849_v63  ;;  %v5845_v32 = vmul.f32 1.442695, %v5792_v45 }
 0xc05   : > { %v5843_v29 = vmul.f32 1.442695, %v5791_v1  ;;  %v6224_v6 = vpop.permute.xlu1 %6223  ;;  %v5921_v28 = vsel %vm1495_vm2, %v11955_v7, 0.0  ;;  %v11960_v11 = vpop.eup %8894 }
 0xc06   : > { %8159 = vmatmul.mubr.msk.bf16.gmra.mrb[188].mxu0 %vm1495_vm2, %v6034_v55  ;;  %8164 = vmatprep.subr.bf16.mxu1 %v6224_v6  ;;  %v6226_v25 = vpop.permute.xlu0 %6225  ;;  %v5924_v39 = vsel %vm1495_vm2, %v11960_v11, 0.0 }
 0xc07   : > { %8904 = vpow2.f32 %v5843_v29  ;;  %5922 = vadd.xlane.f32.xlu0 %v5921_v28  ;;  %8165 = vmatpush3.bf16.msra.mxu1 %v6224_v6 }
 0xc08   : > { %8166 = vmatprep.subr.bf16.mxu1 %v6226_v25  ;;  %v11962_v20 = vpop.eup %8896  ;;  %8906 = vpow2.f32 %v5845_v32 }
 0xc09   : > { %v5915_v27 = vsel %vm1495_vm2, %v11962_v20, 0.0  ;;  %v11968_v37 = vpop.eup %8898  ;;  %v6228_v16 = vpop.permute.xlu1 %6227 }
 0xc0a   : > { %5916 = vadd.xlane.f32.xlu1 %v5915_v27  ;;  %v5918_v46 = vsel %vm1495_vm2, %v11968_v37, 0.0 }
 0xc0b   : > { %5925 = vadd.xlane.f32.xlu0 %v5924_v39  ;;  %8167 = vmatpush3.bf16.msra.mxu1 %v6226_v25 }
 0xc0c   : > { %8168 = vmatprep.subr.bf16.mxu1 %v6228_v16 }
 0xc0d   : > { %v11970_v48 = vpop.eup %8900 }
 0xc0e   : > { %v5933_v22 = vsel %vm1495_vm2, %v11970_v48, 0.0  ;;  %v11976_v44 = vpop.eup %8902 }
 0xc0f   : > { %5919 = vadd.xlane.f32.xlu0 %v5918_v46  ;;  %5934 = vadd.xlane.f32.xlu1 %v5933_v22  ;;  %v5936_v3 = vsel %vm1495_vm2, %v11976_v44, 0.0 }
 0xc10   : > { %8169 = vmatpush3.bf16.msra.mxu1 %v6228_v16 }
 0xc11   : > { %v11978_v42 = vpop.eup %8904 }
 0xc12   : > { %v5927_v38 = vsel %vm1495_vm2, %v11978_v42, 0.0  ;;  %v11984_v57 = vpop.eup %8906 }
 0xc13   : > { %5937 = vadd.xlane.f32.xlu0 %v5936_v3  ;;  %5928 = vadd.xlane.f32.xlu1 %v5927_v38  ;;  %v5930_v9 = vsel %vm1495_vm2, %v11984_v57, 0.0 }
 0xc17   : > { %5931 = vadd.xlane.f32.xlu0 %v5930_v9 }
 0xc24   : > { %6312 = vrot.lane.b32.xlu1 %v12395_v52, %s8950_s22 }
 0xc28   : > { %6314 = vrot.lane.b32.xlu1 %v12396_v13, %s8950_s22 }
 0xc2c   : > { %6316 = vrot.lane.b32.xlu1 %v12398_v23, %s8950_s22 }
 0xc2d   : > { %6310 = vrot.lane.b32.xlu0 %v12394_v12, %s8950_s22 }
 0xc36   : > { %v5950_v47 = vpop.xlane.xlu0 %5949 }
 0xc37   : > { %8908 = vrcp.f32 %v5950_v47 }
 0xc3a   : > { %v5947_v2 = vpop.xlane.xlu1 %5946  ;;  %v5944_v24 = vpop.xlane.xlu0 %5943 }
 0xc3b   : > { %8910 = vrcp.f32 %v5947_v2 }
 0xc3c   : > { %8912 = vrcp.f32 %v5944_v24 }
 0xc3e   : > { %v5941_v5 = vpop.xlane.xlu1 %5940  ;;  %v5962_v10 = vpop.xlane.xlu0 %5961 }
 0xc3f   : > { %8914 = vrcp.f32 %v5941_v5 }
 0xc41   : > { %v8909_v18 = vpop.eup %8908 }
 0xc42   : > { %v11997_v52 = vmul.f32 %v8909_v18, %v11885_v0  ;;  %v5959_v51 = vpop.xlane.xlu1 %5958  ;;  %v5956_v40 = vpop.xlane.xlu0 %5955 }
 0xc45   : > { %v8911_v61 = vpop.eup %8910 }
 0xc46   : > { %v12000_v13 = vmul.f32 %v8911_v61, %v11887_v60  ;;  %v8913_v23 = vpop.eup %8912  ;;  %v5953_v0 = vpop.xlane.xlu1 %5952 }
 0xc47   : > { %v6020_v58 = vmul.f32 %v8913_v23, %v11891_v31 }
 0xc48   : > { %v6040_v12 = vpack.c.bf16 %v11997_v52, %v12000_v13 }
 0xc49   : > { %v8915_v50 = vpop.eup %8914 }
 0xc4a   : > { %v6019_v8 = vmul.f32 %v8915_v50, %v11893_v53 }
 0xc4c   : > { %v6039_v33 = vpack.c.bf16 %v6020_v58, %v6019_v8 }
 0xc4e   : > { %8186 = vmatprep.mubr.msk.bf16.mxu0 %vm1495_vm2, %v6039_v33 }
 0xc94   : > { %v5923_v21 = vpop.xlane.xlu0 %5922 }
 0xc97   : > { %v5917_v4 = vpop.xlane.xlu1 %5916 }
 0xc98   : > { %v5926_v60 = vpop.xlane.xlu0 %5925 }
 0xc99   : > { %8916 = vrcp.f32 %v5926_v60 }
 0xc9a   : > { %8918 = vrcp.f32 %v5917_v4 }
 0xc9b   : > { %8920 = vrcp.f32 %v5923_v21 }
 0xc9c   : > { %v5935_v30 = vpop.xlane.xlu1 %5934  ;;  %v5920_v41 = vpop.xlane.xlu0 %5919 }
 0xc9d   : > { %8922 = vrcp.f32 %v5920_v41 }
 0xca0   : > { %v5929_v62 = vpop.xlane.xlu1 %5928  ;;  %v5938_v53 = vpop.xlane.xlu0 %5937 }
 0xca1   : > { %8924 = vrcp.f32 %v5929_v62 }
 0xca2   : > { %8926 = vrcp.f32 %v5938_v53 }
 0xca3   : > { %8928 = vrcp.f32 %v5935_v30  ;;  %v8917_v15 = vpop.eup %8916 }
 0xca4   : > { %v5932_v31 = vpop.xlane.xlu0 %5931  ;;  %v8919_v14 = vpop.eup %8918  ;;  %v6014_v63 = vmul.f32 %v8917_v15, %v11960_v11 }
 0xca5   : > { %8930 = vrcp.f32 %v5932_v31  ;;  %v6313_v54 = vpop.permute.xlu1 %6312  ;;  %v8921_v59 = vpop.eup %8920  ;;  %v6011_v56 = vmul.f32 %v8919_v14, %v11962_v20 }
 0xca6   : > { %8932 = vrcp.f32 %v5953_v0  ;;  %v6013_v1 = vmul.f32 %v8921_v59, %v11955_v7 }
 0xca7   : > { %v8923_v34 = vpop.eup %8922  ;;  %8934 = vrcp.f32 %v5956_v40 }
 0xca8   : > { %v6311_v43 = vpop.permute.xlu0 %6310  ;;  %v6012_v45 = vmul.f32 %v8923_v34, %v11968_v37  ;;  %v6036_v55 = vpack.c.bf16 %v6014_v63, %v6013_v1  ;;  %8936 = vrcp.f32 %v5959_v51 }
 0xca9   : > { %8178 = vmatprep.subr.bf16.mxu0 %v6311_v43  ;;  %v6315_v32 = vpop.permute.xlu1 %6314  ;;  %8938 = vrcp.f32 %v5962_v10 }
 0xcaa   : > { %8179 = vmatpush3.bf16.msra.mxu0 %v6311_v43  ;;  %v6035_v35 = vpack.c.bf16 %v6012_v45, %v6011_v56 }
 0xcab   : > { %8180 = vmatprep.subr.bf16.mxu0 %v6313_v54  ;;  %v8925_v29 = vpop.eup %8924 }
 0xcac   : > { %v8927_v6 = vpop.eup %8926  ;;  %8170 = vmatprep.mubr.msk.bf16.mxu1 %vm1495_vm2, %v6035_v35  ;;  %v6015_v25 = vmul.f32 %v8925_v29, %v11978_v42 }
 0xcad   : > { %v8929_v28 = vpop.eup %8928  ;;  %8171 = vmatmul.mubr.msk.bf16.vlgmr.msra.gmra.mrb[200].mxu1 %vm1495_vm2, %v6036_v55  ;;  %v6018_v20 = vmul.f32 %v8927_v6, %v11976_v44  ;;  %v6317_v37 = vpop.permute.xlu1 %6316  ;;  %v6415_v44 = vld [vmem:[%s12191_s7 + $0xc] sm:$0xf] }
 0xcae   : > { %8181 = vmatpush3.bf16.msra.mxu0 %v6313_v54  ;;  %v6017_v22 = vmul.f32 %v8929_v28, %v11970_v48  ;;  %v6465_v24 = vsel %vm3455_vm3, %v6415_v44, 0 }
 0xcaf   : > { %v8931_v11 = vpop.eup %8930  ;;  %8182 = vmatprep.subr.bf16.mxu0 %v6315_v32 }
 0xcb0   : > { %v6016_v7 = vmul.f32 %v8931_v11, %v11984_v57  ;;  %v8933_v39 = vpop.eup %8932  ;;  %v6038_v42 = vpack.c.bf16 %v6018_v20, %v6017_v22 }
 0xcb1   : > { %v8140_v27 = vpop.f32.mrb[176].mxu0  ;;  %v8935_v3 = vpop.eup %8934  ;;  %v6023_v57 = vmul.f32 %v8933_v39, %v11913_v49 }
 0xcb2   : > { %8183 = vmatpush3.bf16.msra.mxu0 %v6315_v32  ;;  %v6101_v16 = vpop.f32.mrb[177].mxu0  ;;  %v6037_v46 = vpack.c.bf16 %v6016_v7, %v6015_v25  ;;  %v6024_v48 = vmul.f32 %v8935_v3, %v11907_v36  ;;  %v8937_v5 = vpop.eup %8936 }
 0xcb3   : > { %8184 = vmatprep.subr.bf16.mxu0 %v6317_v37  ;;  %v8141_v38 = vpop.f32.mrb[178].mxu0  ;;  %v8939_v61 = vpop.eup %8938  ;;  %v6025_v36 = vmul.f32 %v8937_v5, %v11901_v19 }
 0xcb4   : > { %v6400_v9 = vpack.c.bf16 %v8141_v38, %v8140_v27  ;;  %8174 = vmatprep.mubr.msk.bf16.mxu1 %vm1495_vm2, %v6037_v46  ;;  %v6104_v47 = vpop.f32.mrb[179].mxu0  ;;  %v6041_v18 = vpack.c.bf16 %v6024_v48, %v6023_v57  ;;  %v6026_v10 = vmul.f32 %v8939_v61, %v11899_v17  ;;  %v12053_v27 = vld [vmem:[%s12192_s8] ss:$0 sm:$0xff] }
 0xcb5   : > { %v6399_v2 = vpack.c.bf16 %v6104_v47, %v6101_v16  ;;  %8175 = vmatmul.mubr.msk.bf16.gmra.mrb[204].mxu1 %vm1495_vm2, %v6038_v42 }
 0xcb6   : > { %8185 = vmatpush3.bf16.msra.mxu0 %v6317_v37  ;;  %v6042_v51 = vpack.c.bf16 %v6026_v10, %v6025_v36 }
 0xcb7   : > { %8394 = vmatprep.subr.msk.bf16.mxu0 %vm3455_vm3, %v6415_v44 }
 0xcb9   : > { %8187 = vmatmul.mubr.msk.bf16.vlgmr.msra.gmra.mrb[192].mxu0 %vm1495_vm2, %v6040_v12  ;;  %v8144_v49 = vpop.f32.mrb[180].mxu0 }
 0xcba   : > { %8190 = vmatprep.mubr.msk.bf16.mxu0 %vm1495_vm2, %v6041_v18  ;;  %v6117_v23 = vpop.f32.mrb[181].mxu0  ;;  %8195 = vmatpush3.bf16.msra.mxu0 %v6465_v24 }
 0xcbb   : > { %v8145_v50 = vpop.f32.mrb[182].mxu0 }
 0xcbc   : > { %v6402_v8 = vpack.c.bf16 %v8145_v50, %v8144_v49  ;;  %v6120_v58 = vpop.f32.mrb[183].mxu0  ;;  %v12584_v50 = vld [vmem:[#allocation2_spill] sm:$0xff] }
 0xcbd   : > { %v6401_v33 = vpack.c.bf16 %v6120_v58, %v6117_v23 }
 0xcc1   : > { %8191 = vmatmul.mubr.msk.bf16.gmra.mrb[196].mxu0 %vm1495_vm2, %v6042_v51 }
 0xcc2   : > { %8196 = vmatprep.mubr.msk.bf16.mxu0 %vm1138_vm1, %v6399_v2 }
 0xcc9   : > { %8197 = vmatmul.mubr.msk.bf16.vlgmr.msra.gmra.mrb[120].mxu0 %vm1138_vm1, %v6400_v9 }
 0xcca   : > { %8200 = vmatprep.mubr.msk.bf16.mxu0 %vm1138_vm1, %v6401_v33  ;;  %v12585_v33 = vld [vmem:[#allocation6_spill] sm:$0xff] }
 0xcd1   : > { %8201 = vmatmul.mubr.msk.bf16.gmra.mrb[124].mxu0 %vm1138_vm1, %v6402_v8  ;;  %v8156_v52 = vpop.f32.mrb[184].mxu0 }
 0xcd2   : > { %v6190_v13 = vpop.f32.mrb[185].mxu0 }
 0xcd3   : > { %v8157_v12 = vpop.f32.mrb[186].mxu0 }
 0xcd4   : > { %v6404_v19 = vpack.c.bf16 %v8157_v12, %v8156_v52  ;;  %v6193_v40 = vpop.f32.mrb[187].mxu0 }
 0xcd5   : > { %v6403_v0 = vpack.c.bf16 %v6193_v40, %v6190_v13  ;;  %v12586_v13 = vld [vmem:[#allocation3_spill] sm:$0xff] }
 0xcd7   : > { %8204 = vmatprep.mubr.msk.bf16.mxu0 %vm1138_vm1, %v6403_v0  ;;  %v12587_v0 = vld [vmem:[#allocation11_spill] sm:$0xff] }
 0xcd9   : > { %8205 = vmatmul.mubr.msk.bf16.gmra.mrb[128].mxu0 %vm1138_vm1, %v6404_v19  ;;  %v8160_v17 = vpop.f32.mrb[188].mxu0 }
 0xcda   : > { %v6206_v21 = vpop.f32.mrb[189].mxu0 }
 0xcdb   : > { %v8161_v4 = vpop.f32.mrb[190].mxu0 }
 0xcdc   : > { %v6406_v60 = vpack.c.bf16 %v8161_v4, %v8160_v17  ;;  %v6209_v30 = vpop.f32.mrb[191].mxu0  ;;  %v12588_v4 = vld [vmem:[#allocation7_spill] sm:$0xff] }
 0xcdd   : > { %v6405_v41 = vpack.c.bf16 %v6209_v30, %v6206_v21 }
 0xcdf   : > { %8208 = vmatprep.mubr.msk.bf16.mxu0 %vm1138_vm1, %v6405_v41 }
 0xce1   : > { %8209 = vmatmul.mubr.msk.bf16.gmra.mrb[132].mxu0 %vm1138_vm1, %v6406_v60 }
 0xd80   : > { %v8172_v62 = vpop.f32.mrb[200].mxu1 }
 0xd81   : > { %v6279_v53 = vpop.f32.mrb[201].mxu1 }
 0xd82   : > { %v8173_v31 = vpop.f32.mrb[202].mxu1 }
 0xd83   : > { %v6408_v15 = vpack.c.bf16 %v8173_v31, %v8172_v62  ;;  %v6282_v14 = vpop.f32.mrb[203].mxu1  ;;  %v12589_v62 = vld [vmem:[#allocation10_spill] sm:$0xff] }
 0xd84   : > { %v6407_v54 = vpack.c.bf16 %v6282_v14, %v6279_v53  ;;  %v12590_v14 = vld [vmem:[#allocation5_spill] sm:$0xff] }
 0xd86   : > { %8212 = vmatprep.mubr.msk.bf16.mxu0 %vm1138_vm1, %v6407_v54 }
 0xd87   : > { %8213 = vmatmul.mubr.msk.bf16.gmra.mrb[136].mxu0 %vm1138_vm1, %v6408_v15 }
 0xd88   : > { %v8176_v59 = vpop.f32.mrb[204].mxu1 }
 0xd89   : > { %v6295_v34 = vpop.f32.mrb[205].mxu1 }
 0xd8a   : > { %v8177_v63 = vpop.f32.mrb[206].mxu1 }
 0xd8b   : > { %v6410_v43 = vpack.c.bf16 %v8177_v63, %v8176_v59  ;;  %v6298_v56 = vpop.f32.mrb[207].mxu1 }
 0xd8c   : > { %v8188_v45 = vpop.f32.mrb[192].mxu0  ;;  %v6409_v1 = vpack.c.bf16 %v6298_v56, %v6295_v34 }
 0xd8d   : > { %v6368_v35 = vpop.f32.mrb[193].mxu0 }
 0xd8e   : > { %v8189_v29 = vpop.f32.mrb[194].mxu0  ;;  %8216 = vmatprep.mubr.msk.bf16.mxu0 %vm1138_vm1, %v6409_v1  ;;  %v12592_v1 = vld [vmem:[#allocation78_spill] sm:$0xff] }
 0xd8f   : > { %v6412_v55 = vpack.c.bf16 %v8189_v29, %v8188_v45  ;;  %v6371_v32 = vpop.f32.mrb[195].mxu0  ;;  %8217 = vmatmul.mubr.msk.bf16.gmra.mrb[140].mxu0 %vm1138_vm1, %v6410_v43  ;;  %v12591_v43 = vld [vmem:[#allocation4_spill] sm:$0xff] }
 0xd90   : > { %v6411_v6 = vpack.c.bf16 %v6371_v32, %v6368_v35  ;;  %v12593_v32 = vld [vmem:[#allocation80_spill] sm:$0xff] }
 0xd92   : > { %8220 = vmatprep.mubr.msk.bf16.mxu0 %vm1138_vm1, %v6411_v6 }
 0xd94   : > { %v8192_v28 = vpop.f32.mrb[196].mxu0 }
 0xd95   : > { %v6384_v11 = vpop.f32.mrb[197].mxu0 }
 0xd96   : > { %v8193_v25 = vpop.f32.mrb[198].mxu0 }
 0xd97   : > { %v6414_v7 = vpack.c.bf16 %v8193_v25, %v8192_v28  ;;  %v6387_v20 = vpop.f32.mrb[199].mxu0  ;;  %8221 = vmatmul.mubr.msk.bf16.gmra.mrb[144].mxu0 %vm1138_vm1, %v6412_v55  ;;  %v12594_v25 = vld [vmem:[#allocation79_spill] sm:$0xff] }
 0xd98   : > { %v6413_v39 = vpack.c.bf16 %v6387_v20, %v6384_v11 }
 0xd9a   : > { %8224 = vmatprep.mubr.msk.bf16.mxu0 %vm1138_vm1, %v6413_v39 }
 0xd9c   : > { %v8198_v37 = vpop.f32.mrb[120].mxu0 }
 0xd9d   : > { %v6669_v16 = vadd.f32 %v8198_v37, %v12053_v27  ;;  %v6501_v46 = vpop.f32.mrb[121].mxu0 }
 0xd9e   : > { %v6667_v22 = vadd.f32 %v12053_v27, %v6501_v46  ;;  %v8199_v3 = vpop.f32.mrb[122].mxu0 }
 0xd9f   : > { %6701 = vst.msk [vmem:[%s12058_s29 + $0x10] sm:$0xff] %vm504_vm0, %v6669_v16  ;;  %v6670_v38 = vadd.f32 %v8199_v3, %v12053_v27  ;;  %v6504_v9 = vpop.f32.mrb[123].mxu0  ;;  %8225 = vmatmul.mubr.msk.bf16.gmra.mrb[148].mxu0 %vm1138_vm1, %v6414_v7  ;;  %v12595_v16 = vld [vmem:[#allocation49_spill] sm:$0xff]  ;;  %v12596_v3 = vld [vmem:[#allocation47_spill] sm:$0xff] }
 0xda0   : > { %6699 = vst.msk [vmem:[%s12058_s29] sm:$0xff] %vm504_vm0, %v6667_v22  ;;  %v6668_v47 = vadd.f32 %v12053_v27, %v6504_v9 }
 0xda1   : > { %6702 = vst.msk [vmem:[%s12058_s29 + $0x18] sm:$0xff] %vm504_vm0, %v6670_v38 }
 0xda2   : > { %6700 = vst.msk [vmem:[%s12058_s29 + $0x8] sm:$0xff] %vm504_vm0, %v6668_v47 }
 0xda4   : > { %v8202_v42 = vpop.f32.mrb[124].mxu0 }
 0xda5   : > { %v6673_v57 = vadd.f32 %v8202_v42, %v12053_v27  ;;  %v6517_v44 = vpop.f32.mrb[125].mxu0  ;;  %v12597_v42 = vld [vmem:[#allocation46_spill] sm:$0xff] }
 0xda6   : > { %v6671_v2 = vadd.f32 %v12053_v27, %v6517_v44  ;;  %v8203_v48 = vpop.f32.mrb[126].mxu0 }
 0xda7   : > { %6705 = vst.msk [vmem:[%s12058_s29 + $0x30] sm:$0xff] %vm504_vm0, %v6673_v57  ;;  %v6674_v24 = vadd.f32 %v8203_v48, %v12053_v27  ;;  %v6520_v5 = vpop.f32.mrb[127].mxu0  ;;  %v12598_v48 = vld [vmem:[#allocation52_spill] sm:$0xff] }
 0xda8   : > { %6703 = vst.msk [vmem:[%s12058_s29 + $0x20] sm:$0xff] %vm504_vm0, %v6671_v2  ;;  %v6672_v18 = vadd.f32 %v12053_v27, %v6520_v5 }
 0xda9   : > { %6706 = vst.msk [vmem:[%s12058_s29 + $0x38] sm:$0xff] %vm504_vm0, %v6674_v24 }
 0xdaa   : > { %6704 = vst.msk [vmem:[%s12058_s29 + $0x28] sm:$0xff] %vm504_vm0, %v6672_v18 }
 0xdac   : > { %v8206_v49 = vpop.f32.mrb[128].mxu0 }
 0xdad   : > { %v8230_v61 = vadd.f32 %v8206_v49, %v10910_v26  ;;  %v6533_v23 = vpop.f32.mrb[129].mxu0 }
 0xdae   : > { %v8231_v36 = vadd.f32 %v6533_v23, %v12584_v50  ;;  %v8207_v8 = vpop.f32.mrb[130].mxu0 }
 0xdaf   : > { %v6677_v58 = vadd.f32 %v8230_v61, %v12053_v27  ;;  %v8232_v10 = vadd.f32 %v8207_v8, %v12585_v33  ;;  %v6536_v51 = vpop.f32.mrb[131].mxu0  ;;  %v12599_v61 = vld [vmem:[#allocation56_spill] sm:$0xff] }
 0xdb0   : > { %v6675_v52 = vadd.f32 %v8231_v36, %v12053_v27  ;;  %v8233_v12 = vadd.f32 %v6536_v51, %v12586_v13  ;;  %v12600_v36 = vld [vmem:[#allocation48_spill] sm:$0xff] }
 0xdb1   : > { %6709 = vst.msk [vmem:[%s12058_s29 + $0x50] sm:$0xff] %vm504_vm0, %v6677_v58  ;;  %v6678_v19 = vadd.f32 %v8232_v10, %v12053_v27  ;;  %v12601_v10 = vld [vmem:[#allocation57_spill] sm:$0xff] }
 0xdb2   : > { %6707 = vst.msk [vmem:[%s12058_s29 + $0x40] sm:$0xff] %vm504_vm0, %v6675_v52  ;;  %v6676_v26 = vadd.f32 %v8233_v12, %v12053_v27  ;;  %v12602_v12 = vld [vmem:[#allocation50_spill] sm:$0xff] }
 0xdb3   : > { %6710 = vst.msk [vmem:[%s12058_s29 + $0x58] sm:$0xff] %vm504_vm0, %v6678_v19 }
 0xdb4   : > { %6708 = vst.msk [vmem:[%s12058_s29 + $0x48] sm:$0xff] %vm504_vm0, %v6676_v26  ;;  %v8210_v40 = vpop.f32.mrb[132].mxu0 }
 0xdb5   : > { %v8234_v17 = vadd.f32 %v8210_v40, %v12587_v0  ;;  %v6549_v21 = vpop.f32.mrb[133].mxu0 }
 0xdb6   : > { %v8235_v60 = vadd.f32 %v6549_v21, %v12588_v4  ;;  %v8211_v30 = vpop.f32.mrb[134].mxu0 }
 0xdb7   : > { %v6681_v41 = vadd.f32 %v8234_v17, %v12053_v27  ;;  %v8236_v53 = vadd.f32 %v8211_v30, %v12589_v62  ;;  %v6552_v31 = vpop.f32.mrb[135].mxu0  ;;  %v12603_v17 = vld [vmem:[#allocation59_spill] sm:$0xff] }
 0xdb8   : > { %v6679_v15 = vadd.f32 %v8235_v60, %v12053_v27  ;;  %v8237_v54 = vadd.f32 %v6552_v31, %v12590_v14  ;;  %v12604_v60 = vld [vmem:[#allocation53_spill] sm:$0xff] }
 0xdb9   : > { %6713 = vst.msk [vmem:[%s12058_s29 + $0x70] sm:$0xff] %vm504_vm0, %v6681_v41  ;;  %v6682_v59 = vadd.f32 %v8236_v53, %v12053_v27  ;;  %v12605_v53 = vld [vmem:[#allocation54_spill] sm:$0xff] }
 0xdba   : > { %6711 = vst.msk [vmem:[%s12058_s29 + $0x60] sm:$0xff] %vm504_vm0, %v6679_v15  ;;  %v6680_v34 = vadd.f32 %v8237_v54, %v12053_v27  ;;  %v12606_v54 = vld [vmem:[#allocation55_spill] sm:$0xff] }
 0xdbb   : > { %6714 = vst.msk [vmem:[%s12058_s29 + $0x78] sm:$0xff] %vm504_vm0, %v6682_v59 }
 0xdbc   : > { %6712 = vst.msk [vmem:[%s12058_s29 + $0x68] sm:$0xff] %vm504_vm0, %v6680_v34 }
 0xe5a   : > { %v8214_v63 = vpop.f32.mrb[136].mxu0 }
 0xe5b   : > { %v8238_v56 = vadd.f32 %v8214_v63, %v12591_v43  ;;  %v6565_v45 = vpop.f32.mrb[137].mxu0 }
 0xe5c   : > { %v8239_v35 = vadd.f32 %v6565_v45, %v12592_v1  ;;  %v8215_v29 = vpop.f32.mrb[138].mxu0 }
 0xe5d   : > { %v6685_v55 = vadd.f32 %v8238_v56, %v12053_v27  ;;  %v8240_v6 = vadd.f32 %v8215_v29, %v12593_v32  ;;  %v6568_v28 = vpop.f32.mrb[139].mxu0 }
 0xe5e   : > { %v6683_v11 = vadd.f32 %v8239_v35, %v12053_v27  ;;  %v8241_v7 = vadd.f32 %v6568_v28, %v12594_v25 }
 0xe5f   : > { %6717 = vst.msk [vmem:[%s12058_s29 + $0x90] sm:$0xff] %vm504_vm0, %v6685_v55  ;;  %v6686_v20 = vadd.f32 %v8240_v6, %v12053_v27 }
 0xe60   : > { %6715 = vst.msk [vmem:[%s12058_s29 + $0x80] sm:$0xff] %vm504_vm0, %v6683_v11  ;;  %v6684_v39 = vadd.f32 %v8241_v7, %v12053_v27 }
 0xe61   : > { %6718 = vst.msk [vmem:[%s12058_s29 + $0x98] sm:$0xff] %vm504_vm0, %v6686_v20 }
 0xe62   : > { %6716 = vst.msk [vmem:[%s12058_s29 + $0x88] sm:$0xff] %vm504_vm0, %v6684_v39  ;;  %v8218_v37 = vpop.f32.mrb[140].mxu0 }
 0xe63   : > { %v8242_v46 = vadd.f32 %v8218_v37, %v12595_v16  ;;  %v6581_v22 = vpop.f32.mrb[141].mxu0 }
 0xe64   : > { %v8243_v38 = vadd.f32 %v6581_v22, %v12596_v3  ;;  %v8219_v9 = vpop.f32.mrb[142].mxu0 }
 0xe65   : > { %v6689_v47 = vadd.f32 %v8242_v46, %v12053_v27  ;;  %v8244_v57 = vadd.f32 %v8219_v9, %v12597_v42  ;;  %v6584_v44 = vpop.f32.mrb[143].mxu0 }
 0xe66   : > { %v6687_v2 = vadd.f32 %v8243_v38, %v12053_v27  ;;  %v8245_v24 = vadd.f32 %v6584_v44, %v12598_v48 }
 0xe67   : > { %6721 = vst.msk [vmem:[%s12058_s29 + $0xb0] sm:$0xff] %vm504_vm0, %v6689_v47  ;;  %v6690_v5 = vadd.f32 %v8244_v57, %v12053_v27 }
 0xe68   : > { %6719 = vst.msk [vmem:[%s12058_s29 + $0xa0] sm:$0xff] %vm504_vm0, %v6687_v2  ;;  %v6688_v18 = vadd.f32 %v8245_v24, %v12053_v27 }
 0xe69   : > { %6722 = vst.msk [vmem:[%s12058_s29 + $0xb8] sm:$0xff] %vm504_vm0, %v6690_v5 }
 0xe6a   : > { %6720 = vst.msk [vmem:[%s12058_s29 + $0xa8] sm:$0xff] %vm504_vm0, %v6688_v18  ;;  %v8222_v49 = vpop.f32.mrb[144].mxu0 }
 0xe6b   : > { %v8246_v23 = vadd.f32 %v8222_v49, %v12599_v61  ;;  %v6597_v50 = vpop.f32.mrb[145].mxu0 }
 0xe6c   : > { %v8247_v8 = vadd.f32 %v6597_v50, %v12600_v36  ;;  %v8223_v58 = vpop.f32.mrb[146].mxu0 }
 0xe6d   : > { %v6693_v33 = vadd.f32 %v8246_v23, %v12053_v27  ;;  %v8248_v51 = vadd.f32 %v8223_v58, %v12601_v10  ;;  %v6600_v52 = vpop.f32.mrb[147].mxu0 }
 0xe6e   : > { %v6691_v13 = vadd.f32 %v8247_v8, %v12053_v27  ;;  %v8249_v19 = vadd.f32 %v6600_v52, %v12602_v12 }
 0xe6f   : > { %6725 = vst.msk [vmem:[%s12058_s29 + $0xd0] sm:$0xff] %vm504_vm0, %v6693_v33  ;;  %v6694_v26 = vadd.f32 %v8248_v51, %v12053_v27 }
 0xe70   : > { %6723 = vst.msk [vmem:[%s12058_s29 + $0xc0] sm:$0xff] %vm504_vm0, %v6691_v13  ;;  %v6692_v40 = vadd.f32 %v8249_v19, %v12053_v27 }
 0xe71   : > { %6726 = vst.msk [vmem:[%s12058_s29 + $0xd8] sm:$0xff] %vm504_vm0, %v6694_v26 }
 0xe72   : > { %6724 = vst.msk [vmem:[%s12058_s29 + $0xc8] sm:$0xff] %vm504_vm0, %v6692_v40  ;;  %v8226_v0 = vpop.f32.mrb[148].mxu0 }
 0xe73   : > { %v8250_v21 = vadd.f32 %v8226_v0, %v12603_v17  ;;  %v6613_v4 = vpop.f32.mrb[149].mxu0 }
 0xe74   : > { %v8251_v30 = vadd.f32 %v6613_v4, %v12604_v60  ;;  %v8227_v41 = vpop.f32.mrb[150].mxu0 }
 0xe75   : > { %v6697_v62 = vadd.f32 %v8250_v21, %v12053_v27  ;;  %v8252_v31 = vadd.f32 %v8227_v41, %v12605_v53  ;;  %v6616_v15 = vpop.f32.mrb[151].mxu0 }
 0xe76   : > { %v6695_v14 = vadd.f32 %v8251_v30, %v12053_v27  ;;  %v8253_v59 = vadd.f32 %v6616_v15, %v12606_v54 }
 0xe77   : > { %6729 = vst.msk [vmem:[%s12058_s29 + $0xf0] sm:$0xff] %vm504_vm0, %v6697_v62  ;;  %v6698_v34 = vadd.f32 %v8252_v31, %v12053_v27 }
 0xe78   : > { %6727 = vst.msk [vmem:[%s12058_s29 + $0xe0] sm:$0xff] %vm504_vm0, %v6695_v14  ;;  %v6696_v63 = vadd.f32 %v8253_v59, %v12053_v27 }
 0xe79   : > { %6730 = vst.msk [vmem:[%s12058_s29 + $0xf8] sm:$0xff] %vm504_vm0, %v6698_v34 }
 0xe7a   : > { %6728 = vst.msk [vmem:[%s12058_s29 + $0xe8] sm:$0xff] %vm504_vm0, %v6696_v63 }
 0xe7b PF: > { %s20_s13 = sadd.s32 1, %s8946_s13  }
 0xe7c   : > { %p17_p4 = scmp.ge.s32.totalorder %s20_s13, 5  }
 0xe7e   :  { %19 = sbr.rel (!%p17_p4) target bundleno = 1 (0x1), region = 93 }

</bundles_post_ra>
